<compile_context>
chip_gen: v5e
topology: v5e:2x2
jax: 0.10.0
libtpu: 0.0.40
codegen_flags: <defaults>
</compile_context>

<pallas_src>
import jax
import jax.numpy as jnp
from jax.experimental import pallas as pl
from jax.experimental.pallas import tpu as pltpu


# ------------------------------ fused kernel ---------------------------------
def _make_fused_kernel(*, T, B, H, L, IMG, matmul_dtype=jnp.float32):
    """Builds the fused forward kernel body (closure over static shape config).

    Kernel argument order:
      x_ref (T*B, E)  time-major embedded question, row index = t*B + b
      img_ref (B, IMG)
      per layer l in [0, L): wih (Din_l, 3H), whh (H, 3H), bx (1, 3H), bhn (1, H)
      w1 (IMG + L*H, F1), b1 (1, F1), w2 (F1, F2), b2 (1, F2)
      o_ref (B, F2)                                  [output]
      comb_scr (B, IMG + L*H) [, y_scr (T*B, H)]     [VMEM scratch]
    """

    def mm(a, w_ref):
        # Single place to flip MXU feed dtype (bf16 on v6e/v7x); f32 accumulate.
        return jnp.dot(a.astype(matmul_dtype), w_ref[...].astype(matmul_dtype),
                       preferred_element_type=jnp.float32)

    def kernel(x_ref, img_ref, *refs):
        layer_refs = refs[:4 * L]
        w1_ref, b1_ref, w2_ref, b2_ref, o_ref = refs[4 * L:4 * L + 5]
        scratch = refs[4 * L + 5:]
        comb_scr = scratch[0]
        y_scr = scratch[1] if L > 1 else None

        h_finals = []
        x_flat = x_ref[...]                       # (T*B, Din) f32
        for l in range(L):
            wih, whh, bx, bhn = layer_refs[4 * l:4 * (l + 1)]
            last_layer = (l == L - 1)

            # Hoisted input projection for the whole sequence (off the serial
            # chain): one wide (T*B, Din) x (Din, 3H) matmul. r/z biases folded.
            gi_all = mm(x_flat, wih) + bx[...]    # (T*B, 3H)

            whh_v = whh[...]                      # (H, 3H), read once
            bhn_b = jnp.broadcast_to(bhn[...], (B, H))   # hoisted broadcast

            h = jnp.zeros((B, H), jnp.float32)    # nn.GRU default zero h0
            for t in range(T):                    # fully unrolled, static T
                gi = gi_all[t * B:(t + 1) * B, :]                 # (B, 3H)
                gh = mm(h, whh)                                   # (B, 3H)
                r = jax.nn.sigmoid(gi[:, 0:H] + gh[:, 0:H])
                z = jax.nn.sigmoid(gi[:, H:2 * H] + gh[:, H:2 * H])
                n = jnp.tanh(gi[:, 2 * H:3 * H] + r * (gh[:, 2 * H:3 * H] + bhn_b))
                h = (1.0 - z) * n + z * h
                if not last_layer:
                    # Needed only as the next layer's input sequence.
                    y_scr[t * B:(t + 1) * B, :] = h
            h_finals.append(h)
            if not last_layer:
                x_flat = y_scr[...]

        # combined = torch.cat((image_features, h_n.view(B, -1)), dim=1)
        # Reproduces the raw row-major reinterpretation of the (L, B, H) h_n
        # buffer exactly (it mixes batch samples when L > 1, as in PyTorch).
        comb_scr[:, 0:IMG] = img_ref[...]
        for l in range(L):
            for b in range(B):
                idx = l * B + b                   # flat (L, B) row of h_n
                row = idx // L                    # row of the .view(B, -1) result
                col = IMG + (idx % L) * H         # column offset of this H-chunk
                comb_scr[row:row + 1, col:col + H] = h_finals[l][b:b + 1, :]

        # relu(fc1) -> relu(fc2) -> softmax(dim=1)
        comb = comb_scr[...]
        h1 = jnp.maximum(mm(comb, w1_ref) + b1_ref[...], 0.0)
        logits = jnp.maximum(mm(h1, w2_ref) + b2_ref[...], 0.0)
        m = jnp.max(logits, axis=1, keepdims=True)
        e = jnp.exp(logits - m)
        denom = jnp.sum(e, axis=1, keepdims=True)
        o_ref[...] = e * pl.reciprocal(denom, approx=True)

    return kernel


# ------------------------------- full forward --------------------------------
def simple_cnn_lstm_forward(params, image_features, questions,
                            matmul_dtype=jnp.float32):
    """SimpleCNNLSTM.forward for the documented config.

    image_features: (B, 512) f32
    questions:      (B, T)   integer token ids
    returns:        (B, 100) f32 softmax probabilities
    """
    # Frozen embedding lookup stays in XLA (don't pull the vocab table into VMEM).
    questions = questions.astype(jnp.int32)
    emb = jnp.take(params["embedding"], questions, axis=0)      # (B, T, E)
    B, T, E = emb.shape
    # Time-major flattening: row t*B + b.
    x_flat = jnp.transpose(emb, (1, 0, 2)).reshape(T * B, E).astype(jnp.float32)

    gru = params["gru"]
    L = len(gru)
    H = gru[0]["whh"].shape[0]
    IMG = image_features.shape[1]
    F2 = params["fc2_w"].shape[1]

    kernel = _make_fused_kernel(T=T, B=B, H=H, L=L, IMG=IMG,
                                matmul_dtype=matmul_dtype)

    layer_args = []
    for layer in gru:
        layer_args += [layer["wih"], layer["whh"], layer["bx"], layer["bhn"]]

    vmem_spec = pl.BlockSpec(memory_space=pltpu.MemorySpace.VMEM)
    n_inputs = 2 + 4 * L + 4

    scratch_shapes = [pltpu.VMEM((B, IMG + L * H), jnp.float32)]
    if L > 1:
        scratch_shapes.append(pltpu.VMEM((T * B, H), jnp.float32))

    return pl.pallas_call(
        kernel,
        out_shape=jax.ShapeDtypeStruct((B, F2), jnp.float32),
        in_specs=[vmem_spec] * n_inputs,
        out_specs=vmem_spec,
        scratch_shapes=scratch_shapes,
    )(x_flat, image_features.astype(jnp.float32), *layer_args,
      params["fc1_w"], params["fc1_b"], params["fc2_w"], params["fc2_b"])


# --------------------------- pure-JAX reference -------------------------------
def reference_forward(params, image_features, questions):
    questions = questions.astype(jnp.int32)
    emb = jnp.take(params["embedding"], questions, axis=0)      # (B, T, E)
    B, T, _ = emb.shape
    x = jnp.transpose(emb, (1, 0, 2)).astype(jnp.float32)       # (T, B, E)
    H = params["gru"][0]["whh"].shape[0]
    finals = []
    for layer in params["gru"]:
        wih, whh, bx, bhn = layer["wih"], layer["whh"], layer["bx"], layer["bhn"]
        h = jnp.zeros((B, H), jnp.float32)
        ys = []
        for t in range(T):
            gi = x[t] @ wih + bx
            gh = h @ whh
            r = jax.nn.sigmoid(gi[:, :H] + gh[:, :H])
            z = jax.nn.sigmoid(gi[:, H:2 * H] + gh[:, H:2 * H])
            n = jnp.tanh(gi[:, 2 * H:] + r * (gh[:, 2 * H:] + bhn))
            h = (1.0 - z) * n + z * h
            ys.append(h)
        x = jnp.stack(ys, axis=0)
        finals.append(h)
    h_n = jnp.stack(finals, axis=0)                             # (L, B, H)
    q_emb = jnp.reshape(h_n, (B, -1))                           # torch .view(B, -1)
    combined = jnp.concatenate(
        [image_features.astype(jnp.float32), q_emb], axis=1)
    h1 = jnp.maximum(combined @ params["fc1_w"] + params["fc1_b"], 0.0)
    logits = jnp.maximum(h1 @ params["fc2_w"] + params["fc2_b"], 0.0)
    return jax.nn.softmax(logits, axis=1)


# ------------------------------ parameter setup -------------------------------
def init_params(key, *, num_embeddings, embedding_dim, hidden_size, num_layers,
                image_dim, fc1_out, fc2_out):
    def nrm(k, shape, scale=0.1):
        return (scale * jax.random.normal(k, shape)).astype(jnp.float32)

    keys = iter(jax.random.split(key, 8 + 8 * num_layers))
    params = {"embedding": nrm(next(keys), (num_embeddings, embedding_dim), 1.0)}

    H = hidden_size
    gru = []
    din = embedding_dim
    for _ in range(num_layers):
        # Fused gate layout [r | z | n] along the last dim, stored (in, 3H) so
        # the kernel computes x @ W.  (torch weight_ih_l{k} is (3H, in) with the
        # same [r, z, n] row blocks; convert by transposing.)
        wih = nrm(next(keys), (din, 3 * H))
        whh = nrm(next(keys), (H, 3 * H))
        bih = nrm(next(keys), (3, H))
        bhh = nrm(next(keys), (3, H))
        # Fold b_ih + b_hh for r and z (both sit un-gated inside the sigmoid).
        # b_hh_n must stay separate: n = tanh(gi_n + r * (h @ Whh_n + b_hh_n)).
        bx = jnp.concatenate([bih[0] + bhh[0], bih[1] + bhh[1], bih[2]],
                             axis=0).reshape(1, 3 * H).astype(jnp.float32)
        bhn = bhh[2].reshape(1, H).astype(jnp.float32)
        gru.append({"wih": wih, "whh": whh, "bx": bx, "bhn": bhn})
        din = H
    params["gru"] = gru

    combined_dim = image_dim + hidden_size * num_layers
    params["fc1_w"] = nrm(next(keys), (combined_dim, fc1_out))
    params["fc1_b"] = nrm(next(keys), (1, fc1_out))
    params["fc2_w"] = nrm(next(keys), (fc1_out, fc2_out))
    params["fc2_b"] = nrm(next(keys), (1, fc2_out))
    return params


if __name__ == "__main__":
    # Small shapes consistent with the module's forward:
    B, T = 2, 8                 # batch, question length
    E = 16                      # embedding dim
    H, L = 32, 2                # lstm_hidden_size, lstm_num_layers
    IMG = 512                   # model_input == 'resnet 18 image features, question'
    FC1_OUT, FC2_OUT = 512, 100 # answer_type == 'number'
    VOCAB = 50

    key = jax.random.PRNGKey(0)
    k_params, k_img, k_q = jax.random.split(key, 3)

    params = init_params(k_params, num_embeddings=VOCAB, embedding_dim=E,
                         hidden_size=H, num_layers=L, image_dim=IMG,
                         fc1_out=FC1_OUT, fc2_out=FC2_OUT)

    image_features = jax.random.normal(k_img, (B, IMG), dtype=jnp.float32)
    questions = jax.random.randint(k_q, (B, T), 0, VOCAB, dtype=jnp.int32)

    out = jax.jit(simple_cnn_lstm_forward)(params, image_features, questions)
    out = jax.block_until_ready(out)
    ref = jax.jit(reference_forward)(params, image_features, questions)
    ref = jax.block_until_ready(ref)

    assert out.shape == (B, FC2_OUT)
    assert bool(jnp.all(jnp.isfinite(out)))
    # softmax rows sum to ~1 (approx reciprocal in the kernel)
    assert bool(jnp.allclose(jnp.sum(out, axis=1), 1.0, atol=1e-2))
    # match the pure-JAX reference
    assert bool(jnp.allclose(out, ref, atol=5e-3)), \
        float(jnp.max(jnp.abs(out - ref)))
    print("KERNEL_OK")
</pallas_src>

<mosaic_0001>
module attributes {stable_mosaic.version = 11 : i64} {
  func.func @kernel(%arg0: memref<16x16xf32, #tpu.memory_space<vmem>>, %arg1: memref<2x512xf32, #tpu.memory_space<vmem>>, %arg2: memref<16x96xf32, #tpu.memory_space<vmem>>, %arg3: memref<32x96xf32, #tpu.memory_space<vmem>>, %arg4: memref<1x96xf32, #tpu.memory_space<vmem>>, %arg5: memref<1x32xf32, #tpu.memory_space<vmem>>, %arg6: memref<32x96xf32, #tpu.memory_space<vmem>>, %arg7: memref<32x96xf32, #tpu.memory_space<vmem>>, %arg8: memref<1x96xf32, #tpu.memory_space<vmem>>, %arg9: memref<1x32xf32, #tpu.memory_space<vmem>>, %arg10: memref<576x512xf32, #tpu.memory_space<vmem>>, %arg11: memref<1x512xf32, #tpu.memory_space<vmem>>, %arg12: memref<512x100xf32, #tpu.memory_space<vmem>>, %arg13: memref<1x100xf32, #tpu.memory_space<vmem>>, %arg14: memref<2x100xf32, #tpu.memory_space<vmem>>, %arg15: memref<2x576xf32, #tpu.memory_space<vmem>>, %arg16: memref<16x32xf32, #tpu.memory_space<vmem>>) attributes {dimension_semantics = [], scalar_prefetch = 0 : i64, scratch_operands = 2 : i64, tpu.core_type = #tpu.core_type<tc>} {
    %c0 = arith.constant 0 : index
    %c0_0 = arith.constant 0 : index
    %0 = vector.load %arg0[%c0, %c0_0] : memref<16x16xf32, #tpu.memory_space<vmem>>, vector<16x16xf32>
    %c0_1 = arith.constant 0 : index
    %c0_2 = arith.constant 0 : index
    %1 = vector.load %arg2[%c0_1, %c0_2] : memref<16x96xf32, #tpu.memory_space<vmem>>, vector<16x96xf32>
    %cst = arith.constant dense<0.000000e+00> : vector<16x96xf32>
    %2 = tpu.matmul %0, %1, %cst {dimension_numbers = #tpu.dot_dimension_numbers<[1], [0], [0], [1], [0, 0, 1, 1], [], []>} : vector<16x16xf32>, vector<16x96xf32>, vector<16x96xf32> -> vector<16x96xf32>
    %c0_3 = arith.constant 0 : index
    %c0_4 = arith.constant 0 : index
    %3 = vector.load %arg4[%c0_3, %c0_4] : memref<1x96xf32, #tpu.memory_space<vmem>>, vector<1x96xf32>
    %4 = vector.broadcast %3 : vector<1x96xf32> to vector<16x96xf32>
    %5 = arith.addf %2, %4 : vector<16x96xf32>
    %c0_5 = arith.constant 0 : index
    %c0_6 = arith.constant 0 : index
    %6 = vector.load %arg5[%c0_5, %c0_6] : memref<1x32xf32, #tpu.memory_space<vmem>>, vector<1x32xf32>
    %7 = vector.shape_cast %6 : vector<1x32xf32> to vector<1x32xf32>
    %8 = vector.broadcast %7 : vector<1x32xf32> to vector<2x32xf32>
    %cst_7 = arith.constant 0.000000e+00 : f32
    %9 = vector.broadcast %cst_7 : f32 to vector<2x32xf32>
    %10 = vector.extract_strided_slice %5 {offsets = [0, 0], sizes = [2, 96], strides = [1, 1]} : vector<16x96xf32> to vector<2x96xf32>
    %c0_8 = arith.constant 0 : index
    %c0_9 = arith.constant 0 : index
    %11 = vector.load %arg3[%c0_8, %c0_9] : memref<32x96xf32, #tpu.memory_space<vmem>>, vector<32x96xf32>
    %cst_10 = arith.constant dense<0.000000e+00> : vector<2x96xf32>
    %12 = tpu.matmul %9, %11, %cst_10 {dimension_numbers = #tpu.dot_dimension_numbers<[1], [0], [0], [1], [0, 0, 1, 1], [], []>} : vector<2x32xf32>, vector<32x96xf32>, vector<2x96xf32> -> vector<2x96xf32>
    %13 = vector.extract_strided_slice %10 {offsets = [0, 0], sizes = [2, 32], strides = [1, 1]} : vector<2x96xf32> to vector<2x32xf32>
    %14 = vector.extract_strided_slice %12 {offsets = [0, 0], sizes = [2, 32], strides = [1, 1]} : vector<2x96xf32> to vector<2x32xf32>
    %15 = arith.addf %13, %14 : vector<2x32xf32>
    %16 = arith.negf %15 : vector<2x32xf32>
    %17 = math.exp %16 : vector<2x32xf32>
    %cst_11 = arith.constant 1.000000e+00 : f32
    %18 = vector.broadcast %cst_11 : f32 to vector<2x32xf32>
    %19 = arith.addf %18, %17 : vector<2x32xf32>
    %20 = arith.divf %18, %19 : vector<2x32xf32>
    %21 = vector.extract_strided_slice %10 {offsets = [0, 32], sizes = [2, 32], strides = [1, 1]} : vector<2x96xf32> to vector<2x32xf32>
    %22 = vector.extract_strided_slice %12 {offsets = [0, 32], sizes = [2, 32], strides = [1, 1]} : vector<2x96xf32> to vector<2x32xf32>
    %23 = arith.addf %21, %22 : vector<2x32xf32>
    %24 = arith.negf %23 : vector<2x32xf32>
    %25 = math.exp %24 : vector<2x32xf32>
    %cst_12 = arith.constant 1.000000e+00 : f32
    %26 = vector.broadcast %cst_12 : f32 to vector<2x32xf32>
    %27 = arith.addf %26, %25 : vector<2x32xf32>
    %28 = arith.divf %26, %27 : vector<2x32xf32>
    %29 = vector.extract_strided_slice %10 {offsets = [0, 64], sizes = [2, 32], strides = [1, 1]} : vector<2x96xf32> to vector<2x32xf32>
    %30 = vector.extract_strided_slice %12 {offsets = [0, 64], sizes = [2, 32], strides = [1, 1]} : vector<2x96xf32> to vector<2x32xf32>
    %31 = arith.addf %30, %8 : vector<2x32xf32>
    %32 = arith.mulf %20, %31 : vector<2x32xf32>
    %33 = arith.addf %29, %32 : vector<2x32xf32>
    %34 = math.tanh %33 : vector<2x32xf32>
    %cst_13 = arith.constant 1.000000e+00 : f32
    %35 = vector.broadcast %cst_13 : f32 to vector<2x32xf32>
    %36 = arith.subf %35, %28 : vector<2x32xf32>
    %37 = arith.mulf %36, %34 : vector<2x32xf32>
    %38 = arith.mulf %28, %9 : vector<2x32xf32>
    %39 = arith.addf %37, %38 : vector<2x32xf32>
    %c0_14 = arith.constant 0 : index
    %c0_15 = arith.constant 0 : index
    %40 = vector.load %arg16[%c0_14, %c0_15] : memref<16x32xf32, #tpu.memory_space<vmem>>, vector<2x32xf32>
    tpu.vector_store %arg16[%c0_14, %c0_15], %39 {strides = array<i32>} : memref<16x32xf32, #tpu.memory_space<vmem>>, vector<2x32xf32>,
    %41 = vector.extract_strided_slice %5 {offsets = [2, 0], sizes = [2, 96], strides = [1, 1]} : vector<16x96xf32> to vector<2x96xf32>
    %c0_16 = arith.constant 0 : index
    %c0_17 = arith.constant 0 : index
    %42 = vector.load %arg3[%c0_16, %c0_17] : memref<32x96xf32, #tpu.memory_space<vmem>>, vector<32x96xf32>
    %cst_18 = arith.constant dense<0.000000e+00> : vector<2x96xf32>
    %43 = tpu.matmul %39, %42, %cst_18 {dimension_numbers = #tpu.dot_dimension_numbers<[1], [0], [0], [1], [0, 0, 1, 1], [], []>} : vector<2x32xf32>, vector<32x96xf32>, vector<2x96xf32> -> vector<2x96xf32>
    %44 = vector.extract_strided_slice %41 {offsets = [0, 0], sizes = [2, 32], strides = [1, 1]} : vector<2x96xf32> to vector<2x32xf32>
    %45 = vector.extract_strided_slice %43 {offsets = [0, 0], sizes = [2, 32], strides = [1, 1]} : vector<2x96xf32> to vector<2x32xf32>
    %46 = arith.addf %44, %45 : vector<2x32xf32>
    %47 = arith.negf %46 : vector<2x32xf32>
    %48 = math.exp %47 : vector<2x32xf32>
    %cst_19 = arith.constant 1.000000e+00 : f32
    %49 = vector.broadcast %cst_19 : f32 to vector<2x32xf32>
    %50 = arith.addf %49, %48 : vector<2x32xf32>
    %51 = arith.divf %49, %50 : vector<2x32xf32>
    %52 = vector.extract_strided_slice %41 {offsets = [0, 32], sizes = [2, 32], strides = [1, 1]} : vector<2x96xf32> to vector<2x32xf32>
    %53 = vector.extract_strided_slice %43 {offsets = [0, 32], sizes = [2, 32], strides = [1, 1]} : vector<2x96xf32> to vector<2x32xf32>
    %54 = arith.addf %52, %53 : vector<2x32xf32>
    %55 = arith.negf %54 : vector<2x32xf32>
    %56 = math.exp %55 : vector<2x32xf32>
    %cst_20 = arith.constant 1.000000e+00 : f32
    %57 = vector.broadcast %cst_20 : f32 to vector<2x32xf32>
    %58 = arith.addf %57, %56 : vector<2x32xf32>
    %59 = arith.divf %57, %58 : vector<2x32xf32>
    %60 = vector.extract_strided_slice %41 {offsets = [0, 64], sizes = [2, 32], strides = [1, 1]} : vector<2x96xf32> to vector<2x32xf32>
    %61 = vector.extract_strided_slice %43 {offsets = [0, 64], sizes = [2, 32], strides = [1, 1]} : vector<2x96xf32> to vector<2x32xf32>
    %62 = arith.addf %61, %8 : vector<2x32xf32>
    %63 = arith.mulf %51, %62 : vector<2x32xf32>
    %64 = arith.addf %60, %63 : vector<2x32xf32>
    %65 = math.tanh %64 : vector<2x32xf32>
    %cst_21 = arith.constant 1.000000e+00 : f32
    %66 = vector.broadcast %cst_21 : f32 to vector<2x32xf32>
    %67 = arith.subf %66, %59 : vector<2x32xf32>
    %68 = arith.mulf %67, %65 : vector<2x32xf32>
    %69 = arith.mulf %59, %39 : vector<2x32xf32>
    %70 = arith.addf %68, %69 : vector<2x32xf32>
    %c2 = arith.constant 2 : index
    %c0_22 = arith.constant 0 : index
    %71 = vector.load %arg16[%c2, %c0_22] : memref<16x32xf32, #tpu.memory_space<vmem>>, vector<2x32xf32>
    tpu.vector_store %arg16[%c2, %c0_22], %70 {strides = array<i32>} : memref<16x32xf32, #tpu.memory_space<vmem>>, vector<2x32xf32>,
    %72 = vector.extract_strided_slice %5 {offsets = [4, 0], sizes = [2, 96], strides = [1, 1]} : vector<16x96xf32> to vector<2x96xf32>
    %c0_23 = arith.constant 0 : index
    %c0_24 = arith.constant 0 : index
    %73 = vector.load %arg3[%c0_23, %c0_24] : memref<32x96xf32, #tpu.memory_space<vmem>>, vector<32x96xf32>
    %cst_25 = arith.constant dense<0.000000e+00> : vector<2x96xf32>
    %74 = tpu.matmul %70, %73, %cst_25 {dimension_numbers = #tpu.dot_dimension_numbers<[1], [0], [0], [1], [0, 0, 1, 1], [], []>} : vector<2x32xf32>, vector<32x96xf32>, vector<2x96xf32> -> vector<2x96xf32>
    %75 = vector.extract_strided_slice %72 {offsets = [0, 0], sizes = [2, 32], strides = [1, 1]} : vector<2x96xf32> to vector<2x32xf32>
    %76 = vector.extract_strided_slice %74 {offsets = [0, 0], sizes = [2, 32], strides = [1, 1]} : vector<2x96xf32> to vector<2x32xf32>
    %77 = arith.addf %75, %76 : vector<2x32xf32>
    %78 = arith.negf %77 : vector<2x32xf32>
    %79 = math.exp %78 : vector<2x32xf32>
    %cst_26 = arith.constant 1.000000e+00 : f32
    %80 = vector.broadcast %cst_26 : f32 to vector<2x32xf32>
    %81 = arith.addf %80, %79 : vector<2x32xf32>
    %82 = arith.divf %80, %81 : vector<2x32xf32>
    %83 = vector.extract_strided_slice %72 {offsets = [0, 32], sizes = [2, 32], strides = [1, 1]} : vector<2x96xf32> to vector<2x32xf32>
    %84 = vector.extract_strided_slice %74 {offsets = [0, 32], sizes = [2, 32], strides = [1, 1]} : vector<2x96xf32> to vector<2x32xf32>
    %85 = arith.addf %83, %84 : vector<2x32xf32>
    %86 = arith.negf %85 : vector<2x32xf32>
    %87 = math.exp %86 : vector<2x32xf32>
    %cst_27 = arith.constant 1.000000e+00 : f32
    %88 = vector.broadcast %cst_27 : f32 to vector<2x32xf32>
    %89 = arith.addf %88, %87 : vector<2x32xf32>
    %90 = arith.divf %88, %89 : vector<2x32xf32>
    %91 = vector.extract_strided_slice %72 {offsets = [0, 64], sizes = [2, 32], strides = [1, 1]} : vector<2x96xf32> to vector<2x32xf32>
    %92 = vector.extract_strided_slice %74 {offsets = [0, 64], sizes = [2, 32], strides = [1, 1]} : vector<2x96xf32> to vector<2x32xf32>
    %93 = arith.addf %92, %8 : vector<2x32xf32>
    %94 = arith.mulf %82, %93 : vector<2x32xf32>
    %95 = arith.addf %91, %94 : vector<2x32xf32>
    %96 = math.tanh %95 : vector<2x32xf32>
    %cst_28 = arith.constant 1.000000e+00 : f32
    %97 = vector.broadcast %cst_28 : f32 to vector<2x32xf32>
    %98 = arith.subf %97, %90 : vector<2x32xf32>
    %99 = arith.mulf %98, %96 : vector<2x32xf32>
    %100 = arith.mulf %90, %70 : vector<2x32xf32>
    %101 = arith.addf %99, %100 : vector<2x32xf32>
    %c4 = arith.constant 4 : index
    %c0_29 = arith.constant 0 : index
    %102 = vector.load %arg16[%c4, %c0_29] : memref<16x32xf32, #tpu.memory_space<vmem>>, vector<2x32xf32>
    tpu.vector_store %arg16[%c4, %c0_29], %101 {strides = array<i32>} : memref<16x32xf32, #tpu.memory_space<vmem>>, vector<2x32xf32>,
    %103 = vector.extract_strided_slice %5 {offsets = [6, 0], sizes = [2, 96], strides = [1, 1]} : vector<16x96xf32> to vector<2x96xf32>
    %c0_30 = arith.constant 0 : index
    %c0_31 = arith.constant 0 : index
    %104 = vector.load %arg3[%c0_30, %c0_31] : memref<32x96xf32, #tpu.memory_space<vmem>>, vector<32x96xf32>
    %cst_32 = arith.constant dense<0.000000e+00> : vector<2x96xf32>
    %105 = tpu.matmul %101, %104, %cst_32 {dimension_numbers = #tpu.dot_dimension_numbers<[1], [0], [0], [1], [0, 0, 1, 1], [], []>} : vector<2x32xf32>, vector<32x96xf32>, vector<2x96xf32> -> vector<2x96xf32>
    %106 = vector.extract_strided_slice %103 {offsets = [0, 0], sizes = [2, 32], strides = [1, 1]} : vector<2x96xf32> to vector<2x32xf32>
    %107 = vector.extract_strided_slice %105 {offsets = [0, 0], sizes = [2, 32], strides = [1, 1]} : vector<2x96xf32> to vector<2x32xf32>
    %108 = arith.addf %106, %107 : vector<2x32xf32>
    %109 = arith.negf %108 : vector<2x32xf32>
    %110 = math.exp %109 : vector<2x32xf32>
    %cst_33 = arith.constant 1.000000e+00 : f32
    %111 = vector.broadcast %cst_33 : f32 to vector<2x32xf32>
    %112 = arith.addf %111, %110 : vector<2x32xf32>
    %113 = arith.divf %111, %112 : vector<2x32xf32>
    %114 = vector.extract_strided_slice %103 {offsets = [0, 32], sizes = [2, 32], strides = [1, 1]} : vector<2x96xf32> to vector<2x32xf32>
    %115 = vector.extract_strided_slice %105 {offsets = [0, 32], sizes = [2, 32], strides = [1, 1]} : vector<2x96xf32> to vector<2x32xf32>
    %116 = arith.addf %114, %115 : vector<2x32xf32>
    %117 = arith.negf %116 : vector<2x32xf32>
    %118 = math.exp %117 : vector<2x32xf32>
    %cst_34 = arith.constant 1.000000e+00 : f32
    %119 = vector.broadcast %cst_34 : f32 to vector<2x32xf32>
    %120 = arith.addf %119, %118 : vector<2x32xf32>
    %121 = arith.divf %119, %120 : vector<2x32xf32>
    %122 = vector.extract_strided_slice %103 {offsets = [0, 64], sizes = [2, 32], strides = [1, 1]} : vector<2x96xf32> to vector<2x32xf32>
    %123 = vector.extract_strided_slice %105 {offsets = [0, 64], sizes = [2, 32], strides = [1, 1]} : vector<2x96xf32> to vector<2x32xf32>
    %124 = arith.addf %123, %8 : vector<2x32xf32>
    %125 = arith.mulf %113, %124 : vector<2x32xf32>
    %126 = arith.addf %122, %125 : vector<2x32xf32>
    %127 = math.tanh %126 : vector<2x32xf32>
    %cst_35 = arith.constant 1.000000e+00 : f32
    %128 = vector.broadcast %cst_35 : f32 to vector<2x32xf32>
    %129 = arith.subf %128, %121 : vector<2x32xf32>
    %130 = arith.mulf %129, %127 : vector<2x32xf32>
    %131 = arith.mulf %121, %101 : vector<2x32xf32>
    %132 = arith.addf %130, %131 : vector<2x32xf32>
    %c6 = arith.constant 6 : index
    %c0_36 = arith.constant 0 : index
    %133 = vector.load %arg16[%c6, %c0_36] : memref<16x32xf32, #tpu.memory_space<vmem>>, vector<2x32xf32>
    tpu.vector_store %arg16[%c6, %c0_36], %132 {strides = array<i32>} : memref<16x32xf32, #tpu.memory_space<vmem>>, vector<2x32xf32>,
    %134 = vector.extract_strided_slice %5 {offsets = [8, 0], sizes = [2, 96], strides = [1, 1]} : vector<16x96xf32> to vector<2x96xf32>
    %c0_37 = arith.constant 0 : index
    %c0_38 = arith.constant 0 : index
    %135 = vector.load %arg3[%c0_37, %c0_38] : memref<32x96xf32, #tpu.memory_space<vmem>>, vector<32x96xf32>
    %cst_39 = arith.constant dense<0.000000e+00> : vector<2x96xf32>
    %136 = tpu.matmul %132, %135, %cst_39 {dimension_numbers = #tpu.dot_dimension_numbers<[1], [0], [0], [1], [0, 0, 1, 1], [], []>} : vector<2x32xf32>, vector<32x96xf32>, vector<2x96xf32> -> vector<2x96xf32>
    %137 = vector.extract_strided_slice %134 {offsets = [0, 0], sizes = [2, 32], strides = [1, 1]} : vector<2x96xf32> to vector<2x32xf32>
    %138 = vector.extract_strided_slice %136 {offsets = [0, 0], sizes = [2, 32], strides = [1, 1]} : vector<2x96xf32> to vector<2x32xf32>
    %139 = arith.addf %137, %138 : vector<2x32xf32>
    %140 = arith.negf %139 : vector<2x32xf32>
    %141 = math.exp %140 : vector<2x32xf32>
    %cst_40 = arith.constant 1.000000e+00 : f32
    %142 = vector.broadcast %cst_40 : f32 to vector<2x32xf32>
    %143 = arith.addf %142, %141 : vector<2x32xf32>
    %144 = arith.divf %142, %143 : vector<2x32xf32>
    %145 = vector.extract_strided_slice %134 {offsets = [0, 32], sizes = [2, 32], strides = [1, 1]} : vector<2x96xf32> to vector<2x32xf32>
    %146 = vector.extract_strided_slice %136 {offsets = [0, 32], sizes = [2, 32], strides = [1, 1]} : vector<2x96xf32> to vector<2x32xf32>
    %147 = arith.addf %145, %146 : vector<2x32xf32>
    %148 = arith.negf %147 : vector<2x32xf32>
    %149 = math.exp %148 : vector<2x32xf32>
    %cst_41 = arith.constant 1.000000e+00 : f32
    %150 = vector.broadcast %cst_41 : f32 to vector<2x32xf32>
    %151 = arith.addf %150, %149 : vector<2x32xf32>
    %152 = arith.divf %150, %151 : vector<2x32xf32>
    %153 = vector.extract_strided_slice %134 {offsets = [0, 64], sizes = [2, 32], strides = [1, 1]} : vector<2x96xf32> to vector<2x32xf32>
    %154 = vector.extract_strided_slice %136 {offsets = [0, 64], sizes = [2, 32], strides = [1, 1]} : vector<2x96xf32> to vector<2x32xf32>
    %155 = arith.addf %154, %8 : vector<2x32xf32>
    %156 = arith.mulf %144, %155 : vector<2x32xf32>
    %157 = arith.addf %153, %156 : vector<2x32xf32>
    %158 = math.tanh %157 : vector<2x32xf32>
    %cst_42 = arith.constant 1.000000e+00 : f32
    %159 = vector.broadcast %cst_42 : f32 to vector<2x32xf32>
    %160 = arith.subf %159, %152 : vector<2x32xf32>
    %161 = arith.mulf %160, %158 : vector<2x32xf32>
    %162 = arith.mulf %152, %132 : vector<2x32xf32>
    %163 = arith.addf %161, %162 : vector<2x32xf32>
    %c8 = arith.constant 8 : index
    %c0_43 = arith.constant 0 : index
    %164 = vector.load %arg16[%c8, %c0_43] : memref<16x32xf32, #tpu.memory_space<vmem>>, vector<2x32xf32>
    tpu.vector_store %arg16[%c8, %c0_43], %163 {strides = array<i32>} : memref<16x32xf32, #tpu.memory_space<vmem>>, vector<2x32xf32>,
    %165 = vector.extract_strided_slice %5 {offsets = [10, 0], sizes = [2, 96], strides = [1, 1]} : vector<16x96xf32> to vector<2x96xf32>
    %c0_44 = arith.constant 0 : index
    %c0_45 = arith.constant 0 : index
    %166 = vector.load %arg3[%c0_44, %c0_45] : memref<32x96xf32, #tpu.memory_space<vmem>>, vector<32x96xf32>
    %cst_46 = arith.constant dense<0.000000e+00> : vector<2x96xf32>
    %167 = tpu.matmul %163, %166, %cst_46 {dimension_numbers = #tpu.dot_dimension_numbers<[1], [0], [0], [1], [0, 0, 1, 1], [], []>} : vector<2x32xf32>, vector<32x96xf32>, vector<2x96xf32> -> vector<2x96xf32>
    %168 = vector.extract_strided_slice %165 {offsets = [0, 0], sizes = [2, 32], strides = [1, 1]} : vector<2x96xf32> to vector<2x32xf32>
    %169 = vector.extract_strided_slice %167 {offsets = [0, 0], sizes = [2, 32], strides = [1, 1]} : vector<2x96xf32> to vector<2x32xf32>
    %170 = arith.addf %168, %169 : vector<2x32xf32>
    %171 = arith.negf %170 : vector<2x32xf32>
    %172 = math.exp %171 : vector<2x32xf32>
    %cst_47 = arith.constant 1.000000e+00 : f32
    %173 = vector.broadcast %cst_47 : f32 to vector<2x32xf32>
    %174 = arith.addf %173, %172 : vector<2x32xf32>
    %175 = arith.divf %173, %174 : vector<2x32xf32>
    %176 = vector.extract_strided_slice %165 {offsets = [0, 32], sizes = [2, 32], strides = [1, 1]} : vector<2x96xf32> to vector<2x32xf32>
    %177 = vector.extract_strided_slice %167 {offsets = [0, 32], sizes = [2, 32], strides = [1, 1]} : vector<2x96xf32> to vector<2x32xf32>
    %178 = arith.addf %176, %177 : vector<2x32xf32>
    %179 = arith.negf %178 : vector<2x32xf32>
    %180 = math.exp %179 : vector<2x32xf32>
    %cst_48 = arith.constant 1.000000e+00 : f32
    %181 = vector.broadcast %cst_48 : f32 to vector<2x32xf32>
    %182 = arith.addf %181, %180 : vector<2x32xf32>
    %183 = arith.divf %181, %182 : vector<2x32xf32>
    %184 = vector.extract_strided_slice %165 {offsets = [0, 64], sizes = [2, 32], strides = [1, 1]} : vector<2x96xf32> to vector<2x32xf32>
    %185 = vector.extract_strided_slice %167 {offsets = [0, 64], sizes = [2, 32], strides = [1, 1]} : vector<2x96xf32> to vector<2x32xf32>
    %186 = arith.addf %185, %8 : vector<2x32xf32>
    %187 = arith.mulf %175, %186 : vector<2x32xf32>
    %188 = arith.addf %184, %187 : vector<2x32xf32>
    %189 = math.tanh %188 : vector<2x32xf32>
    %cst_49 = arith.constant 1.000000e+00 : f32
    %190 = vector.broadcast %cst_49 : f32 to vector<2x32xf32>
    %191 = arith.subf %190, %183 : vector<2x32xf32>
    %192 = arith.mulf %191, %189 : vector<2x32xf32>
    %193 = arith.mulf %183, %163 : vector<2x32xf32>
    %194 = arith.addf %192, %193 : vector<2x32xf32>
    %c10 = arith.constant 10 : index
    %c0_50 = arith.constant 0 : index
    %195 = vector.load %arg16[%c10, %c0_50] : memref<16x32xf32, #tpu.memory_space<vmem>>, vector<2x32xf32>
    tpu.vector_store %arg16[%c10, %c0_50], %194 {strides = array<i32>} : memref<16x32xf32, #tpu.memory_space<vmem>>, vector<2x32xf32>,
    %196 = vector.extract_strided_slice %5 {offsets = [12, 0], sizes = [2, 96], strides = [1, 1]} : vector<16x96xf32> to vector<2x96xf32>
    %c0_51 = arith.constant 0 : index
    %c0_52 = arith.constant 0 : index
    %197 = vector.load %arg3[%c0_51, %c0_52] : memref<32x96xf32, #tpu.memory_space<vmem>>, vector<32x96xf32>
    %cst_53 = arith.constant dense<0.000000e+00> : vector<2x96xf32>
    %198 = tpu.matmul %194, %197, %cst_53 {dimension_numbers = #tpu.dot_dimension_numbers<[1], [0], [0], [1], [0, 0, 1, 1], [], []>} : vector<2x32xf32>, vector<32x96xf32>, vector<2x96xf32> -> vector<2x96xf32>
    %199 = vector.extract_strided_slice %196 {offsets = [0, 0], sizes = [2, 32], strides = [1, 1]} : vector<2x96xf32> to vector<2x32xf32>
    %200 = vector.extract_strided_slice %198 {offsets = [0, 0], sizes = [2, 32], strides = [1, 1]} : vector<2x96xf32> to vector<2x32xf32>
    %201 = arith.addf %199, %200 : vector<2x32xf32>
    %202 = arith.negf %201 : vector<2x32xf32>
    %203 = math.exp %202 : vector<2x32xf32>
    %cst_54 = arith.constant 1.000000e+00 : f32
    %204 = vector.broadcast %cst_54 : f32 to vector<2x32xf32>
    %205 = arith.addf %204, %203 : vector<2x32xf32>
    %206 = arith.divf %204, %205 : vector<2x32xf32>
    %207 = vector.extract_strided_slice %196 {offsets = [0, 32], sizes = [2, 32], strides = [1, 1]} : vector<2x96xf32> to vector<2x32xf32>
    %208 = vector.extract_strided_slice %198 {offsets = [0, 32], sizes = [2, 32], strides = [1, 1]} : vector<2x96xf32> to vector<2x32xf32>
    %209 = arith.addf %207, %208 : vector<2x32xf32>
    %210 = arith.negf %209 : vector<2x32xf32>
    %211 = math.exp %210 : vector<2x32xf32>
    %cst_55 = arith.constant 1.000000e+00 : f32
    %212 = vector.broadcast %cst_55 : f32 to vector<2x32xf32>
    %213 = arith.addf %212, %211 : vector<2x32xf32>
    %214 = arith.divf %212, %213 : vector<2x32xf32>
    %215 = vector.extract_strided_slice %196 {offsets = [0, 64], sizes = [2, 32], strides = [1, 1]} : vector<2x96xf32> to vector<2x32xf32>
    %216 = vector.extract_strided_slice %198 {offsets = [0, 64], sizes = [2, 32], strides = [1, 1]} : vector<2x96xf32> to vector<2x32xf32>
    %217 = arith.addf %216, %8 : vector<2x32xf32>
    %218 = arith.mulf %206, %217 : vector<2x32xf32>
    %219 = arith.addf %215, %218 : vector<2x32xf32>
    %220 = math.tanh %219 : vector<2x32xf32>
    %cst_56 = arith.constant 1.000000e+00 : f32
    %221 = vector.broadcast %cst_56 : f32 to vector<2x32xf32>
    %222 = arith.subf %221, %214 : vector<2x32xf32>
    %223 = arith.mulf %222, %220 : vector<2x32xf32>
    %224 = arith.mulf %214, %194 : vector<2x32xf32>
    %225 = arith.addf %223, %224 : vector<2x32xf32>
    %c12 = arith.constant 12 : index
    %c0_57 = arith.constant 0 : index
    %226 = vector.load %arg16[%c12, %c0_57] : memref<16x32xf32, #tpu.memory_space<vmem>>, vector<2x32xf32>
    tpu.vector_store %arg16[%c12, %c0_57], %225 {strides = array<i32>} : memref<16x32xf32, #tpu.memory_space<vmem>>, vector<2x32xf32>,
    %227 = vector.extract_strided_slice %5 {offsets = [14, 0], sizes = [2, 96], strides = [1, 1]} : vector<16x96xf32> to vector<2x96xf32>
    %c0_58 = arith.constant 0 : index
    %c0_59 = arith.constant 0 : index
    %228 = vector.load %arg3[%c0_58, %c0_59] : memref<32x96xf32, #tpu.memory_space<vmem>>, vector<32x96xf32>
    %cst_60 = arith.constant dense<0.000000e+00> : vector<2x96xf32>
    %229 = tpu.matmul %225, %228, %cst_60 {dimension_numbers = #tpu.dot_dimension_numbers<[1], [0], [0], [1], [0, 0, 1, 1], [], []>} : vector<2x32xf32>, vector<32x96xf32>, vector<2x96xf32> -> vector<2x96xf32>
    %230 = vector.extract_strided_slice %227 {offsets = [0, 0], sizes = [2, 32], strides = [1, 1]} : vector<2x96xf32> to vector<2x32xf32>
    %231 = vector.extract_strided_slice %229 {offsets = [0, 0], sizes = [2, 32], strides = [1, 1]} : vector<2x96xf32> to vector<2x32xf32>
    %232 = arith.addf %230, %231 : vector<2x32xf32>
    %233 = arith.negf %232 : vector<2x32xf32>
    %234 = math.exp %233 : vector<2x32xf32>
    %cst_61 = arith.constant 1.000000e+00 : f32
    %235 = vector.broadcast %cst_61 : f32 to vector<2x32xf32>
    %236 = arith.addf %235, %234 : vector<2x32xf32>
    %237 = arith.divf %235, %236 : vector<2x32xf32>
    %238 = vector.extract_strided_slice %227 {offsets = [0, 32], sizes = [2, 32], strides = [1, 1]} : vector<2x96xf32> to vector<2x32xf32>
    %239 = vector.extract_strided_slice %229 {offsets = [0, 32], sizes = [2, 32], strides = [1, 1]} : vector<2x96xf32> to vector<2x32xf32>
    %240 = arith.addf %238, %239 : vector<2x32xf32>
    %241 = arith.negf %240 : vector<2x32xf32>
    %242 = math.exp %241 : vector<2x32xf32>
    %cst_62 = arith.constant 1.000000e+00 : f32
    %243 = vector.broadcast %cst_62 : f32 to vector<2x32xf32>
    %244 = arith.addf %243, %242 : vector<2x32xf32>
    %245 = arith.divf %243, %244 : vector<2x32xf32>
    %246 = vector.extract_strided_slice %227 {offsets = [0, 64], sizes = [2, 32], strides = [1, 1]} : vector<2x96xf32> to vector<2x32xf32>
    %247 = vector.extract_strided_slice %229 {offsets = [0, 64], sizes = [2, 32], strides = [1, 1]} : vector<2x96xf32> to vector<2x32xf32>
    %248 = arith.addf %247, %8 : vector<2x32xf32>
    %249 = arith.mulf %237, %248 : vector<2x32xf32>
    %250 = arith.addf %246, %249 : vector<2x32xf32>
    %251 = math.tanh %250 : vector<2x32xf32>
    %cst_63 = arith.constant 1.000000e+00 : f32
    %252 = vector.broadcast %cst_63 : f32 to vector<2x32xf32>
    %253 = arith.subf %252, %245 : vector<2x32xf32>
    %254 = arith.mulf %253, %251 : vector<2x32xf32>
    %255 = arith.mulf %245, %225 : vector<2x32xf32>
    %256 = arith.addf %254, %255 : vector<2x32xf32>
    %c14 = arith.constant 14 : index
    %c0_64 = arith.constant 0 : index
    %257 = vector.load %arg16[%c14, %c0_64] : memref<16x32xf32, #tpu.memory_space<vmem>>, vector<2x32xf32>
    tpu.vector_store %arg16[%c14, %c0_64], %256 {strides = array<i32>} : memref<16x32xf32, #tpu.memory_space<vmem>>, vector<2x32xf32>,
    %c0_65 = arith.constant 0 : index
    %c0_66 = arith.constant 0 : index
    %258 = vector.load %arg16[%c0_65, %c0_66] : memref<16x32xf32, #tpu.memory_space<vmem>>, vector<16x32xf32>
    %c0_67 = arith.constant 0 : index
    %c0_68 = arith.constant 0 : index
    %259 = vector.load %arg6[%c0_67, %c0_68] : memref<32x96xf32, #tpu.memory_space<vmem>>, vector<32x96xf32>
    %cst_69 = arith.constant dense<0.000000e+00> : vector<16x96xf32>
    %260 = tpu.matmul %258, %259, %cst_69 {dimension_numbers = #tpu.dot_dimension_numbers<[1], [0], [0], [1], [0, 0, 1, 1], [], []>} : vector<16x32xf32>, vector<32x96xf32>, vector<16x96xf32> -> vector<16x96xf32>
    %c0_70 = arith.constant 0 : index
    %c0_71 = arith.constant 0 : index
    %261 = vector.load %arg8[%c0_70, %c0_71] : memref<1x96xf32, #tpu.memory_space<vmem>>, vector<1x96xf32>
    %262 = vector.broadcast %261 : vector<1x96xf32> to vector<16x96xf32>
    %263 = arith.addf %260, %262 : vector<16x96xf32>
    %c0_72 = arith.constant 0 : index
    %c0_73 = arith.constant 0 : index
    %264 = vector.load %arg9[%c0_72, %c0_73] : memref<1x32xf32, #tpu.memory_space<vmem>>, vector<1x32xf32>
    %265 = vector.shape_cast %264 : vector<1x32xf32> to vector<1x32xf32>
    %266 = vector.broadcast %265 : vector<1x32xf32> to vector<2x32xf32>
    %cst_74 = arith.constant 0.000000e+00 : f32
    %267 = vector.broadcast %cst_74 : f32 to vector<2x32xf32>
    %268 = vector.extract_strided_slice %263 {offsets = [0, 0], sizes = [2, 96], strides = [1, 1]} : vector<16x96xf32> to vector<2x96xf32>
    %c0_75 = arith.constant 0 : index
    %c0_76 = arith.constant 0 : index
    %269 = vector.load %arg7[%c0_75, %c0_76] : memref<32x96xf32, #tpu.memory_space<vmem>>, vector<32x96xf32>
    %cst_77 = arith.constant dense<0.000000e+00> : vector<2x96xf32>
    %270 = tpu.matmul %267, %269, %cst_77 {dimension_numbers = #tpu.dot_dimension_numbers<[1], [0], [0], [1], [0, 0, 1, 1], [], []>} : vector<2x32xf32>, vector<32x96xf32>, vector<2x96xf32> -> vector<2x96xf32>
    %271 = vector.extract_strided_slice %268 {offsets = [0, 0], sizes = [2, 32], strides = [1, 1]} : vector<2x96xf32> to vector<2x32xf32>
    %272 = vector.extract_strided_slice %270 {offsets = [0, 0], sizes = [2, 32], strides = [1, 1]} : vector<2x96xf32> to vector<2x32xf32>
    %273 = arith.addf %271, %272 : vector<2x32xf32>
    %274 = arith.negf %273 : vector<2x32xf32>
    %275 = math.exp %274 : vector<2x32xf32>
    %cst_78 = arith.constant 1.000000e+00 : f32
    %276 = vector.broadcast %cst_78 : f32 to vector<2x32xf32>
    %277 = arith.addf %276, %275 : vector<2x32xf32>
    %278 = arith.divf %276, %277 : vector<2x32xf32>
    %279 = vector.extract_strided_slice %268 {offsets = [0, 32], sizes = [2, 32], strides = [1, 1]} : vector<2x96xf32> to vector<2x32xf32>
    %280 = vector.extract_strided_slice %270 {offsets = [0, 32], sizes = [2, 32], strides = [1, 1]} : vector<2x96xf32> to vector<2x32xf32>
    %281 = arith.addf %279, %280 : vector<2x32xf32>
    %282 = arith.negf %281 : vector<2x32xf32>
    %283 = math.exp %282 : vector<2x32xf32>
    %cst_79 = arith.constant 1.000000e+00 : f32
    %284 = vector.broadcast %cst_79 : f32 to vector<2x32xf32>
    %285 = arith.addf %284, %283 : vector<2x32xf32>
    %286 = arith.divf %284, %285 : vector<2x32xf32>
    %287 = vector.extract_strided_slice %268 {offsets = [0, 64], sizes = [2, 32], strides = [1, 1]} : vector<2x96xf32> to vector<2x32xf32>
    %288 = vector.extract_strided_slice %270 {offsets = [0, 64], sizes = [2, 32], strides = [1, 1]} : vector<2x96xf32> to vector<2x32xf32>
    %289 = arith.addf %288, %266 : vector<2x32xf32>
    %290 = arith.mulf %278, %289 : vector<2x32xf32>
    %291 = arith.addf %287, %290 : vector<2x32xf32>
    %292 = math.tanh %291 : vector<2x32xf32>
    %cst_80 = arith.constant 1.000000e+00 : f32
    %293 = vector.broadcast %cst_80 : f32 to vector<2x32xf32>
    %294 = arith.subf %293, %286 : vector<2x32xf32>
    %295 = arith.mulf %294, %292 : vector<2x32xf32>
    %296 = arith.mulf %286, %267 : vector<2x32xf32>
    %297 = arith.addf %295, %296 : vector<2x32xf32>
    %298 = vector.extract_strided_slice %263 {offsets = [2, 0], sizes = [2, 96], strides = [1, 1]} : vector<16x96xf32> to vector<2x96xf32>
    %c0_81 = arith.constant 0 : index
    %c0_82 = arith.constant 0 : index
    %299 = vector.load %arg7[%c0_81, %c0_82] : memref<32x96xf32, #tpu.memory_space<vmem>>, vector<32x96xf32>
    %cst_83 = arith.constant dense<0.000000e+00> : vector<2x96xf32>
    %300 = tpu.matmul %297, %299, %cst_83 {dimension_numbers = #tpu.dot_dimension_numbers<[1], [0], [0], [1], [0, 0, 1, 1], [], []>} : vector<2x32xf32>, vector<32x96xf32>, vector<2x96xf32> -> vector<2x96xf32>
    %301 = vector.extract_strided_slice %298 {offsets = [0, 0], sizes = [2, 32], strides = [1, 1]} : vector<2x96xf32> to vector<2x32xf32>
    %302 = vector.extract_strided_slice %300 {offsets = [0, 0], sizes = [2, 32], strides = [1, 1]} : vector<2x96xf32> to vector<2x32xf32>
    %303 = arith.addf %301, %302 : vector<2x32xf32>
    %304 = arith.negf %303 : vector<2x32xf32>
    %305 = math.exp %304 : vector<2x32xf32>
    %cst_84 = arith.constant 1.000000e+00 : f32
    %306 = vector.broadcast %cst_84 : f32 to vector<2x32xf32>
    %307 = arith.addf %306, %305 : vector<2x32xf32>
    %308 = arith.divf %306, %307 : vector<2x32xf32>
    %309 = vector.extract_strided_slice %298 {offsets = [0, 32], sizes = [2, 32], strides = [1, 1]} : vector<2x96xf32> to vector<2x32xf32>
    %310 = vector.extract_strided_slice %300 {offsets = [0, 32], sizes = [2, 32], strides = [1, 1]} : vector<2x96xf32> to vector<2x32xf32>
    %311 = arith.addf %309, %310 : vector<2x32xf32>
    %312 = arith.negf %311 : vector<2x32xf32>
    %313 = math.exp %312 : vector<2x32xf32>
    %cst_85 = arith.constant 1.000000e+00 : f32
    %314 = vector.broadcast %cst_85 : f32 to vector<2x32xf32>
    %315 = arith.addf %314, %313 : vector<2x32xf32>
    %316 = arith.divf %314, %315 : vector<2x32xf32>
    %317 = vector.extract_strided_slice %298 {offsets = [0, 64], sizes = [2, 32], strides = [1, 1]} : vector<2x96xf32> to vector<2x32xf32>
    %318 = vector.extract_strided_slice %300 {offsets = [0, 64], sizes = [2, 32], strides = [1, 1]} : vector<2x96xf32> to vector<2x32xf32>
    %319 = arith.addf %318, %266 : vector<2x32xf32>
    %320 = arith.mulf %308, %319 : vector<2x32xf32>
    %321 = arith.addf %317, %320 : vector<2x32xf32>
    %322 = math.tanh %321 : vector<2x32xf32>
    %cst_86 = arith.constant 1.000000e+00 : f32
    %323 = vector.broadcast %cst_86 : f32 to vector<2x32xf32>
    %324 = arith.subf %323, %316 : vector<2x32xf32>
    %325 = arith.mulf %324, %322 : vector<2x32xf32>
    %326 = arith.mulf %316, %297 : vector<2x32xf32>
    %327 = arith.addf %325, %326 : vector<2x32xf32>
    %328 = vector.extract_strided_slice %263 {offsets = [4, 0], sizes = [2, 96], strides = [1, 1]} : vector<16x96xf32> to vector<2x96xf32>
    %c0_87 = arith.constant 0 : index
    %c0_88 = arith.constant 0 : index
    %329 = vector.load %arg7[%c0_87, %c0_88] : memref<32x96xf32, #tpu.memory_space<vmem>>, vector<32x96xf32>
    %cst_89 = arith.constant dense<0.000000e+00> : vector<2x96xf32>
    %330 = tpu.matmul %327, %329, %cst_89 {dimension_numbers = #tpu.dot_dimension_numbers<[1], [0], [0], [1], [0, 0, 1, 1], [], []>} : vector<2x32xf32>, vector<32x96xf32>, vector<2x96xf32> -> vector<2x96xf32>
    %331 = vector.extract_strided_slice %328 {offsets = [0, 0], sizes = [2, 32], strides = [1, 1]} : vector<2x96xf32> to vector<2x32xf32>
    %332 = vector.extract_strided_slice %330 {offsets = [0, 0], sizes = [2, 32], strides = [1, 1]} : vector<2x96xf32> to vector<2x32xf32>
    %333 = arith.addf %331, %332 : vector<2x32xf32>
    %334 = arith.negf %333 : vector<2x32xf32>
    %335 = math.exp %334 : vector<2x32xf32>
    %cst_90 = arith.constant 1.000000e+00 : f32
    %336 = vector.broadcast %cst_90 : f32 to vector<2x32xf32>
    %337 = arith.addf %336, %335 : vector<2x32xf32>
    %338 = arith.divf %336, %337 : vector<2x32xf32>
    %339 = vector.extract_strided_slice %328 {offsets = [0, 32], sizes = [2, 32], strides = [1, 1]} : vector<2x96xf32> to vector<2x32xf32>
    %340 = vector.extract_strided_slice %330 {offsets = [0, 32], sizes = [2, 32], strides = [1, 1]} : vector<2x96xf32> to vector<2x32xf32>
    %341 = arith.addf %339, %340 : vector<2x32xf32>
    %342 = arith.negf %341 : vector<2x32xf32>
    %343 = math.exp %342 : vector<2x32xf32>
    %cst_91 = arith.constant 1.000000e+00 : f32
    %344 = vector.broadcast %cst_91 : f32 to vector<2x32xf32>
    %345 = arith.addf %344, %343 : vector<2x32xf32>
    %346 = arith.divf %344, %345 : vector<2x32xf32>
    %347 = vector.extract_strided_slice %328 {offsets = [0, 64], sizes = [2, 32], strides = [1, 1]} : vector<2x96xf32> to vector<2x32xf32>
    %348 = vector.extract_strided_slice %330 {offsets = [0, 64], sizes = [2, 32], strides = [1, 1]} : vector<2x96xf32> to vector<2x32xf32>
    %349 = arith.addf %348, %266 : vector<2x32xf32>
    %350 = arith.mulf %338, %349 : vector<2x32xf32>
    %351 = arith.addf %347, %350 : vector<2x32xf32>
    %352 = math.tanh %351 : vector<2x32xf32>
    %cst_92 = arith.constant 1.000000e+00 : f32
    %353 = vector.broadcast %cst_92 : f32 to vector<2x32xf32>
    %354 = arith.subf %353, %346 : vector<2x32xf32>
    %355 = arith.mulf %354, %352 : vector<2x32xf32>
    %356 = arith.mulf %346, %327 : vector<2x32xf32>
    %357 = arith.addf %355, %356 : vector<2x32xf32>
    %358 = vector.extract_strided_slice %263 {offsets = [6, 0], sizes = [2, 96], strides = [1, 1]} : vector<16x96xf32> to vector<2x96xf32>
    %c0_93 = arith.constant 0 : index
    %c0_94 = arith.constant 0 : index
    %359 = vector.load %arg7[%c0_93, %c0_94] : memref<32x96xf32, #tpu.memory_space<vmem>>, vector<32x96xf32>
    %cst_95 = arith.constant dense<0.000000e+00> : vector<2x96xf32>
    %360 = tpu.matmul %357, %359, %cst_95 {dimension_numbers = #tpu.dot_dimension_numbers<[1], [0], [0], [1], [0, 0, 1, 1], [], []>} : vector<2x32xf32>, vector<32x96xf32>, vector<2x96xf32> -> vector<2x96xf32>
    %361 = vector.extract_strided_slice %358 {offsets = [0, 0], sizes = [2, 32], strides = [1, 1]} : vector<2x96xf32> to vector<2x32xf32>
    %362 = vector.extract_strided_slice %360 {offsets = [0, 0], sizes = [2, 32], strides = [1, 1]} : vector<2x96xf32> to vector<2x32xf32>
    %363 = arith.addf %361, %362 : vector<2x32xf32>
    %364 = arith.negf %363 : vector<2x32xf32>
    %365 = math.exp %364 : vector<2x32xf32>
    %cst_96 = arith.constant 1.000000e+00 : f32
    %366 = vector.broadcast %cst_96 : f32 to vector<2x32xf32>
    %367 = arith.addf %366, %365 : vector<2x32xf32>
    %368 = arith.divf %366, %367 : vector<2x32xf32>
    %369 = vector.extract_strided_slice %358 {offsets = [0, 32], sizes = [2, 32], strides = [1, 1]} : vector<2x96xf32> to vector<2x32xf32>
    %370 = vector.extract_strided_slice %360 {offsets = [0, 32], sizes = [2, 32], strides = [1, 1]} : vector<2x96xf32> to vector<2x32xf32>
    %371 = arith.addf %369, %370 : vector<2x32xf32>
    %372 = arith.negf %371 : vector<2x32xf32>
    %373 = math.exp %372 : vector<2x32xf32>
    %cst_97 = arith.constant 1.000000e+00 : f32
    %374 = vector.broadcast %cst_97 : f32 to vector<2x32xf32>
    %375 = arith.addf %374, %373 : vector<2x32xf32>
    %376 = arith.divf %374, %375 : vector<2x32xf32>
    %377 = vector.extract_strided_slice %358 {offsets = [0, 64], sizes = [2, 32], strides = [1, 1]} : vector<2x96xf32> to vector<2x32xf32>
    %378 = vector.extract_strided_slice %360 {offsets = [0, 64], sizes = [2, 32], strides = [1, 1]} : vector<2x96xf32> to vector<2x32xf32>
    %379 = arith.addf %378, %266 : vector<2x32xf32>
    %380 = arith.mulf %368, %379 : vector<2x32xf32>
    %381 = arith.addf %377, %380 : vector<2x32xf32>
    %382 = math.tanh %381 : vector<2x32xf32>
    %cst_98 = arith.constant 1.000000e+00 : f32
    %383 = vector.broadcast %cst_98 : f32 to vector<2x32xf32>
    %384 = arith.subf %383, %376 : vector<2x32xf32>
    %385 = arith.mulf %384, %382 : vector<2x32xf32>
    %386 = arith.mulf %376, %357 : vector<2x32xf32>
    %387 = arith.addf %385, %386 : vector<2x32xf32>
    %388 = vector.extract_strided_slice %263 {offsets = [8, 0], sizes = [2, 96], strides = [1, 1]} : vector<16x96xf32> to vector<2x96xf32>
    %c0_99 = arith.constant 0 : index
    %c0_100 = arith.constant 0 : index
    %389 = vector.load %arg7[%c0_99, %c0_100] : memref<32x96xf32, #tpu.memory_space<vmem>>, vector<32x96xf32>
    %cst_101 = arith.constant dense<0.000000e+00> : vector<2x96xf32>
    %390 = tpu.matmul %387, %389, %cst_101 {dimension_numbers = #tpu.dot_dimension_numbers<[1], [0], [0], [1], [0, 0, 1, 1], [], []>} : vector<2x32xf32>, vector<32x96xf32>, vector<2x96xf32> -> vector<2x96xf32>
    %391 = vector.extract_strided_slice %388 {offsets = [0, 0], sizes = [2, 32], strides = [1, 1]} : vector<2x96xf32> to vector<2x32xf32>
    %392 = vector.extract_strided_slice %390 {offsets = [0, 0], sizes = [2, 32], strides = [1, 1]} : vector<2x96xf32> to vector<2x32xf32>
    %393 = arith.addf %391, %392 : vector<2x32xf32>
    %394 = arith.negf %393 : vector<2x32xf32>
    %395 = math.exp %394 : vector<2x32xf32>
    %cst_102 = arith.constant 1.000000e+00 : f32
    %396 = vector.broadcast %cst_102 : f32 to vector<2x32xf32>
    %397 = arith.addf %396, %395 : vector<2x32xf32>
    %398 = arith.divf %396, %397 : vector<2x32xf32>
    %399 = vector.extract_strided_slice %388 {offsets = [0, 32], sizes = [2, 32], strides = [1, 1]} : vector<2x96xf32> to vector<2x32xf32>
    %400 = vector.extract_strided_slice %390 {offsets = [0, 32], sizes = [2, 32], strides = [1, 1]} : vector<2x96xf32> to vector<2x32xf32>
    %401 = arith.addf %399, %400 : vector<2x32xf32>
    %402 = arith.negf %401 : vector<2x32xf32>
    %403 = math.exp %402 : vector<2x32xf32>
    %cst_103 = arith.constant 1.000000e+00 : f32
    %404 = vector.broadcast %cst_103 : f32 to vector<2x32xf32>
    %405 = arith.addf %404, %403 : vector<2x32xf32>
    %406 = arith.divf %404, %405 : vector<2x32xf32>
    %407 = vector.extract_strided_slice %388 {offsets = [0, 64], sizes = [2, 32], strides = [1, 1]} : vector<2x96xf32> to vector<2x32xf32>
    %408 = vector.extract_strided_slice %390 {offsets = [0, 64], sizes = [2, 32], strides = [1, 1]} : vector<2x96xf32> to vector<2x32xf32>
    %409 = arith.addf %408, %266 : vector<2x32xf32>
    %410 = arith.mulf %398, %409 : vector<2x32xf32>
    %411 = arith.addf %407, %410 : vector<2x32xf32>
    %412 = math.tanh %411 : vector<2x32xf32>
    %cst_104 = arith.constant 1.000000e+00 : f32
    %413 = vector.broadcast %cst_104 : f32 to vector<2x32xf32>
    %414 = arith.subf %413, %406 : vector<2x32xf32>
    %415 = arith.mulf %414, %412 : vector<2x32xf32>
    %416 = arith.mulf %406, %387 : vector<2x32xf32>
    %417 = arith.addf %415, %416 : vector<2x32xf32>
    %418 = vector.extract_strided_slice %263 {offsets = [10, 0], sizes = [2, 96], strides = [1, 1]} : vector<16x96xf32> to vector<2x96xf32>
    %c0_105 = arith.constant 0 : index
    %c0_106 = arith.constant 0 : index
    %419 = vector.load %arg7[%c0_105, %c0_106] : memref<32x96xf32, #tpu.memory_space<vmem>>, vector<32x96xf32>
    %cst_107 = arith.constant dense<0.000000e+00> : vector<2x96xf32>
    %420 = tpu.matmul %417, %419, %cst_107 {dimension_numbers = #tpu.dot_dimension_numbers<[1], [0], [0], [1], [0, 0, 1, 1], [], []>} : vector<2x32xf32>, vector<32x96xf32>, vector<2x96xf32> -> vector<2x96xf32>
    %421 = vector.extract_strided_slice %418 {offsets = [0, 0], sizes = [2, 32], strides = [1, 1]} : vector<2x96xf32> to vector<2x32xf32>
    %422 = vector.extract_strided_slice %420 {offsets = [0, 0], sizes = [2, 32], strides = [1, 1]} : vector<2x96xf32> to vector<2x32xf32>
    %423 = arith.addf %421, %422 : vector<2x32xf32>
    %424 = arith.negf %423 : vector<2x32xf32>
    %425 = math.exp %424 : vector<2x32xf32>
    %cst_108 = arith.constant 1.000000e+00 : f32
    %426 = vector.broadcast %cst_108 : f32 to vector<2x32xf32>
    %427 = arith.addf %426, %425 : vector<2x32xf32>
    %428 = arith.divf %426, %427 : vector<2x32xf32>
    %429 = vector.extract_strided_slice %418 {offsets = [0, 32], sizes = [2, 32], strides = [1, 1]} : vector<2x96xf32> to vector<2x32xf32>
    %430 = vector.extract_strided_slice %420 {offsets = [0, 32], sizes = [2, 32], strides = [1, 1]} : vector<2x96xf32> to vector<2x32xf32>
    %431 = arith.addf %429, %430 : vector<2x32xf32>
    %432 = arith.negf %431 : vector<2x32xf32>
    %433 = math.exp %432 : vector<2x32xf32>
    %cst_109 = arith.constant 1.000000e+00 : f32
    %434 = vector.broadcast %cst_109 : f32 to vector<2x32xf32>
    %435 = arith.addf %434, %433 : vector<2x32xf32>
    %436 = arith.divf %434, %435 : vector<2x32xf32>
    %437 = vector.extract_strided_slice %418 {offsets = [0, 64], sizes = [2, 32], strides = [1, 1]} : vector<2x96xf32> to vector<2x32xf32>
    %438 = vector.extract_strided_slice %420 {offsets = [0, 64], sizes = [2, 32], strides = [1, 1]} : vector<2x96xf32> to vector<2x32xf32>
    %439 = arith.addf %438, %266 : vector<2x32xf32>
    %440 = arith.mulf %428, %439 : vector<2x32xf32>
    %441 = arith.addf %437, %440 : vector<2x32xf32>
    %442 = math.tanh %441 : vector<2x32xf32>
    %cst_110 = arith.constant 1.000000e+00 : f32
    %443 = vector.broadcast %cst_110 : f32 to vector<2x32xf32>
    %444 = arith.subf %443, %436 : vector<2x32xf32>
    %445 = arith.mulf %444, %442 : vector<2x32xf32>
    %446 = arith.mulf %436, %417 : vector<2x32xf32>
    %447 = arith.addf %445, %446 : vector<2x32xf32>
    %448 = vector.extract_strided_slice %263 {offsets = [12, 0], sizes = [2, 96], strides = [1, 1]} : vector<16x96xf32> to vector<2x96xf32>
    %c0_111 = arith.constant 0 : index
    %c0_112 = arith.constant 0 : index
    %449 = vector.load %arg7[%c0_111, %c0_112] : memref<32x96xf32, #tpu.memory_space<vmem>>, vector<32x96xf32>
    %cst_113 = arith.constant dense<0.000000e+00> : vector<2x96xf32>
    %450 = tpu.matmul %447, %449, %cst_113 {dimension_numbers = #tpu.dot_dimension_numbers<[1], [0], [0], [1], [0, 0, 1, 1], [], []>} : vector<2x32xf32>, vector<32x96xf32>, vector<2x96xf32> -> vector<2x96xf32>
    %451 = vector.extract_strided_slice %448 {offsets = [0, 0], sizes = [2, 32], strides = [1, 1]} : vector<2x96xf32> to vector<2x32xf32>
    %452 = vector.extract_strided_slice %450 {offsets = [0, 0], sizes = [2, 32], strides = [1, 1]} : vector<2x96xf32> to vector<2x32xf32>
    %453 = arith.addf %451, %452 : vector<2x32xf32>
    %454 = arith.negf %453 : vector<2x32xf32>
    %455 = math.exp %454 : vector<2x32xf32>
    %cst_114 = arith.constant 1.000000e+00 : f32
    %456 = vector.broadcast %cst_114 : f32 to vector<2x32xf32>
    %457 = arith.addf %456, %455 : vector<2x32xf32>
    %458 = arith.divf %456, %457 : vector<2x32xf32>
    %459 = vector.extract_strided_slice %448 {offsets = [0, 32], sizes = [2, 32], strides = [1, 1]} : vector<2x96xf32> to vector<2x32xf32>
    %460 = vector.extract_strided_slice %450 {offsets = [0, 32], sizes = [2, 32], strides = [1, 1]} : vector<2x96xf32> to vector<2x32xf32>
    %461 = arith.addf %459, %460 : vector<2x32xf32>
    %462 = arith.negf %461 : vector<2x32xf32>
    %463 = math.exp %462 : vector<2x32xf32>
    %cst_115 = arith.constant 1.000000e+00 : f32
    %464 = vector.broadcast %cst_115 : f32 to vector<2x32xf32>
    %465 = arith.addf %464, %463 : vector<2x32xf32>
    %466 = arith.divf %464, %465 : vector<2x32xf32>
    %467 = vector.extract_strided_slice %448 {offsets = [0, 64], sizes = [2, 32], strides = [1, 1]} : vector<2x96xf32> to vector<2x32xf32>
    %468 = vector.extract_strided_slice %450 {offsets = [0, 64], sizes = [2, 32], strides = [1, 1]} : vector<2x96xf32> to vector<2x32xf32>
    %469 = arith.addf %468, %266 : vector<2x32xf32>
    %470 = arith.mulf %458, %469 : vector<2x32xf32>
    %471 = arith.addf %467, %470 : vector<2x32xf32>
    %472 = math.tanh %471 : vector<2x32xf32>
    %cst_116 = arith.constant 1.000000e+00 : f32
    %473 = vector.broadcast %cst_116 : f32 to vector<2x32xf32>
    %474 = arith.subf %473, %466 : vector<2x32xf32>
    %475 = arith.mulf %474, %472 : vector<2x32xf32>
    %476 = arith.mulf %466, %447 : vector<2x32xf32>
    %477 = arith.addf %475, %476 : vector<2x32xf32>
    %478 = vector.extract_strided_slice %263 {offsets = [14, 0], sizes = [2, 96], strides = [1, 1]} : vector<16x96xf32> to vector<2x96xf32>
    %c0_117 = arith.constant 0 : index
    %c0_118 = arith.constant 0 : index
    %479 = vector.load %arg7[%c0_117, %c0_118] : memref<32x96xf32, #tpu.memory_space<vmem>>, vector<32x96xf32>
    %cst_119 = arith.constant dense<0.000000e+00> : vector<2x96xf32>
    %480 = tpu.matmul %477, %479, %cst_119 {dimension_numbers = #tpu.dot_dimension_numbers<[1], [0], [0], [1], [0, 0, 1, 1], [], []>} : vector<2x32xf32>, vector<32x96xf32>, vector<2x96xf32> -> vector<2x96xf32>
    %481 = vector.extract_strided_slice %478 {offsets = [0, 0], sizes = [2, 32], strides = [1, 1]} : vector<2x96xf32> to vector<2x32xf32>
    %482 = vector.extract_strided_slice %480 {offsets = [0, 0], sizes = [2, 32], strides = [1, 1]} : vector<2x96xf32> to vector<2x32xf32>
    %483 = arith.addf %481, %482 : vector<2x32xf32>
    %484 = arith.negf %483 : vector<2x32xf32>
    %485 = math.exp %484 : vector<2x32xf32>
    %cst_120 = arith.constant 1.000000e+00 : f32
    %486 = vector.broadcast %cst_120 : f32 to vector<2x32xf32>
    %487 = arith.addf %486, %485 : vector<2x32xf32>
    %488 = arith.divf %486, %487 : vector<2x32xf32>
    %489 = vector.extract_strided_slice %478 {offsets = [0, 32], sizes = [2, 32], strides = [1, 1]} : vector<2x96xf32> to vector<2x32xf32>
    %490 = vector.extract_strided_slice %480 {offsets = [0, 32], sizes = [2, 32], strides = [1, 1]} : vector<2x96xf32> to vector<2x32xf32>
    %491 = arith.addf %489, %490 : vector<2x32xf32>
    %492 = arith.negf %491 : vector<2x32xf32>
    %493 = math.exp %492 : vector<2x32xf32>
    %cst_121 = arith.constant 1.000000e+00 : f32
    %494 = vector.broadcast %cst_121 : f32 to vector<2x32xf32>
    %495 = arith.addf %494, %493 : vector<2x32xf32>
    %496 = arith.divf %494, %495 : vector<2x32xf32>
    %497 = vector.extract_strided_slice %478 {offsets = [0, 64], sizes = [2, 32], strides = [1, 1]} : vector<2x96xf32> to vector<2x32xf32>
    %498 = vector.extract_strided_slice %480 {offsets = [0, 64], sizes = [2, 32], strides = [1, 1]} : vector<2x96xf32> to vector<2x32xf32>
    %499 = arith.addf %498, %266 : vector<2x32xf32>
    %500 = arith.mulf %488, %499 : vector<2x32xf32>
    %501 = arith.addf %497, %500 : vector<2x32xf32>
    %502 = math.tanh %501 : vector<2x32xf32>
    %cst_122 = arith.constant 1.000000e+00 : f32
    %503 = vector.broadcast %cst_122 : f32 to vector<2x32xf32>
    %504 = arith.subf %503, %496 : vector<2x32xf32>
    %505 = arith.mulf %504, %502 : vector<2x32xf32>
    %506 = arith.mulf %496, %477 : vector<2x32xf32>
    %507 = arith.addf %505, %506 : vector<2x32xf32>
    %c0_123 = arith.constant 0 : index
    %c0_124 = arith.constant 0 : index
    %508 = vector.load %arg1[%c0_123, %c0_124] : memref<2x512xf32, #tpu.memory_space<vmem>>, vector<2x512xf32>
    %c0_125 = arith.constant 0 : index
    %c0_126 = arith.constant 0 : index
    %509 = vector.load %arg15[%c0_125, %c0_126] : memref<2x576xf32, #tpu.memory_space<vmem>>, vector<2x512xf32>
    tpu.vector_store %arg15[%c0_125, %c0_126], %508 {strides = array<i32>} : memref<2x576xf32, #tpu.memory_space<vmem>>, vector<2x512xf32>,
    %510 = vector.extract_strided_slice %256 {offsets = [0, 0], sizes = [1, 32], strides = [1, 1]} : vector<2x32xf32> to vector<1x32xf32>
    %c0_127 = arith.constant 0 : index
    %c512 = arith.constant 512 : index
    %511 = vector.load %arg15[%c0_127, %c512] : memref<2x576xf32, #tpu.memory_space<vmem>>, vector<1x32xf32>
    tpu.vector_store %arg15[%c0_127, %c512], %510 {strides = array<i32>} : memref<2x576xf32, #tpu.memory_space<vmem>>, vector<1x32xf32>,
    %512 = vector.extract_strided_slice %256 {offsets = [1, 0], sizes = [1, 32], strides = [1, 1]} : vector<2x32xf32> to vector<1x32xf32>
    %c0_128 = arith.constant 0 : index
    %c544 = arith.constant 544 : index
    %513 = vector.load %arg15[%c0_128, %c544] : memref<2x576xf32, #tpu.memory_space<vmem>>, vector<1x32xf32>
    tpu.vector_store %arg15[%c0_128, %c544], %512 {strides = array<i32>} : memref<2x576xf32, #tpu.memory_space<vmem>>, vector<1x32xf32>,
    %514 = vector.extract_strided_slice %507 {offsets = [0, 0], sizes = [1, 32], strides = [1, 1]} : vector<2x32xf32> to vector<1x32xf32>
    %c1 = arith.constant 1 : index
    %c512_129 = arith.constant 512 : index
    %515 = vector.load %arg15[%c1, %c512_129] : memref<2x576xf32, #tpu.memory_space<vmem>>, vector<1x32xf32>
    tpu.vector_store %arg15[%c1, %c512_129], %514 {strides = array<i32>} : memref<2x576xf32, #tpu.memory_space<vmem>>, vector<1x32xf32>,
    %516 = vector.extract_strided_slice %507 {offsets = [1, 0], sizes = [1, 32], strides = [1, 1]} : vector<2x32xf32> to vector<1x32xf32>
    %c1_130 = arith.constant 1 : index
    %c544_131 = arith.constant 544 : index
    %517 = vector.load %arg15[%c1_130, %c544_131] : memref<2x576xf32, #tpu.memory_space<vmem>>, vector<1x32xf32>
    tpu.vector_store %arg15[%c1_130, %c544_131], %516 {strides = array<i32>} : memref<2x576xf32, #tpu.memory_space<vmem>>, vector<1x32xf32>,
    %c0_132 = arith.constant 0 : index
    %c0_133 = arith.constant 0 : index
    %518 = vector.load %arg15[%c0_132, %c0_133] : memref<2x576xf32, #tpu.memory_space<vmem>>, vector<2x576xf32>
    %c0_134 = arith.constant 0 : index
    %c0_135 = arith.constant 0 : index
    %519 = vector.load %arg10[%c0_134, %c0_135] : memref<576x512xf32, #tpu.memory_space<vmem>>, vector<576x512xf32>
    %cst_136 = arith.constant dense<0.000000e+00> : vector<2x512xf32>
    %520 = tpu.matmul %518, %519, %cst_136 {dimension_numbers = #tpu.dot_dimension_numbers<[1], [0], [0], [1], [0, 0, 1, 1], [], []>} : vector<2x576xf32>, vector<576x512xf32>, vector<2x512xf32> -> vector<2x512xf32>
    %c0_137 = arith.constant 0 : index
    %c0_138 = arith.constant 0 : index
    %521 = vector.load %arg11[%c0_137, %c0_138] : memref<1x512xf32, #tpu.memory_space<vmem>>, vector<1x512xf32>
    %522 = vector.broadcast %521 : vector<1x512xf32> to vector<2x512xf32>
    %523 = arith.addf %520, %522 : vector<2x512xf32>
    %cst_139 = arith.constant 0.000000e+00 : f32
    %524 = vector.broadcast %cst_139 : f32 to vector<2x512xf32>
    %525 = arith.maximumf %523, %524 : vector<2x512xf32>
    %c0_140 = arith.constant 0 : index
    %c0_141 = arith.constant 0 : index
    %526 = vector.load %arg12[%c0_140, %c0_141] : memref<512x100xf32, #tpu.memory_space<vmem>>, vector<512x100xf32>
    %cst_142 = arith.constant dense<0.000000e+00> : vector<2x100xf32>
    %527 = tpu.matmul %525, %526, %cst_142 {dimension_numbers = #tpu.dot_dimension_numbers<[1], [0], [0], [1], [0, 0, 1, 1], [], []>} : vector<2x512xf32>, vector<512x100xf32>, vector<2x100xf32> -> vector<2x100xf32>
    %c0_143 = arith.constant 0 : index
    %c0_144 = arith.constant 0 : index
    %528 = vector.load %arg13[%c0_143, %c0_144] : memref<1x100xf32, #tpu.memory_space<vmem>>, vector<1x100xf32>
    %529 = vector.broadcast %528 : vector<1x100xf32> to vector<2x100xf32>
    %530 = arith.addf %527, %529 : vector<2x100xf32>
    %cst_145 = arith.constant 0.000000e+00 : f32
    %531 = vector.broadcast %cst_145 : f32 to vector<2x100xf32>
    %532 = arith.maximumf %530, %531 : vector<2x100xf32>
    %cst_146 = arith.constant dense<0xFF800000> : vector<2xf32>
    %533 = vector.multi_reduction <maximumf>, %532, %cst_146 [1] : vector<2x100xf32> to vector<2xf32>
    %534 = vector.shape_cast %533 : vector<2xf32> to vector<2x1xf32>
    %535 = vector.broadcast %534 : vector<2x1xf32> to vector<2x100xf32>
    %536 = arith.subf %532, %535 : vector<2x100xf32>
    %537 = math.exp %536 : vector<2x100xf32>
    %cst_147 = arith.constant dense<0.000000e+00> : vector<2xf32>
    %538 = vector.multi_reduction <add>, %537, %cst_147 [1] : vector<2x100xf32> to vector<2xf32>
    %539 = vector.shape_cast %538 : vector<2xf32> to vector<2x1xf32>
    %540 = tpu.reciprocal %539 {approx = true} : vector<2x1xf32> -> vector<2x1xf32>
    %541 = vector.broadcast %540 : vector<2x1xf32> to vector<2x100xf32>
    %542 = arith.mulf %537, %541 : vector<2x100xf32>
    %c0_148 = arith.constant 0 : index
    %c0_149 = arith.constant 0 : index
    %543 = vector.load %arg14[%c0_148, %c0_149] : memref<2x100xf32, #tpu.memory_space<vmem>>, vector<2x100xf32>
    tpu.vector_store %arg14[%c0_148, %c0_149], %542 {strides = array<i32>} : memref<2x100xf32, #tpu.memory_space<vmem>>, vector<2x100xf32>,
    return
  }
}

</mosaic_0001>

<bundles_post_ra>
// kernel: simple_cnn_lstm_forward.1
= control target key start
LH: loop header
LB: loop body
LE: loop exit
PB: predicated region body
PF: predicated region fallthrough
CT: control target
= control target key end

     0   :  { %19 = vsyncpa [#allocation5], 0  ;;  %s3562_s0 = inlined_call_operand.vmem [shape: f32[16,16], index: 0, kind: input, shape index: {}]   ;;  %s3563_s1 = inlined_call_operand.hbm [shape: f32[2,512], index: 1, kind: input, shape index: {}]   ;;  %s3564_s2 = inlined_call_operand.hbm [shape: f32[16,96], index: 2, kind: input, shape index: {}]   ;;  %s3565_s3 = inlined_call_operand.hbm [shape: f32[32,96], index: 3, kind: input, shape index: {}]   ;;  %s3566_s4 = inlined_call_operand.hbm [shape: f32[1,96], index: 4, kind: input, shape index: {}]   ;;  %s3567_s5 = inlined_call_operand.hbm [shape: f32[1,32], index: 5, kind: input, shape index: {}]   ;;  %s3568_s6 = inlined_call_operand.hbm [shape: f32[32,96], index: 6, kind: input, shape index: {}]   ;;  %s3569_s7 = inlined_call_operand.hbm [shape: f32[32,96], index: 7, kind: input, shape index: {}]   ;;  %s3570_s8 = inlined_call_operand.hbm [shape: f32[1,96], index: 8, kind: input, shape index: {}]   ;;  %s3571_s9 = inlined_call_operand.hbm [shape: f32[1,32], index: 9, kind: input, shape index: {}]   ;;  %s3572_s10 = inlined_call_operand.hbm [shape: f32[576,512], index: 10, kind: input, shape index: {}]   ;;  %s3573_s11 = inlined_call_operand.hbm [shape: f32[1,512], index: 11, kind: input, shape index: {}]   ;;  %s3574_s12 = inlined_call_operand.vmem [shape: f32[512,100], index: 12, kind: input, shape index: {}]   ;;  %s3575_s13 = inlined_call_operand.hbm [shape: f32[1,100], index: 13, kind: input, shape index: {}]   ;;  %s3576_s14 = inlined_call_operand.hbm [shape: f32[2,100], index: 14, kind: output, shape index: {}]  }
   0x1   :  { %20 = vsyncpa [#allocation8], 0 }
   0x2   :  { %21 = vsyncpa [#allocation11], 0 }
   0x3   :  { %22 = vsyncpa [#allocation14], 0 }
   0x4   :  { %23 = vsyncpa [#allocation17], 0 }
   0x5   :  { %24 = vsyncpa [#allocation20], 0 }
   0x6   :  { %25 = vsyncpa [#allocation23], 0  ;;  %s44_s15 = sshll.u32 %s3564_s2, 4  ;;  %s45_s15 = int_to_ptr.hbm [resolvable:$true] %s44_s15 }
   0x7   :  { %26 = vsyncpa [#allocation6], 0  ;;  %s2929_s16 = smov [#allocation7]   ;;  %s71_s20 = sshll.u32 %s3566_s4, 4  ;;  %s72_s20 = int_to_ptr.hbm [resolvable:$true] %s71_s20 }
   0x8   :  { %s46_s17 = sshll.u32 %s2929_s16, 4  ;;  %s2930_s21 = smov 128   ;;  %s47_s17 = int_to_ptr.vmem [resolvable:$true] %s46_s17 }
   0x9   :  { %s2931_s22 = smov 8   ;;  %s2932_s23 = smov [#allocation10]  }
   0xa   :  { %52 = dma.hbm_to_vmem [thread:$0]  %s45_s15, 256, %s47_s17, [#allocation8], %s2930_s21, %s2930_s21, %s2931_s22  }
   0xb   :  { %s73_s24 = sshll.u32 %s2932_s23, 4  ;;  %s92_s26 = sshll.u32 %s3568_s6, 4  ;;  %s74_s24 = int_to_ptr.vmem [resolvable:$true] %s73_s24  ;;  %s93_s26 = int_to_ptr.hbm [resolvable:$true] %s92_s26 }
   0xc   :  { %76 = dma.hbm_to_vmem [thread:$0]  %s72_s20, 16, %s74_s24, [#allocation11]  }
   0xd   :  { %s119_s4 = sshll.u32 %s3570_s8, 4  ;;  %s2933_s29 = smov [#allocation13]   ;;  %s120_s4 = int_to_ptr.hbm [resolvable:$true] %s119_s4 }
   0xe   :  { %s94_s30 = sshll.u32 %s2933_s29, 4  ;;  %s2934_s15 = smov [#allocation16]   ;;  %s95_s30 = int_to_ptr.vmem [resolvable:$true] %s94_s30 }
   0xf   :  { %100 = dma.hbm_to_vmem [thread:$0]  %s93_s26, 512, %s95_s30, [#allocation14], %s2930_s21, %s2930_s21, %s2931_s22  }
  0x10   :  { %s121_s16 = sshll.u32 %s2934_s15, 4  ;;  %s140_s6 = sshll.u32 %s3572_s10, 4  ;;  %s122_s16 = int_to_ptr.vmem [resolvable:$true] %s121_s16  ;;  %s141_s6 = int_to_ptr.hbm [resolvable:$true] %s140_s6 }
  0x11   :  { %124 = dma.hbm_to_vmem [thread:$0]  %s120_s4, 16, %s122_s16, [#allocation17]  }
  0x12   :  { %s2935_s19 = smov [#allocation19]   ;;  %s34_s24 = sshll.u32 %s3563_s1, 4  ;;  %s35_s24 = int_to_ptr.hbm [resolvable:$true] %s34_s24 }
  0x13   :  { %s142_s20 = sshll.u32 %s2935_s19, 4  ;;  %s2936_s25 = smov 512   ;;  %s143_s20 = int_to_ptr.vmem [resolvable:$true] %s142_s20 }
  0x14   :  { %s2937_s2 = smov 32   ;;  %s2938_s26 = smov [#allocation4]  }
  0x15   :  { %148 = dma.hbm_to_vmem [thread:$0]  %s141_s6, 36864, %s143_s20, [#allocation20], %s2936_s25, %s2936_s25, %s2937_s2  }
  0x16   :  { %s36_s27 = sshll.u32 %s2938_s26, 4  ;;  %s57_s10 = sshll.u32 %s3565_s3, 4  ;;  %s37_s27 = int_to_ptr.vmem [resolvable:$true] %s36_s27  ;;  %s58_s10 = int_to_ptr.hbm [resolvable:$true] %s57_s10 }
  0x17   :  { %39 = dma.hbm_to_vmem [thread:$0]  %s35_s24, 128, %s37_s27, [#allocation5]  }
  0x18   :  { %s82_s15 = sshll.u32 %s3567_s5, 4  ;;  %s2939_s16 = smov [#allocation9]   ;;  %s83_s15 = int_to_ptr.hbm [resolvable:$true] %s82_s15 }
  0x19   :  { %s59_s17 = sshll.u32 %s2939_s16, 4  ;;  %s2940_s1 = smov [#allocation12]   ;;  %s60_s17 = int_to_ptr.vmem [resolvable:$true] %s59_s17 }
  0x1a   :  { %65 = dma.hbm_to_vmem [thread:$0]  %s58_s10, 512, %s60_s17, [#allocation8], %s2930_s21, %s2930_s21, %s2931_s22  }
  0x1b   :  { %s84_s18 = sshll.u32 %s2940_s1, 4  ;;  %s105_s3 = sshll.u32 %s3569_s7, 4  ;;  %s85_s18 = int_to_ptr.vmem [resolvable:$true] %s84_s18  ;;  %s106_s3 = int_to_ptr.hbm [resolvable:$true] %s105_s3 }
  0x1c   :  { %87 = dma.hbm_to_vmem [thread:$0]  %s83_s15, 16, %s85_s18, [#allocation11]  }
  0x1d   :  { %s130_s5 = sshll.u32 %s3571_s9, 4  ;;  %s2941_s23 = smov [#allocation15]   ;;  %s131_s5 = int_to_ptr.hbm [resolvable:$true] %s130_s5 }
  0x1e   :  { %s107_s24 = sshll.u32 %s2941_s23, 4  ;;  %s2942_s25 = smov [#allocation18]   ;;  %s108_s24 = int_to_ptr.vmem [resolvable:$true] %s107_s24 }
  0x1f   :  { %113 = dma.hbm_to_vmem [thread:$0]  %s106_s3, 512, %s108_s24, [#allocation14], %s2930_s21, %s2930_s21, %s2931_s22  }
  0x20   :  { %s132_s2 = sshll.u32 %s2942_s25, 4  ;;  %s154_s7 = sshll.u32 %s3573_s11, 4  ;;  %s133_s2 = int_to_ptr.vmem [resolvable:$true] %s132_s2  ;;  %s155_s7 = int_to_ptr.hbm [resolvable:$true] %s154_s7 }
  0x21   :  { %135 = dma.hbm_to_vmem [thread:$0]  %s131_s5, 16, %s133_s2, [#allocation17]  }
  0x22   :  { %s167_s9 = sshll.u32 %s3575_s13, 4  ;;  %s2943_s10 = smov [#allocation21]   ;;  %s168_s9 = int_to_ptr.hbm [resolvable:$true] %s167_s9 }
  0x23   :  { %s156_s4 = sshll.u32 %s2943_s10, 4  ;;  %s2944_s30 = smov [#allocation22]   ;;  %s157_s4 = int_to_ptr.vmem [resolvable:$true] %s156_s4 }
  0x24   :  { %159 = dma.hbm_to_vmem [thread:$0]  %s155_s7, 64, %s157_s4, [#allocation20]  }
  0x25   :  { %s169_s21 = sshll.u32 %s2944_s30, 4  ;;  %s170_s21 = int_to_ptr.vmem [resolvable:$true] %s169_s21 }
  0x26   :  { %172 = dma.hbm_to_vmem [thread:$0]  %s168_s9, 16, %s170_s21, [#allocation23]  }
  0x27   :  { %2913 = dma.done.wait [#allocation5], 128  }
  0x28   :  { %2914 = vsyncadd [#allocation5], 4294967168 }
  0x29   :  { %2915 = dma.done.wait [#allocation8], 768  }
  0x2a   :  { %2916 = vsyncadd [#allocation8], 4294966528 }
  0x2b   :  { %2917 = dma.done.wait [#allocation11], 32  }
  0x2c   :  { %2918 = vsyncadd [#allocation11], 4294967264 }
  0x2d   :  { %2919 = dma.done.wait [#allocation14], 1024  }
  0x2e   :  { %2920 = vsyncadd [#allocation14], 4294966272 }
  0x2f   :  { %2921 = dma.done.wait [#allocation17], 32  }
  0x30   :  { %2922 = vsyncadd [#allocation17], 4294967264 }
  0x31   :  { %2923 = dma.done.wait [#allocation20], 36928  }
  0x32   :  { %2924 = vsyncadd [#allocation20], 4294930368 }
  0x33   :  { %2925 = dma.done.wait [#allocation23], 16  }
  0x34   :  { %2926 = vsyncadd [#allocation23], 4294967280  ;;  %v265_v0 = vld [vmem:[#allocation9 + $0x18] sm:$0xff]  ;;  %v264_v2 = vld [vmem:[#allocation9 + $0x10] sm:$0xff]  ;;  %vm229_vm0 = vcmask 130048   ;;  %s2945_s22 = smov 64  }
  0x35   :  { %v224_v1 = vld [vmem:[#allocation7 + $0x8] sm:$0xff]  ;;  %282 = vmatpush.msra.mxu1 %v265_v0  ;;  %v223_v3 = vld [vmem:[#allocation7] sm:$0xff]  ;;  %v221_v4 = vld [vmem:[%s3562_s0] sm:$0xff]  ;;  %357 = vmatpush.msra.mxu2 %v265_v0  ;;  %v2946_v8 = vmov 0.0   ;;  %s2947_s15 = smov 96   ;;  %vm337_vm5 = vcmask 254976  }
  0x36   :  { %250 = vmatpush.msra.mxu0 %v224_v1  ;;  %v263_v5 = vld [vmem:[#allocation9 + $0x8] sm:$0xff]  ;;  %v2496_v6 = vld [vmem:[#allocation12] ss:$0 sm:$0xff]  ;;  %438 = vmatpush.msra.mxu3 %v265_v0  ;;  %v3082_v12 = vld [vmem:[#allocation10] ss:$0 sm:$0xff]  ;;  %vm266_vm6 = vcmask 261120  }
  0x37   :  { %283 = vmatpush.msra.mxu1 %v264_v2  ;;  %v262_v7 = vld [vmem:[#allocation9] sm:$0xff]  ;;  %310 = vrot.lane.b32.xlu0 %v2496_v6, %s2945_s22  ;;  %s2420_s7 = sshll.u32 %s3576_s14, 4  ;;  %s2421_s7 = int_to_ptr.hbm [resolvable:$true] %s2420_s7 }
  0x38   :  { %251 = vmatpush.msra.mxu0 %v223_v3  ;;  %358 = vmatpush.msra.mxu2 %v264_v2 }
  0x39   :  { %2436 = vmatmul.msk.f32.vlgmr.msra.gmra.mxu0 %vm229_vm0, %v221_v4  ;;  %284 = vmatpush.msra.mxu1 %v263_v5 }
  0x3a   :  { %439 = vmatpush.msra.mxu3 %v264_v2  ;;  %752 = vmatpush.msrb.mxu0 %v265_v0 }
  0x3b   :  { %285 = vmatpush.msra.mxu1 %v262_v7  ;;  %359 = vmatpush.msra.mxu2 %v263_v5 }
  0x3c   :  { %286 = vmatmul.f32.vlgmr.msra.gmra.mxu1 %v2946_v8  ;;  %440 = vmatpush.msra.mxu3 %v263_v5 }
  0x3d   :  { %360 = vmatpush.msra.mxu2 %v262_v7  ;;  %519 = vmatpush.msrb.mxu1 %v265_v0 }
  0x3e   :  { %441 = vmatpush.msra.mxu3 %v262_v7  ;;  %753 = vmatpush.msrb.mxu0 %v264_v2 }
  0x3f   :  { %600 = vmatpush.msrb.mxu2 %v265_v0  ;;  %520 = vmatpush.msrb.mxu1 %v264_v2 }
  0x40   :  { %672 = vmatpush.msrb.mxu3 %v265_v0  ;;  %754 = vmatpush.msrb.mxu0 %v263_v5 }
  0x41   :  { %601 = vmatpush.msrb.mxu2 %v264_v2  ;;  %521 = vmatpush.msrb.mxu1 %v263_v5 }
  0x42   :  { %673 = vmatpush.msrb.mxu3 %v264_v2  ;;  %755 = vmatpush.msrb.mxu0 %v262_v7 }
  0x43   :  { %602 = vmatpush.msrb.mxu2 %v263_v5  ;;  %522 = vmatpush.msrb.mxu1 %v262_v7 }
  0x44   :  { %674 = vmatpush.msrb.mxu3 %v263_v5 }
  0x45   :  { %603 = vmatpush.msrb.mxu2 %v262_v7  ;;  %832 = vmatpush.msra.mxu1 %v265_v0 }
  0x46   :  { %675 = vmatpush.msrb.mxu3 %v262_v7 }
  0x47   :  { %833 = vmatpush.msra.mxu1 %v264_v2 }
  0x49   :  { %834 = vmatpush.msra.mxu1 %v263_v5 }
  0x4b   :  { %835 = vmatpush.msra.mxu1 %v262_v7 }
  0xa9   :  { %v3078_v9 = vpop.permute.xlu0 %310 }
  0xb6   :  { %v253_v13 = vpop.f32.mrf.mxu0 }
  0xb7   :  { %v3085_v14 = vadd.f32 %v3082_v12, %v253_v13 }
  0xb9   :  { %v287_v10 = vpop.f32.mrf.mxu1 }
  0xba   :  { %v313_v11 = vadd.f32 %v3078_v9, %v287_v10  ;;  %v290_v15 = vadd.f32 %v287_v10, %v3085_v14 }
  0xbc   :  { %315 = vrot.lane.b32.xlu0 %v313_v11, %s2945_s22  ;;  %v2438_v16 = vmul.f32 -1.442695, %v290_v15 }
  0xbe   :  { %2501 = vpow2.f32 %v2438_v16 }
  0xc4   :  { %v2502_v17 = vpop.eup %2501 }
  0xc5   :  { %v294_v18 = vadd.f32 1.0, %v2502_v17 }
  0xc7   :  { %2503 = vrcp.f32 %v294_v18  ;;  %v306_v24 = vand.u32 2147483648, %v294_v18  ;;  %vm300_vm2 = vweird.f32 %v294_v18  ;;  %v304_v25 = vand.u32 2147483647, %v294_v18 }
  0xc9   :  { %v307_v27 = vor.u32 1.1754944e-38, %v306_v24  ;;  %vm305_vm4 = vcmp.eq.f32.partialorder %v304_v25, 8.507059e+37 }
  0xcd   :  { %v2504_v19 = vpop.eup %2503 }
  0xce   :  { %v296_v20 = vmul.f32 %v2504_v19, %v294_v18  ;;  %vm301_vm1 = vweird.f32 %v2504_v19 }
  0xcf   :  { %vm302_vm3 = vmor %vm300_vm2, %vm301_vm1 }
  0xd0   :  { %v297_v21 = vsub.f32 1.0, %v296_v20 }
  0xd2   :  { %v298_v22 = vmul.f32 %v2504_v19, %v297_v21 }
  0xd4   :  { %v299_v23 = vadd.f32 %v2504_v19, %v298_v22 }
  0xd6   :  { %v303_v26 = vsel %vm302_vm3, %v2504_v19, %v299_v23 }
  0xd7   :  { %v308_v29 = vsel %vm305_vm4, %v307_v27, %v303_v26 }
  0xd8   :  { %v325_v34 = vsub.f32 1.0, %v308_v29  ;;  %v331_v37 = vmul.f32 0.0, %v308_v29 }
 0x12e   :  { %v316_v28 = vpop.permute.xlu0 %315 }
 0x12f   :  { %v318_v30 = vmul.f32 %v316_v28, %v308_v29 }
 0x131   :  { %320 = vrot.lane.b32.xlu1 %v318_v30, %s2945_s22 }
 0x1a3   :  { %v321_v31 = vpop.permute.xlu1 %320 }
 0x1a4   :  { %v323_v32 = vadd.f32 %v321_v31, %v3085_v14 }
 0x1a6   :  { %2505 = vtanh.f32 %v323_v32 }
 0x1ac   :  { %v2506_v33 = vpop.eup %2505 }
 0x1ad   :  { %327 = vrot.lane.b32.xlu1 %v2506_v33, %s2947_s15 }
 0x21f   :  { %v328_v35 = vpop.permute.xlu1 %327 }
 0x220   :  { %v330_v36 = vmul.f32 %v328_v35, %v325_v34 }
 0x222   :  { %v332_v38 = vadd.f32 %v331_v37, %v330_v36 }
 0x224   :  { %334 = vrot.lane.b32.xlu2 %v332_v38, %s2947_s15  ;;  %v407_v56 = vrot.slane %v332_v38, 6 }
 0x27e   :  { %v335_v39 = vpop.permute.xlu2 %334 }
 0x27f   :  { %338 = vst.msk [vmem:[#allocation3] sm:$0x3] %vm337_vm5, %v335_v39  ;;  %2439 = vmatmul.msk.f32.vlgmr.msra.gmra.mxu2 %vm266_vm6, %v335_v39 }
 0x302   :  { %v362_v40 = vpop.f32.mrf.mxu2 }
 0x303   :  { %v366_v41 = vrot.slane %v362_v40, 6  ;;  %v388_v42 = vadd.f32 %v362_v40, %v3078_v9 }
 0x305   :  { %v368_v43 = vadd.f32 %v366_v41, %v3085_v14  ;;  %v390_v44 = vrot.slane %v388_v42, 6 }
 0x307   :  { %v2440_v45 = vmul.f32 -1.442695, %v368_v43  ;;  %391 = vrot.lane.b32.xlu2 %v390_v44, %s2945_s22 }
 0x309   :  { %2507 = vpow2.f32 %v2440_v45 }
 0x30f   :  { %v2508_v46 = vpop.eup %2507 }
 0x310   :  { %v372_v47 = vadd.f32 1.0, %v2508_v46 }
 0x312   :  { %2509 = vrcp.f32 %v372_v47  ;;  %v384_v51 = vand.u32 2147483648, %v372_v47  ;;  %v382_v53 = vand.u32 2147483647, %v372_v47  ;;  %vm378_vm8 = vweird.f32 %v372_v47 }
 0x314   :  { %v385_v55 = vor.u32 1.1754944e-38, %v384_v51  ;;  %vm383_vm10 = vcmp.eq.f32.partialorder %v382_v53, 8.507059e+37 }
 0x318   :  { %v2510_v48 = vpop.eup %2509 }
 0x319   :  { %v374_v49 = vmul.f32 %v2510_v48, %v372_v47  ;;  %vm379_vm7 = vweird.f32 %v2510_v48 }
 0x31a   :  { %vm380_vm9 = vmor %vm378_vm8, %vm379_vm7 }
 0x31b   :  { %v375_v50 = vsub.f32 1.0, %v374_v49 }
 0x31d   :  { %v376_v52 = vmul.f32 %v2510_v48, %v375_v50 }
 0x31f   :  { %v377_v54 = vadd.f32 %v2510_v48, %v376_v52 }
 0x321   :  { %v381_v57 = vsel %vm380_vm9, %v2510_v48, %v377_v54  ;;  %vm415_vm9 = vcmask 257026  }
 0x322   :  { %v386_v58 = vsel %vm383_vm10, %v385_v55, %v381_v57  ;;  %vm496_vm10 = vcmask 259076  }
 0x323   :  { %v409_v59 = vmul.f32 %v407_v56, %v386_v58  ;;  %v401_v1 = vsub.f32 1.0, %v386_v58 }
 0x361   :  { %v392_v60 = vpop.permute.xlu2 %391 }
 0x362   :  { %v394_v61 = vmul.f32 %v392_v60, %v386_v58 }
 0x364   :  { %396 = vrot.lane.b32.xlu0 %v394_v61, %s2945_s22 }
 0x3d6   :  { %v397_v62 = vpop.permute.xlu0 %396 }
 0x3d7   :  { %v399_v63 = vadd.f32 %v397_v62, %v3085_v14 }
 0x3d9   :  { %2511 = vtanh.f32 %v399_v63 }
 0x3df   :  { %v2512_v0 = vpop.eup %2511 }
 0x3e0   :  { %403 = vrot.lane.b32.xlu1 %v2512_v0, %s2947_s15 }
 0x452   :  { %v404_v2 = vpop.permute.xlu1 %403 }
 0x453   :  { %v406_v3 = vmul.f32 %v404_v2, %v401_v1 }
 0x455   :  { %v3100_v4 = vadd.f32 %v409_v59, %v406_v3 }
 0x457   :  { %v421_v5 = vrot.slane %v3100_v4, 2  ;;  %v488_v35 = vrot.slane %v3100_v4, 6 }
 0x459   :  { %422 = vrot.lane.b32.xlu2 %v421_v5, %s2947_s15 }
 0x4b3   :  { %v423_v6 = vpop.permute.xlu2 %422 }
 0x4b4   :  { %2441 = vmatmul.msk.f32.vlgmr.msra.gmra.mxu3 %vm266_vm6, %v423_v6 }
 0x537   :  { %v443_v7 = vpop.f32.mrf.mxu3 }
 0x538   :  { %v469_v10 = vadd.f32 %v443_v7, %v3078_v9  ;;  %v447_v13 = vrot.slane %v443_v7, 4 }
 0x53a   :  { %v471_v11 = vrot.slane %v469_v10, 4  ;;  %v449_v15 = vadd.f32 %v447_v13, %v3085_v14 }
 0x53c   :  { %472 = vrot.lane.b32.xlu0 %v471_v11, %s2945_s22  ;;  %v2442_v16 = vmul.f32 -1.442695, %v449_v15  ;;  %v222_v11 = vld [vmem:[%s3562_s0 + $0x8] sm:$0xff] }
 0x53d   :  { %2437 = vmatmul.msk.f32.gmra.mxu0 %vm229_vm0, %v222_v11 }
 0x53e   :  { %2513 = vpow2.f32 %v2442_v16 }
 0x544   :  { %v2514_v17 = vpop.eup %2513 }
 0x545   :  { %v453_v18 = vadd.f32 1.0, %v2514_v17 }
 0x547   :  { %2515 = vrcp.f32 %v453_v18  ;;  %v465_v24 = vand.u32 2147483648, %v453_v18  ;;  %vm459_vm12 = vweird.f32 %v453_v18  ;;  %v463_v25 = vand.u32 2147483647, %v453_v18 }
 0x549   :  { %v466_v27 = vor.u32 1.1754944e-38, %v465_v24  ;;  %vm464_vm14 = vcmp.eq.f32.partialorder %v463_v25, 8.507059e+37 }
 0x54d   :  { %v2516_v19 = vpop.eup %2515 }
 0x54e   :  { %v455_v20 = vmul.f32 %v2516_v19, %v453_v18  ;;  %vm460_vm11 = vweird.f32 %v2516_v19 }
 0x54f   :  { %vm461_vm13 = vmor %vm459_vm12, %vm460_vm11  ;;  %vm577_vm11 = vcmask 261126  }
 0x550   :  { %v456_v21 = vsub.f32 1.0, %v455_v20 }
 0x552   :  { %v457_v22 = vmul.f32 %v2516_v19, %v456_v21 }
 0x554   :  { %v458_v23 = vadd.f32 %v2516_v19, %v457_v22 }
 0x556   :  { %v462_v26 = vsel %vm461_vm13, %v2516_v19, %v458_v23 }
 0x557   :  { %v467_v29 = vsel %vm464_vm14, %v466_v27, %v462_v26 }
 0x558   :  { %v482_v34 = vsub.f32 1.0, %v467_v29  ;;  %v490_v37 = vmul.f32 %v488_v35, %v467_v29 }
 0x5ae   :  { %v473_v28 = vpop.permute.xlu0 %472 }
 0x5af   :  { %v475_v30 = vmul.f32 %v473_v28, %v467_v29 }
 0x5b1   :  { %477 = vrot.lane.b32.xlu1 %v475_v30, %s2945_s22 }
 0x5ba   :  { %v256_v16 = vpop.f32.mrf.mxu0 }
 0x5bb   :  { %v3133_v17 = vadd.f32 %v3082_v12, %v256_v16 }
 0x623   :  { %v478_v31 = vpop.permute.xlu1 %477 }
 0x624   :  { %v480_v32 = vadd.f32 %v478_v31, %v3085_v14 }
 0x626   :  { %2517 = vtanh.f32 %v480_v32 }
 0x62c   :  { %v2518_v33 = vpop.eup %2517 }
 0x62d   :  { %484 = vrot.lane.b32.xlu2 %v2518_v33, %s2947_s15 }
 0x687   :  { %v485_v36 = vpop.permute.xlu2 %484 }
 0x688   :  { %v487_v38 = vmul.f32 %v485_v36, %v482_v34 }
 0x68a   :  { %v3112_v39 = vadd.f32 %v490_v37, %v487_v38 }
 0x68c   :  { %v502_v40 = vrot.slane %v3112_v39, 4  ;;  %v569_v2 = vrot.slane %v3112_v39, 6 }
 0x68e   :  { %503 = vrot.lane.b32.xlu0 %v502_v40, %s2947_s15 }
 0x700   :  { %v504_v41 = vpop.permute.xlu0 %503 }
 0x701   :  { %2443 = vmatmul.msk.f32.vlgmr.msrb.gmra.mxu1 %vm266_vm6, %v504_v41 }
 0x77e   :  { %v524_v42 = vpop.f32.mrf.mxu1 }
 0x77f   :  { %v550_v43 = vadd.f32 %v524_v42, %v3078_v9  ;;  %v528_v45 = vrot.slane %v524_v42, 2 }
 0x781   :  { %v552_v44 = vrot.slane %v550_v43, 2  ;;  %v530_v46 = vadd.f32 %v528_v45, %v3085_v14  ;;  %v3150_v43 = vld [vmem:[#allocation15 + $0x18] sm:$0xff]  ;;  %v3161_v45 = vld [vmem:[#allocation15] sm:$0xff] }
 0x782   :  { %949 = vmatpush.msra.mxu3 %v3150_v43  ;;  %1017 = vmatpush.msra.mxu0 %v3150_v43 }
 0x783   :  { %553 = vrot.lane.b32.xlu1 %v552_v44, %s2945_s22  ;;  %v2444_v47 = vmul.f32 -1.442695, %v530_v46  ;;  %v3152_v44 = vld [vmem:[#allocation15 + $0x10] sm:$0xff]  ;;  %1089 = vmatpush.msrb.mxu1 %v3150_v43  ;;  %v896_v46 = vld [vmem:[#allocation13 + $0x18] sm:$0xff] }
 0x784   :  { %950 = vmatpush.msra.mxu3 %v3152_v44  ;;  %1018 = vmatpush.msra.mxu0 %v3152_v44 }
 0x785   :  { %2519 = vpow2.f32 %v2444_v47  ;;  %1090 = vmatpush.msrb.mxu1 %v3152_v44  ;;  %v895_v47 = vld [vmem:[#allocation13 + $0x10] sm:$0xff]  ;;  %919 = vmatpush.msra.mxu2 %v896_v46 }
 0x787   :  { %920 = vmatpush.msra.mxu2 %v895_v47 }
 0x78b   :  { %v2520_v48 = vpop.eup %2519 }
 0x78c   :  { %v534_v49 = vadd.f32 1.0, %v2520_v48  ;;  %v894_v48 = vld [vmem:[#allocation13 + $0x8] sm:$0xff] }
 0x78d   :  { %921 = vmatpush.msra.mxu2 %v894_v48 }
 0x78e   :  { %2521 = vrcp.f32 %v534_v49  ;;  %v546_v55 = vand.u32 2147483648, %v534_v49  ;;  %vm540_vm1 = vweird.f32 %v534_v49  ;;  %v544_v56 = vand.u32 2147483647, %v534_v49 }
 0x790   :  { %v547_v58 = vor.u32 1.1754944e-38, %v546_v55  ;;  %vm545_vm3 = vcmp.eq.f32.partialorder %v544_v56, 8.507059e+37 }
 0x794   :  { %v2522_v50 = vpop.eup %2521 }
 0x795   :  { %v536_v51 = vmul.f32 %v2522_v50, %v534_v49  ;;  %vm541_vm15 = vweird.f32 %v2522_v50  ;;  %v893_v49 = vld [vmem:[#allocation13] sm:$0xff] }
 0x796   :  { %vm542_vm2 = vmor %vm540_vm1, %vm541_vm15  ;;  %922 = vmatpush.msra.mxu2 %v893_v49 }
 0x797   :  { %v537_v52 = vsub.f32 1.0, %v536_v51 }
 0x799   :  { %v538_v53 = vmul.f32 %v2522_v50, %v537_v52 }
 0x79b   :  { %v539_v54 = vadd.f32 %v2522_v50, %v538_v53 }
 0x79d   :  { %v543_v57 = vsel %vm542_vm2, %v2522_v50, %v539_v54  ;;  %v2498_v50 = vld [vmem:[#allocation18] ss:$0 sm:$0xff] }
 0x79e   :  { %v548_v60 = vsel %vm545_vm3, %v547_v58, %v543_v57 }
 0x79f   :  { %v563_v1 = vsub.f32 1.0, %v548_v60  ;;  %v571_v5 = vmul.f32 %v569_v2, %v548_v60 }
 0x7f5   :  { %v554_v59 = vpop.permute.xlu1 %553 }
 0x7f6   :  { %v556_v61 = vmul.f32 %v554_v59, %v548_v60  ;;  %v3194_v59 = vld [vmem:[#allocation16] ss:$0 sm:$0xff] }
 0x7f8   :  { %558 = vrot.lane.b32.xlu2 %v556_v61, %s2945_s22 }
 0x852   :  { %v559_v62 = vpop.permute.xlu2 %558 }
 0x853   :  { %v561_v63 = vadd.f32 %v559_v62, %v3085_v14 }
 0x855   :  { %2523 = vtanh.f32 %v561_v63 }
 0x85b   :  { %v2524_v0 = vpop.eup %2523 }
 0x85c   :  { %565 = vrot.lane.b32.xlu0 %v2524_v0, %s2947_s15 }
 0x8ce   :  { %v566_v3 = vpop.permute.xlu0 %565 }
 0x8cf   :  { %v568_v6 = vmul.f32 %v566_v3, %v563_v1 }
 0x8d1   :  { %v572_v7 = vadd.f32 %v571_v5, %v568_v6 }
 0x8d3   :  { %v583_v10 = vrot.slane %v572_v7, 6 }
 0x8d5   :  { %584 = vrot.lane.b32.xlu1 %v583_v10, %s2947_s15 }
 0x947   :  { %v585_v14 = vpop.permute.xlu1 %584 }
 0x948   :  { %2445 = vmatmul.msk.f32.vlgmr.msrb.gmra.mxu2 %vm266_vm6, %v585_v14 }
 0x949   :  { %1371 = vmatpush.msrb.mxu2 %v3150_v43 }
 0x94b   :  { %1372 = vmatpush.msrb.mxu2 %v3152_v44 }
 0x9cb   :  { %v605_v13 = vpop.f32.mrf.mxu2 }
 0x9cc   :  { %v628_v15 = vadd.f32 %v605_v13, %v3078_v9  ;;  %v608_v18 = vadd.f32 %v605_v13, %v3133_v17 }
 0x9ce   :  { %630 = vrot.lane.b32.xlu2 %v628_v15, %s2945_s22  ;;  %v2446_v19 = vmul.f32 -1.442695, %v608_v18 }
 0x9d0   :  { %2525 = vpow2.f32 %v2446_v19 }
 0x9d6   :  { %v2526_v20 = vpop.eup %2525 }
 0x9d7   :  { %v612_v21 = vadd.f32 1.0, %v2526_v20 }
 0x9d9   :  { %2527 = vrcp.f32 %v612_v21  ;;  %v624_v27 = vand.u32 2147483648, %v612_v21  ;;  %vm618_vm4 = vweird.f32 %v612_v21  ;;  %v622_v28 = vand.u32 2147483647, %v612_v21 }
 0x9db   :  { %v625_v12 = vor.u32 1.1754944e-38, %v624_v27  ;;  %vm623_vm8 = vcmp.eq.f32.partialorder %v622_v28, 8.507059e+37 }
 0x9df   :  { %v2528_v22 = vpop.eup %2527 }
 0x9e0   :  { %v614_v23 = vmul.f32 %v2528_v22, %v612_v21  ;;  %vm619_vm0 = vweird.f32 %v2528_v22 }
 0x9e1   :  { %vm620_vm7 = vmor %vm618_vm4, %vm619_vm0 }
 0x9e2   :  { %v615_v24 = vsub.f32 1.0, %v614_v23 }
 0x9e4   :  { %v616_v25 = vmul.f32 %v2528_v22, %v615_v24 }
 0x9e6   :  { %v617_v26 = vadd.f32 %v2528_v22, %v616_v25 }
 0x9e8   :  { %v621_v29 = vsel %vm620_vm7, %v2528_v22, %v617_v26 }
 0x9e9   :  { %v626_v31 = vsel %vm623_vm8, %v625_v12, %v621_v29 }
 0x9ea   :  { %v640_v37 = vsub.f32 1.0, %v626_v31  ;;  %v647_v40 = vmul.f32 %v626_v31, %v583_v10 }
 0xa28   :  { %v631_v30 = vpop.permute.xlu2 %630 }
 0xa29   :  { %v633_v32 = vmul.f32 %v631_v30, %v626_v31 }
 0xa2b   :  { %635 = vrot.lane.b32.xlu0 %v633_v32, %s2945_s22 }
 0xa33   :  { %412 = vrot.lane.b32.xlu0 %v3100_v4, %s2947_s15 }
 0xa3b   :  { %977 = vrot.lane.b32.xlu0 %v2498_v50, %s2945_s22 }
 0xa9d   :  { %v636_v33 = vpop.permute.xlu0 %635 }
 0xa9e   :  { %v638_v34 = vadd.f32 %v636_v33, %v3133_v17 }
 0xaa0   :  { %2529 = vtanh.f32 %v638_v34 }
 0xaa5   :  { %v413_v35 = vpop.permute.xlu0 %412 }
 0xaa6   :  { %v2530_v36 = vpop.eup %2529  ;;  %416 = vst.msk [vmem:[#allocation3] sm:$0xc] %vm415_vm9, %v413_v35 }
 0xaa7   :  { %642 = vrot.lane.b32.xlu1 %v2530_v36, %s2947_s15 }
 0xaad   :  { %v3190_v57 = vpop.permute.xlu0 %977 }
 0xaaf   :  { %493 = vrot.lane.b32.xlu1 %v3112_v39, %s2947_s15  ;;  %v3156_v39 = vld [vmem:[#allocation15 + $0x8] sm:$0xff] }
 0xab0   :  { %951 = vmatpush.msra.mxu3 %v3156_v39  ;;  %1019 = vmatpush.msra.mxu0 %v3156_v39 }
 0xab1   :  { %1091 = vmatpush.msrb.mxu1 %v3156_v39  ;;  %1373 = vmatpush.msrb.mxu2 %v3156_v39 }
 0xab2   :  { %952 = vmatpush.msra.mxu3 %v3161_v45  ;;  %1020 = vmatpush.msra.mxu0 %v3161_v45 }
 0xab3   :  { %1092 = vmatpush.msrb.mxu1 %v3161_v45  ;;  %1374 = vmatpush.msrb.mxu2 %v3161_v45 }
 0xb19   :  { %v643_v38 = vpop.permute.xlu1 %642 }
 0xb1a   :  { %v645_v41 = vmul.f32 %v643_v38, %v640_v37 }
 0xb1c   :  { %v3144_v42 = vadd.f32 %v647_v40, %v645_v41 }
 0xb1e   :  { %650 = vrot.lane.b32.xlu2 %v3144_v42, %s2947_s15 }
 0xb21   :  { %v494_v4 = vpop.permute.xlu1 %493 }
 0xb22   :  { %497 = vst.msk [vmem:[#allocation3] sm:$0x30] %vm496_vm10, %v494_v4  ;;  %v722_v4 = vrot.slane %v3144_v42, 6 }
 0xb26   :  { %574 = vrot.lane.b32.xlu2 %v572_v7, %s2947_s15 }
 0xb78   :  { %v651_v51 = vpop.permute.xlu2 %650 }
 0xb79   :  { %653 = vst.msk [vmem:[#allocation3 + $0x8] sm:$0x3] %vm337_vm5, %v651_v51  ;;  %2447 = vmatmul.msk.f32.vlgmr.msrb.gmra.mxu3 %vm266_vm6, %v651_v51 }
 0xb7a   :  { %1161 = vmatpush.msrb.mxu3 %v3150_v43 }
 0xb7c   :  { %1162 = vmatpush.msrb.mxu3 %v3152_v44 }
 0xb7e   :  { %1163 = vmatpush.msrb.mxu3 %v3156_v39 }
 0xb80   :  { %v575_v52 = vpop.permute.xlu2 %574  ;;  %1164 = vmatpush.msrb.mxu3 %v3161_v45 }
 0xb81   :  { %578 = vst.msk [vmem:[#allocation3] sm:$0xc0] %vm577_vm11, %v575_v52  ;;  %953 = vmatmul.f32.vlgmr.msra.gmra.mxu3 %v2946_v8 }
 0xb82   :  { %1443 = vmatpush.msra.mxu3 %v3150_v43 }
 0xb84   :  { %1444 = vmatpush.msra.mxu3 %v3152_v44 }
 0xb86   :  { %1445 = vmatpush.msra.mxu3 %v3156_v39 }
 0xb88   :  { %v891_v53 = vld [vmem:[#allocation3] sm:$0xff]  ;;  %1446 = vmatpush.msra.mxu3 %v3161_v45 }
 0xb89   :  { %2453 = vmatmul.msk.f32.vlgmr.msra.gmra.mxu2 %vm266_vm6, %v891_v53 }
 0xbfc   :  { %v677_v54 = vpop.f32.mrf.mxu3 }
 0xbfd   :  { %v703_v55 = vadd.f32 %v677_v54, %v3078_v9  ;;  %v681_v1 = vrot.slane %v677_v54, 6 }
 0xbff   :  { %v705_v56 = vrot.slane %v703_v55, 6  ;;  %v683_v3 = vadd.f32 %v681_v1, %v3133_v17 }
 0xc01   :  { %706 = vrot.lane.b32.xlu1 %v705_v56, %s2945_s22  ;;  %v2448_v5 = vmul.f32 -1.442695, %v683_v3 }
 0xc04   :  { %v954_v8 = vpop.f32.mrf.mxu3 }
 0xc05   :  { %v980_v58 = vadd.f32 %v3190_v57, %v954_v8 }
 0xc07   :  { %982 = vrot.lane.b32.xlu2 %v980_v58, %s2945_s22 }
 0xc0c   :  { %v924_v60 = vpop.f32.mrf.mxu2 }
 0xc0d   :  { %v3197_v61 = vadd.f32 %v3194_v59, %v924_v60 }
 0xc0f   :  { %v957_v62 = vadd.f32 %v954_v8, %v3197_v61 }
 0xc11   :  { %v2455_v63 = vmul.f32 -1.442695, %v957_v62 }
 0xc13   :  { %2531 = vpow2.f32 %v2455_v63 }
 0xc19   :  { %v2532_v0 = vpop.eup %2531 }
 0xc1a   :  { %v961_v2 = vadd.f32 1.0, %v2532_v0 }
 0xc1c   :  { %2533 = vrcp.f32 %v961_v2  ;;  %v973_v16 = vand.u32 2147483648, %v961_v2  ;;  %vm967_vm12 = vweird.f32 %v961_v2  ;;  %v971_v18 = vand.u32 2147483647, %v961_v2 }
 0xc1d   :  { %2535 = vpow2.f32 %v2448_v5 }
 0xc1e   :  { %v974_v21 = vor.u32 1.1754944e-38, %v973_v16  ;;  %vm972_vm14 = vcmp.eq.f32.partialorder %v971_v18, 8.507059e+37 }
 0xc22   :  { %v2534_v6 = vpop.eup %2533 }
 0xc23   :  { %v963_v7 = vmul.f32 %v2534_v6, %v961_v2  ;;  %v2536_v10 = vpop.eup %2535  ;;  %vm968_vm5 = vweird.f32 %v2534_v6 }
 0xc24   :  { %v687_v14 = vadd.f32 1.0, %v2536_v10  ;;  %vm969_vm13 = vmor %vm967_vm12, %vm968_vm5 }
 0xc25   :  { %v964_v11 = vsub.f32 1.0, %v963_v7 }
 0xc26   :  { %2537 = vrcp.f32 %v687_v14  ;;  %v699_v29 = vand.u32 2147483648, %v687_v14  ;;  %vm693_vm1 = vweird.f32 %v687_v14  ;;  %v697_v12 = vand.u32 2147483647, %v687_v14 }
 0xc27   :  { %v965_v13 = vmul.f32 %v2534_v6, %v964_v11 }
 0xc28   :  { %v700_v31 = vor.u32 1.1754944e-38, %v699_v29  ;;  %vm698_vm3 = vcmp.eq.f32.partialorder %v697_v12, 8.507059e+37 }
 0xc29   :  { %v966_v15 = vadd.f32 %v2534_v6, %v965_v13 }
 0xc2b   :  { %v970_v20 = vsel %vm969_vm13, %v2534_v6, %v966_v15 }
 0xc2c   :  { %v2538_v19 = vpop.eup %2537  ;;  %v975_v23 = vsel %vm972_vm14, %v974_v21, %v970_v20 }
 0xc2d   :  { %v689_v22 = vmul.f32 %v2538_v19, %v687_v14  ;;  %vm694_vm15 = vweird.f32 %v2538_v19  ;;  %v992_v51 = vsub.f32 1.0, %v975_v23  ;;  %v998_v54 = vmul.f32 0.0, %v975_v23 }
 0xc2e   :  { %vm695_vm2 = vmor %vm693_vm1, %vm694_vm15 }
 0xc2f   :  { %v690_v26 = vsub.f32 1.0, %v689_v22 }
 0xc31   :  { %v691_v27 = vmul.f32 %v2538_v19, %v690_v26 }
 0xc33   :  { %v692_v28 = vadd.f32 %v2538_v19, %v691_v27 }
 0xc35   :  { %v696_v30 = vsel %vm695_vm2, %v2538_v19, %v692_v28 }
 0xc36   :  { %v701_v32 = vsel %vm698_vm3, %v700_v31, %v696_v30 }
 0xc37   :  { %v716_v46 = vsub.f32 1.0, %v701_v32  ;;  %v724_v48 = vmul.f32 %v722_v4, %v701_v32 }
 0xc61   :  { %v983_v24 = vpop.permute.xlu2 %982 }
 0xc62   :  { %v985_v25 = vmul.f32 %v983_v24, %v975_v23 }
 0xc64   :  { %987 = vrot.lane.b32.xlu1 %v985_v25, %s2945_s22 }
 0xc73   :  { %v707_v33 = vpop.permute.xlu1 %706 }
 0xc74   :  { %v709_v34 = vmul.f32 %v707_v33, %v701_v32 }
 0xc76   :  { %711 = vrot.lane.b32.xlu0 %v709_v34, %s2945_s22 }
 0xcd6   :  { %v988_v35 = vpop.permute.xlu1 %987 }
 0xcd7   :  { %v990_v36 = vadd.f32 %v988_v35, %v3197_v61 }
 0xcd9   :  { %2539 = vtanh.f32 %v990_v36 }
 0xcdf   :  { %v2540_v37 = vpop.eup %2539 }
 0xce0   :  { %994 = vrot.lane.b32.xlu0 %v2540_v37, %s2947_s15 }
 0xce8   :  { %v712_v38 = vpop.permute.xlu0 %711 }
 0xce9   :  { %v714_v40 = vadd.f32 %v712_v38, %v3133_v17 }
 0xceb   :  { %2541 = vtanh.f32 %v714_v40 }
 0xcf1   :  { %v2542_v41 = vpop.eup %2541 }
 0xcf2   :  { %718 = vrot.lane.b32.xlu2 %v2542_v41, %s2947_s15 }
 0xd4c   :  { %v719_v47 = vpop.permute.xlu2 %718 }
 0xd4d   :  { %v721_v49 = vmul.f32 %v719_v47, %v716_v46 }
 0xd4f   :  { %v3208_v50 = vadd.f32 %v724_v48, %v721_v49 }
 0xd51   :  { %v735_v52 = vrot.slane %v3208_v50, 2 }
 0xd52   :  { %v995_v53 = vpop.permute.xlu0 %994 }
 0xd53   :  { %v997_v55 = vmul.f32 %v995_v53, %v992_v51  ;;  %736 = vrot.lane.b32.xlu1 %v735_v52, %s2947_s15  ;;  %v802_v52 = vrot.slane %v3208_v50, 6 }
 0xd55   :  { %v3212_v56 = vadd.f32 %v998_v54, %v997_v55 }
 0xd57   :  { %1001 = vrot.lane.b32.xlu2 %v3212_v56, %s2947_s15 }
 0xdb1   :  { %v1002_v8 = vpop.permute.xlu2 %1001 }
 0xdc5   :  { %v737_v42 = vpop.permute.xlu1 %736 }
 0xdc6   :  { %2449 = vmatmul.msk.f32.vlgmr.msrb.gmra.mxu0 %vm266_vm6, %v737_v42 }
 0xdc7   :  { %1233 = vmatpush.msrb.mxu0 %v3150_v43 }
 0xdc9   :  { %1234 = vmatpush.msrb.mxu0 %v3152_v44 }
 0xdcb   :  { %1235 = vmatpush.msrb.mxu0 %v3156_v39 }
 0xdcd   :  { %1236 = vmatpush.msrb.mxu0 %v3161_v45 }
 0xdce   :  { %2456 = vmatmul.msk.f32.vlgmr.msra.gmra.mxu0 %vm266_vm6, %v1002_v8 }
 0xe43   :  { %v757_v58 = vpop.f32.mrf.mxu0 }
 0xe44   :  { %v783_v60 = vadd.f32 %v757_v58, %v3078_v9  ;;  %v761_v2 = vrot.slane %v757_v58, 4  ;;  %v1067_v58 = vrot.slane %v3212_v56, 6 }
 0xe46   :  { %v785_v62 = vrot.slane %v783_v60, 4  ;;  %v763_v3 = vadd.f32 %v761_v2, %v3133_v17 }
 0xe48   :  { %786 = vrot.lane.b32.xlu0 %v785_v62, %s2945_s22  ;;  %v2450_v5 = vmul.f32 -1.442695, %v763_v3 }
 0xe4a   :  { %2543 = vpow2.f32 %v2450_v5 }
 0xe4b   :  { %v1022_v63 = vpop.f32.mrf.mxu0 }
 0xe4c   :  { %v1048_v0 = vadd.f32 %v1022_v63, %v3190_v57  ;;  %v1026_v6 = vrot.slane %v1022_v63, 6 }
 0xe4e   :  { %v1050_v1 = vrot.slane %v1048_v0, 6  ;;  %v1028_v7 = vadd.f32 %v1026_v6, %v3197_v61 }
 0xe50   :  { %1051 = vrot.lane.b32.xlu1 %v1050_v1, %s2945_s22  ;;  %v2457_v10 = vmul.f32 -1.442695, %v1028_v7  ;;  %v2544_v11 = vpop.eup %2543 }
 0xe51   :  { %v767_v14 = vadd.f32 1.0, %v2544_v11 }
 0xe52   :  { %2545 = vpow2.f32 %v2457_v10 }
 0xe53   :  { %2547 = vrcp.f32 %v767_v14  ;;  %v779_v25 = vand.u32 2147483648, %v767_v14  ;;  %vm773_vm4 = vweird.f32 %v767_v14  ;;  %v777_v26 = vand.u32 2147483647, %v767_v14 }
 0xe55   :  { %v780_v29 = vor.u32 1.1754944e-38, %v779_v25  ;;  %vm778_vm8 = vcmp.eq.f32.partialorder %v777_v26, 8.507059e+37 }
 0xe58   :  { %v2546_v13 = vpop.eup %2545 }
 0xe59   :  { %v1032_v15 = vadd.f32 1.0, %v2546_v13  ;;  %v2548_v16 = vpop.eup %2547 }
 0xe5a   :  { %v769_v18 = vmul.f32 %v2548_v16, %v767_v14  ;;  %vm774_vm0 = vweird.f32 %v2548_v16 }
 0xe5b   :  { %2549 = vrcp.f32 %v1032_v15  ;;  %vm775_vm7 = vmor %vm773_vm4, %vm774_vm0  ;;  %v1044_v33 = vand.u32 2147483648, %v1032_v15  ;;  %vm1038_vm12 = vweird.f32 %v1032_v15  ;;  %v1042_v34 = vand.u32 2147483647, %v1032_v15 }
 0xe5c   :  { %v770_v19 = vsub.f32 1.0, %v769_v18 }
 0xe5d   :  { %v1045_v36 = vor.u32 1.1754944e-38, %v1044_v33  ;;  %vm1043_vm14 = vcmp.eq.f32.partialorder %v1042_v34, 8.507059e+37 }
 0xe5e   :  { %v771_v21 = vmul.f32 %v2548_v16, %v770_v19 }
 0xe60   :  { %v772_v23 = vadd.f32 %v2548_v16, %v771_v21 }
 0xe61   :  { %v2550_v20 = vpop.eup %2549 }
 0xe62   :  { %v1034_v22 = vmul.f32 %v2550_v20, %v1032_v15  ;;  %v776_v27 = vsel %vm775_vm7, %v2548_v16, %v772_v23  ;;  %vm1039_vm5 = vweird.f32 %v2550_v20 }
 0xe63   :  { %v781_v12 = vsel %vm778_vm8, %v780_v29, %v776_v27  ;;  %vm1040_vm13 = vmor %vm1038_vm12, %vm1039_vm5 }
 0xe64   :  { %v1035_v24 = vsub.f32 1.0, %v1034_v22  ;;  %v796_v51 = vsub.f32 1.0, %v781_v12  ;;  %v804_v54 = vmul.f32 %v802_v52, %v781_v12 }
 0xe66   :  { %v1036_v28 = vmul.f32 %v2550_v20, %v1035_v24 }
 0xe68   :  { %v1037_v32 = vadd.f32 %v2550_v20, %v1036_v28 }
 0xe6a   :  { %v1041_v35 = vsel %vm1040_vm13, %v2550_v20, %v1037_v32 }
 0xe6b   :  { %v1046_v38 = vsel %vm1043_vm14, %v1045_v36, %v1041_v35 }
 0xe6c   :  { %v1061_v60 = vsub.f32 1.0, %v1046_v38  ;;  %v1069_v63 = vmul.f32 %v1067_v58, %v1046_v38 }
 0xeba   :  { %v787_v30 = vpop.permute.xlu0 %786 }
 0xebb   :  { %v789_v31 = vmul.f32 %v787_v30, %v781_v12 }
 0xebd   :  { %791 = vrot.lane.b32.xlu2 %v789_v31, %s2945_s22 }
 0xec2   :  { %v1052_v37 = vpop.permute.xlu1 %1051 }
 0xec3   :  { %v1054_v40 = vmul.f32 %v1052_v37, %v1046_v38 }
 0xec5   :  { %1056 = vrot.lane.b32.xlu0 %v1054_v40, %s2945_s22 }
 0xf17   :  { %v792_v41 = vpop.permute.xlu2 %791 }
 0xf18   :  { %v794_v4 = vadd.f32 %v792_v41, %v3133_v17 }
 0xf1a   :  { %2551 = vtanh.f32 %v794_v4 }
 0xf20   :  { %v2552_v46 = vpop.eup %2551 }
 0xf21   :  { %798 = vrot.lane.b32.xlu1 %v2552_v46, %s2947_s15 }
 0xf37   :  { %v1057_v47 = vpop.permute.xlu0 %1056 }
 0xf38   :  { %v1059_v48 = vadd.f32 %v1057_v47, %v3197_v61 }
 0xf3a   :  { %2553 = vtanh.f32 %v1059_v48 }
 0xf40   :  { %v2554_v49 = vpop.eup %2553 }
 0xf41   :  { %1063 = vrot.lane.b32.xlu2 %v2554_v49, %s2947_s15 }
 0xf93   :  { %v799_v53 = vpop.permute.xlu1 %798 }
 0xf94   :  { %v801_v55 = vmul.f32 %v799_v53, %v796_v51 }
 0xf96   :  { %v3235_v42 = vadd.f32 %v804_v54, %v801_v55 }
 0xf98   :  { %v815_v8 = vrot.slane %v3235_v42, 4 }
 0xf9a   :  { %816 = vrot.lane.b32.xlu0 %v815_v8, %s2947_s15 }
 0xf9b   :  { %v1064_v62 = vpop.permute.xlu2 %1063 }
 0xf9c   :  { %v1066_v0 = vmul.f32 %v1064_v62, %v1061_v60 }
 0xf9e   :  { %v1070_v1 = vadd.f32 %v1069_v63, %v1066_v0 }
 0xfa0   :  { %v1072_v2 = vrot.slane %v1070_v1, 2  ;;  %v1139_v22 = vrot.slane %v1070_v1, 6 }
 0xfa2   :  { %1073 = vrot.lane.b32.xlu1 %v1072_v2, %s2947_s15 }
0x100c   :  { %v817_v3 = vpop.permute.xlu0 %816 }
0x100d   :  { %2451 = vmatmul.msk.f32.vlgmr.msra.gmra.mxu1 %vm266_vm6, %v817_v3 }
0x100e   :  { %1299 = vmatpush.msra.mxu1 %v3150_v43 }
0x1010   :  { %1300 = vmatpush.msra.mxu1 %v3152_v44 }
0x1012   :  { %1301 = vmatpush.msra.mxu1 %v3156_v39 }
0x1014   :  { %v1074_v56 = vpop.permute.xlu1 %1073  ;;  %1302 = vmatpush.msra.mxu1 %v3161_v45 }
0x1015   :  { %2458 = vmatmul.msk.f32.vlgmr.msrb.gmra.mxu1 %vm266_vm6, %v1074_v56 }
0x108a   :  { %v837_v5 = vpop.f32.mrf.mxu1 }
0x108b   :  { %v863_v28 = vadd.f32 %v837_v5, %v3078_v9  ;;  %v841_v32 = vrot.slane %v837_v5, 2 }
0x108d   :  { %v865_v29 = vrot.slane %v863_v28, 2  ;;  %v843_v33 = vadd.f32 %v841_v32, %v3133_v17 }
0x108f   :  { %v2452_v34 = vmul.f32 -1.442695, %v843_v33 }
0x1092   :  { %v1094_v6 = vpop.f32.mrf.mxu1 }
0x1093   :  { %v1098_v7 = vrot.slane %v1094_v6, 4  ;;  %v1120_v10 = vadd.f32 %v1094_v6, %v3190_v57 }
0x1095   :  { %v1100_v11 = vadd.f32 %v1098_v7, %v3197_v61  ;;  %v1122_v14 = vrot.slane %v1120_v10, 4 }
0x1097   :  { %v2459_v13 = vmul.f32 -1.442695, %v1100_v11  ;;  %1123 = vrot.lane.b32.xlu2 %v1122_v14, %s2945_s22 }
0x1099   :  { %2555 = vpow2.f32 %v2459_v13 }
0x109f   :  { %v2556_v43 = vpop.eup %2555 }
0x10a0   :  { %v1104_v44 = vadd.f32 1.0, %v2556_v43 }
0x10a2   :  { %2557 = vrcp.f32 %v1104_v44  ;;  %v1116_v16 = vand.u32 2147483648, %v1104_v44  ;;  %v1114_v19 = vand.u32 2147483647, %v1104_v44  ;;  %vm1110_vm1 = vweird.f32 %v1104_v44 }
0x10a4   :  { %v1117_v21 = vor.u32 1.1754944e-38, %v1116_v16  ;;  %vm1115_vm3 = vcmp.eq.f32.partialorder %v1114_v19, 8.507059e+37 }
0x10a8   :  { %v2558_v39 = vpop.eup %2557 }
0x10a9   :  { %v1106_v15 = vmul.f32 %v2558_v39, %v1104_v44  ;;  %vm1111_vm15 = vweird.f32 %v2558_v39 }
0x10aa   :  { %vm1112_vm2 = vmor %vm1110_vm1, %vm1111_vm15 }
0x10ab   :  { %v1107_v45 = vsub.f32 1.0, %v1106_v15 }
0x10ad   :  { %v1108_v18 = vmul.f32 %v2558_v39, %v1107_v45 }
0x10af   :  { %v1109_v20 = vadd.f32 %v2558_v39, %v1108_v18 }
0x10b1   :  { %v1113_v23 = vsel %vm1112_vm2, %v2558_v39, %v1109_v20 }
0x10b2   :  { %v1118_v24 = vsel %vm1115_vm3, %v1117_v21, %v1113_v23  ;;  %v882_v21 = vrot.slane %v3235_v42, 6 }
0x10b3   :  { %v1141_v25 = vmul.f32 %v1139_v22, %v1118_v24  ;;  %v1133_v40 = vsub.f32 1.0, %v1118_v24 }
0x10f1   :  { %v1124_v26 = vpop.permute.xlu2 %1123 }
0x10f2   :  { %v1126_v27 = vmul.f32 %v1124_v26, %v1118_v24 }
0x10f4   :  { %1128 = vrot.lane.b32.xlu0 %v1126_v27, %s2945_s22 }
0x10fc   :  { %866 = vrot.lane.b32.xlu0 %v865_v29, %s2945_s22 }
0x1166   :  { %v1129_v12 = vpop.permute.xlu0 %1128 }
0x1167   :  { %v1131_v30 = vadd.f32 %v1129_v12, %v3197_v61 }
0x1169   :  { %2559 = vtanh.f32 %v1131_v30 }
0x116a   :  { %2561 = vpow2.f32 %v2452_v34 }
0x116e   :  { %v867_v54 = vpop.permute.xlu0 %866 }
0x116f   :  { %v2560_v31 = vpop.eup %2559 }
0x1170   :  { %1135 = vrot.lane.b32.xlu1 %v2560_v31, %s2947_s15  ;;  %v2562_v35 = vpop.eup %2561 }
0x1171   :  { %v847_v36 = vadd.f32 1.0, %v2562_v35 }
0x1173   :  { %2563 = vrcp.f32 %v847_v36  ;;  %v859_v51 = vand.u32 2147483648, %v847_v36  ;;  %vm853_vm4 = vweird.f32 %v847_v36  ;;  %v857_v52 = vand.u32 2147483647, %v847_v36 }
0x1175   :  { %v860_v55 = vor.u32 1.1754944e-38, %v859_v51  ;;  %vm858_vm8 = vcmp.eq.f32.partialorder %v857_v52, 8.507059e+37 }
0x1179   :  { %v2564_v37 = vpop.eup %2563 }
0x117a   :  { %v849_v9 = vmul.f32 %v2564_v37, %v847_v36  ;;  %vm854_vm0 = vweird.f32 %v2564_v37 }
0x117b   :  { %vm855_vm7 = vmor %vm853_vm4, %vm854_vm0 }
0x117c   :  { %v850_v38 = vsub.f32 1.0, %v849_v9 }
0x117e   :  { %v851_v4 = vmul.f32 %v2564_v37, %v850_v38 }
0x1180   :  { %v852_v48 = vadd.f32 %v2564_v37, %v851_v4 }
0x1182   :  { %v856_v53 = vsel %vm855_vm7, %v2564_v37, %v852_v48 }
0x1183   :  { %v861_v8 = vsel %vm858_vm8, %v860_v55, %v856_v53 }
0x1184   :  { %v869_v58 = vmul.f32 %v867_v54, %v861_v8  ;;  %v876_v20 = vsub.f32 1.0, %v861_v8  ;;  %v884_v23 = vmul.f32 %v882_v21, %v861_v8 }
0x11e2   :  { %v1136_v41 = vpop.permute.xlu1 %1135 }
0x11e3   :  { %v1138_v46 = vmul.f32 %v1136_v41, %v1133_v40 }
0x11e5   :  { %v3256_v47 = vadd.f32 %v1141_v25, %v1138_v46 }
0x11e7   :  { %v1144_v49 = vrot.slane %v3256_v47, 4 }
0x11e9   :  { %1145 = vrot.lane.b32.xlu2 %v1144_v49, %s2947_s15 }
0x11f1   :  { %871 = vrot.lane.b32.xlu2 %v869_v58, %s2945_s22 }
0x1243   :  { %v1146_v60 = vpop.permute.xlu2 %1145 }
0x1244   :  { %2460 = vmatmul.msk.f32.vlgmr.msrb.gmra.mxu3 %vm266_vm6, %v1146_v60 }
0x124b   :  { %v872_v62 = vpop.permute.xlu2 %871 }
0x124c   :  { %v874_v1 = vadd.f32 %v872_v62, %v3133_v17 }
0x124e   :  { %2565 = vtanh.f32 %v874_v1 }
0x1254   :  { %v2566_v3 = vpop.eup %2565 }
0x12c7   :  { %v1166_v63 = vpop.f32.mrf.mxu3 }
0x12c8   :  { %v1192_v0 = vadd.f32 %v1166_v63, %v3190_v57  ;;  %v1170_v56 = vrot.slane %v1166_v63, 2 }
0x12ca   :  { %v1194_v2 = vrot.slane %v1192_v0, 2  ;;  %v1172_v5 = vadd.f32 %v1170_v56, %v3197_v61 }
0x12cc   :  { %1195 = vrot.lane.b32.xlu1 %v1194_v2, %s2945_s22  ;;  %v2461_v6 = vmul.f32 -1.442695, %v1172_v5 }
0x12ce   :  { %2567 = vpow2.f32 %v2461_v6 }
0x12d4   :  { %878 = vrot.lane.b32.xlu1 %v2566_v3, %s2947_s15  ;;  %v2568_v7 = vpop.eup %2567 }
0x12d5   :  { %v1176_v10 = vadd.f32 1.0, %v2568_v7 }
0x12d7   :  { %2569 = vrcp.f32 %v1176_v10  ;;  %v1188_v44 = vand.u32 2147483648, %v1176_v10  ;;  %vm1182_vm12 = vweird.f32 %v1176_v10  ;;  %v1186_v39 = vand.u32 2147483647, %v1176_v10 }
0x12d9   :  { %v1189_v45 = vor.u32 1.1754944e-38, %v1188_v44  ;;  %vm1187_vm14 = vcmp.eq.f32.partialorder %v1186_v39, 8.507059e+37 }
0x12dc   :  { %807 = vrot.lane.b32.xlu1 %v3235_v42, %s2947_s15 }
0x12dd   :  { %v2570_v11 = vpop.eup %2569 }
0x12de   :  { %v1178_v17 = vmul.f32 %v2570_v11, %v1176_v10  ;;  %vm1183_vm5 = vweird.f32 %v2570_v11 }
0x12df   :  { %vm1184_vm13 = vmor %vm1182_vm12, %vm1183_vm5 }
0x12e0   :  { %v1179_v14 = vsub.f32 1.0, %v1178_v17 }
0x12e2   :  { %v1180_v13 = vmul.f32 %v2570_v11, %v1179_v14 }
0x12e4   :  { %v1181_v43 = vadd.f32 %v2570_v11, %v1180_v13 }
0x12e6   :  { %v1185_v15 = vsel %vm1184_vm13, %v2570_v11, %v1181_v43 }
0x12e7   :  { %v1190_v18 = vsel %vm1187_vm14, %v1189_v45, %v1185_v15 }
0x12e8   :  { %v1205_v30 = vsub.f32 1.0, %v1190_v18 }
0x133e   :  { %v1196_v16 = vpop.permute.xlu1 %1195 }
0x133f   :  { %v1198_v19 = vmul.f32 %v1196_v16, %v1190_v18 }
0x1341   :  { %1200 = vrot.lane.b32.xlu0 %v1198_v19, %s2945_s22 }
0x1346   :  { %v879_v22 = vpop.permute.xlu1 %878 }
0x1347   :  { %v881_v24 = vmul.f32 %v879_v22, %v876_v20 }
0x1349   :  { %v885_v25 = vadd.f32 %v884_v23, %v881_v24  ;;  %727 = vrot.lane.b32.xlu0 %v3208_v50, %s2947_s15  ;;  %v1211_v50 = vrot.slane %v3256_v47, 6 }
0x134b   :  { %1499 = vst.sshfl [vmem:[#allocation1] sm:$0xff pattern:$0x73625140] %v885_v25  ;;  %v1213_v32 = vmul.f32 %v1211_v50, %v1190_v18 }
0x134e   :  { %v808_v26 = vpop.permute.xlu1 %807 }
0x134f   :  { %810 = vst.msk [vmem:[#allocation3 + $0x8] sm:$0x30] %vm496_vm10, %v808_v26 }
0x1352   :  { %v3274_v27 = vld [vmem:[#allocation1 + $0x3] ss:$4 sm:$0xff] }
0x1353   :  { %1507 = vst.sshfl [vmem:[#allocation1] sm:$0xff pattern:$0x73625140] %v885_v25 }
0x13b3   :  { %v1201_v28 = vpop.permute.xlu0 %1200 }
0x13b4   :  { %v1203_v29 = vadd.f32 %v1201_v28, %v3197_v61 }
0x13b6   :  { %2571 = vtanh.f32 %v1203_v29 }
0x13bb   :  { %v728_v12 = vpop.permute.xlu0 %727 }
0x13bc   :  { %v2572_v42 = vpop.eup %2571  ;;  %730 = vst.msk [vmem:[#allocation3 + $0x8] sm:$0xc] %vm415_vm9, %v728_v12 }
0x13bd   :  { %1207 = vrot.lane.b32.xlu2 %v2572_v42, %s2947_s15 }
0x13c5   :  { %887 = vrot.lane.b32.xlu2 %v885_v25, %s2947_s15 }
0x1417   :  { %v1208_v31 = vpop.permute.xlu2 %1207 }
0x1418   :  { %v1210_v33 = vmul.f32 %v1208_v31, %v1205_v30 }
0x141a   :  { %v1214_v34 = vadd.f32 %v1213_v32, %v1210_v33 }
0x141c   :  { %v1216_v35 = vrot.slane %v1214_v34, 6 }
0x141e   :  { %1217 = vrot.lane.b32.xlu0 %v1216_v35, %s2947_s15 }
0x141f   :  { %v888_v61 = vpop.permute.xlu2 %887 }
0x1420   :  { %890 = vst.msk [vmem:[#allocation3 + $0x8] sm:$0xc0] %vm577_vm11, %v888_v61 }
0x1427   :  { %v892_v36 = vld [vmem:[#allocation3 + $0x8] sm:$0xff] }
0x1428   :  { %2454 = vmatmul.msk.f32.gmra.mxu2 %vm266_vm6, %v892_v36 }
0x1490   :  { %v1218_v37 = vpop.permute.xlu0 %1217 }
0x1491   :  { %2462 = vmatmul.msk.f32.vlgmr.msrb.gmra.mxu0 %vm266_vm6, %v1218_v37 }
0x14ab   :  { %v927_v40 = vpop.f32.mrf.mxu2 }
0x14ac   :  { %v3288_v41 = vadd.f32 %v3194_v59, %v927_v40 }
0x150e   :  { %v1238_v9 = vpop.f32.mrf.mxu0 }
0x150f   :  { %v1261_v38 = vadd.f32 %v1238_v9, %v3190_v57  ;;  %v1241_v4 = vadd.f32 %v1238_v9, %v3288_v41 }
0x1511   :  { %1263 = vrot.lane.b32.xlu1 %v1261_v38, %s2945_s22  ;;  %v2463_v46 = vmul.f32 -1.442695, %v1241_v4 }
0x1513   :  { %2573 = vpow2.f32 %v2463_v46 }
0x1519   :  { %v2574_v47 = vpop.eup %2573 }
0x151a   :  { %v1245_v48 = vadd.f32 1.0, %v2574_v47 }
0x151c   :  { %2575 = vrcp.f32 %v1245_v48  ;;  %v1257_v55 = vand.u32 2147483648, %v1245_v48  ;;  %vm1251_vm10 = vweird.f32 %v1245_v48  ;;  %v1255_v8 = vand.u32 2147483647, %v1245_v48 }
0x151e   :  { %v1258_v59 = vor.u32 1.1754944e-38, %v1257_v55  ;;  %vm1256_vm15 = vcmp.eq.f32.partialorder %v1255_v8, 8.507059e+37 }
0x1522   :  { %v2576_v49 = vpop.eup %2575 }
0x1523   :  { %v1247_v51 = vmul.f32 %v2576_v49, %v1245_v48  ;;  %vm1252_vm9 = vweird.f32 %v2576_v49 }
0x1524   :  { %vm1253_vm11 = vmor %vm1251_vm10, %vm1252_vm9  ;;  %vm1505_vm9 = vcmask 253952   ;;  %vm1513_vm10 = vcmask 516352  }
0x1525   :  { %v1248_v52 = vsub.f32 1.0, %v1247_v51 }
0x1527   :  { %v1249_v53 = vmul.f32 %v2576_v49, %v1248_v52 }
0x1529   :  { %v1250_v54 = vadd.f32 %v2576_v49, %v1249_v53 }
0x152b   :  { %v1254_v58 = vsel %vm1253_vm11, %v2576_v49, %v1250_v54  ;;  %vm1844_vm11 = vcmask 523264  }
0x152c   :  { %v1259_v62 = vsel %vm1256_vm15, %v1258_v59, %v1254_v58  ;;  %vm2400_vm15 = vcmask 812032  }
0x152d   :  { %v1273_v3 = vsub.f32 1.0, %v1259_v62  ;;  %v1280_v5 = vmul.f32 %v1259_v62, %v1216_v35 }
0x1583   :  { %v1264_v60 = vpop.permute.xlu1 %1263 }
0x1584   :  { %v1266_v63 = vmul.f32 %v1264_v60, %v1259_v62 }
0x1586   :  { %1268 = vrot.lane.b32.xlu2 %v1266_v63, %s2945_s22 }
0x15e0   :  { %v1269_v0 = vpop.permute.xlu2 %1268 }
0x15e1   :  { %v1271_v1 = vadd.f32 %v1269_v0, %v3288_v41 }
0x15e3   :  { %2577 = vtanh.f32 %v1271_v1 }
0x15e9   :  { %v2578_v2 = vpop.eup %2577 }
0x15ea   :  { %1275 = vrot.lane.b32.xlu0 %v2578_v2, %s2947_s15 }
0x165c   :  { %v1276_v56 = vpop.permute.xlu0 %1275 }
0x165d   :  { %v1278_v6 = vmul.f32 %v1276_v56, %v1273_v3 }
0x165f   :  { %v1281_v7 = vadd.f32 %v1280_v5, %v1278_v6 }
0x1661   :  { %1283 = vrot.lane.b32.xlu1 %v1281_v7, %s2947_s15  ;;  %v1349_v24 = vrot.slane %v1281_v7, 6 }
0x16d3   :  { %v1284_v10 = vpop.permute.xlu1 %1283 }
0x16d4   :  { %2464 = vmatmul.msk.f32.vlgmr.msra.gmra.mxu1 %vm266_vm6, %v1284_v10 }
0x1751   :  { %v1304_v11 = vpop.f32.mrf.mxu1 }
0x1752   :  { %v1308_v17 = vrot.slane %v1304_v11, 6  ;;  %v1330_v14 = vadd.f32 %v1304_v11, %v3190_v57 }
0x1754   :  { %v1310_v13 = vadd.f32 %v1308_v17, %v3288_v41  ;;  %v1332_v43 = vrot.slane %v1330_v14, 6 }
0x1756   :  { %v2465_v44 = vmul.f32 -1.442695, %v1310_v13  ;;  %1333 = vrot.lane.b32.xlu2 %v1332_v43, %s2945_s22 }
0x1758   :  { %2579 = vpow2.f32 %v2465_v44 }
0x175e   :  { %v2580_v39 = vpop.eup %2579 }
0x175f   :  { %v1314_v15 = vadd.f32 1.0, %v2580_v39 }
0x1761   :  { %2581 = vrcp.f32 %v1314_v15  ;;  %v1326_v19 = vand.u32 2147483648, %v1314_v15  ;;  %v1324_v21 = vand.u32 2147483647, %v1314_v15  ;;  %vm1320_vm2 = vweird.f32 %v1314_v15 }
0x1763   :  { %v1327_v23 = vor.u32 1.1754944e-38, %v1326_v19  ;;  %vm1325_vm0 = vcmp.eq.f32.partialorder %v1324_v21, 8.507059e+37 }
0x1767   :  { %v2582_v45 = vpop.eup %2581 }
0x1768   :  { %v1316_v16 = vmul.f32 %v2582_v45, %v1314_v15  ;;  %vm1321_vm1 = vweird.f32 %v2582_v45 }
0x1769   :  { %vm1322_vm3 = vmor %vm1320_vm2, %vm1321_vm1 }
0x176a   :  { %v1317_v18 = vsub.f32 1.0, %v1316_v16 }
0x176c   :  { %v1318_v20 = vmul.f32 %v2582_v45, %v1317_v18 }
0x176e   :  { %v1319_v22 = vadd.f32 %v2582_v45, %v1318_v20 }
0x1770   :  { %v1323_v25 = vsel %vm1322_vm3, %v2582_v45, %v1319_v22 }
0x1771   :  { %v1328_v26 = vsel %vm1325_vm0, %v1327_v23, %v1323_v25 }
0x1772   :  { %v1351_v28 = vmul.f32 %v1349_v24, %v1328_v26  ;;  %v1343_v31 = vsub.f32 1.0, %v1328_v26 }
0x17b0   :  { %v1334_v29 = vpop.permute.xlu2 %1333 }
0x17b1   :  { %v1336_v12 = vmul.f32 %v1334_v29, %v1328_v26 }
0x17b3   :  { %1338 = vrot.lane.b32.xlu0 %v1336_v12, %s2945_s22 }
0x1825   :  { %v1339_v42 = vpop.permute.xlu0 %1338 }
0x1826   :  { %v1341_v50 = vadd.f32 %v1339_v42, %v3288_v41  ;;  %v1720_v42 = vld [vmem:[#allocation19 + $0x5e0] sm:$0xff] }
0x1827   :  { %1887 = vmatpush.msra.mxu2 %v1720_v42  ;;  %v1713_v42 = vld [vmem:[#allocation19 + $0x5a8] sm:$0xff] }
0x1828   :  { %2583 = vtanh.f32 %v1341_v50  ;;  %v1784_v50 = vld [vmem:[#allocation19 + $0x7e0] sm:$0xff] }
0x1829   :  { %1907 = vmatpush.msrb.mxu3 %v1784_v50  ;;  %v1645_v50 = vld [vmem:[#allocation19 + $0x388] sm:$0xff] }
0x182e   :  { %v2584_v30 = vpop.eup %2583 }
0x182f   :  { %1345 = vrot.lane.b32.xlu1 %v2584_v30, %s2947_s15  ;;  %v1716_v30 = vld [vmem:[#allocation19 + $0x5c0] sm:$0xff] }
0x1830   :  { %1888 = vmatpush.msra.mxu2 %v1716_v30  ;;  %v1709_v30 = vld [vmem:[#allocation19 + $0x588] sm:$0xff] }
0x18a1   :  { %v1346_v32 = vpop.permute.xlu1 %1345 }
0x18a2   :  { %v1348_v33 = vmul.f32 %v1346_v32, %v1343_v31  ;;  %v1780_v31 = vld [vmem:[#allocation19 + $0x7c0] sm:$0xff] }
0x18a3   :  { %v1712_v32 = vld [vmem:[#allocation19 + $0x5a0] sm:$0xff]  ;;  %1908 = vmatpush.msrb.mxu3 %v1780_v31  ;;  %v1641_v31 = vld [vmem:[#allocation19 + $0x368] sm:$0xff] }
0x18a4   :  { %v1352_v34 = vadd.f32 %v1351_v28, %v1348_v33  ;;  %v1509_v28 = vld [vmem:[#allocation1 + $0x3] ss:$4 sm:$0xff]  ;;  %1889 = vmatpush.msra.mxu2 %v1712_v32 }
0x18a5   :  { %v2470_v29 = vrot.slane %v1509_v28, 9  ;;  %v1776_v33 = vld [vmem:[#allocation19 + $0x7a0] sm:$0xff]  ;;  %v1705_v32 = vld [vmem:[#allocation19 + $0x568] sm:$0xff] }
0x18a6   :  { %v1354_v35 = vrot.slane %v1352_v34, 2  ;;  %v1421_v2 = vrot.slane %v1352_v34, 6  ;;  %v1656_v34 = vld [vmem:[#allocation19 + $0x3e0] sm:$0xff]  ;;  %1909 = vmatpush.msrb.mxu3 %v1776_v33 }
0x18a7   :  { %1867 = vmatpush.msrb.mxu1 %v1656_v34  ;;  %v1596_v28 = vld [vmem:[#allocation19 + $0x200] sm:$0xff]  ;;  %v1589_v34 = vld [vmem:[#allocation19 + $0x1c8] sm:$0xff] }
0x18a8   :  { %1355 = vrot.lane.b32.xlu2 %v1354_v35, %s2947_s15  ;;  %v1652_v35 = vld [vmem:[#allocation19 + $0x3c0] sm:$0xff] }
0x18a9   :  { %1868 = vmatpush.msrb.mxu1 %v1652_v35  ;;  %v1572_v33 = vld [vmem:[#allocation19 + $0x140] sm:$0xff]  ;;  %v1637_v35 = vld [vmem:[#allocation19 + $0x348] sm:$0xff] }
0x1902   :  { %v1356_v61 = vpop.permute.xlu2 %1355 }
0x1903   :  { %2466 = vmatmul.msk.f32.vlgmr.msrb.gmra.mxu2 %vm266_vm6, %v1356_v61  ;;  %v1708_v61 = vld [vmem:[#allocation19 + $0x580] sm:$0xff] }
0x1904   :  { %1890 = vmatpush.msra.mxu2 %v1708_v61  ;;  %v1701_v61 = vld [vmem:[#allocation19 + $0x548] sm:$0xff] }
0x1986   :  { %v1376_v36 = vpop.f32.mrf.mxu2 }
0x1987   :  { %v1402_v37 = vadd.f32 %v1376_v36, %v3190_v57  ;;  %v1380_v38 = vrot.slane %v1376_v36, 4  ;;  %v1772_v36 = vld [vmem:[#allocation19 + $0x780] sm:$0xff] }
0x1988   :  { %1910 = vmatpush.msrb.mxu3 %v1772_v36  ;;  %v1568_v36 = vld [vmem:[#allocation19 + $0x120] sm:$0xff] }
0x1989   :  { %v1404_v9 = vrot.slane %v1402_v37, 4  ;;  %v1382_v40 = vadd.f32 %v1380_v38, %v3288_v41  ;;  %v1648_v37 = vld [vmem:[#allocation19 + $0x3a0] sm:$0xff] }
0x198a   :  { %v1768_v38 = vld [vmem:[#allocation19 + $0x760] sm:$0xff]  ;;  %1869 = vmatpush.msrb.mxu1 %v1648_v37  ;;  %v1585_v37 = vld [vmem:[#allocation19 + $0x1a8] sm:$0xff] }
0x198b   :  { %1405 = vrot.lane.b32.xlu0 %v1404_v9, %s2945_s22  ;;  %v2467_v4 = vmul.f32 -1.442695, %v1382_v40  ;;  %v1704_v9 = vld [vmem:[#allocation19 + $0x560] sm:$0xff]  ;;  %1911 = vmatpush.msrb.mxu3 %v1768_v38  ;;  %v1697_v38 = vld [vmem:[#allocation19 + $0x528] sm:$0xff] }
0x198c   :  { %v1644_v40 = vld [vmem:[#allocation19 + $0x380] sm:$0xff]  ;;  %1891 = vmatpush.msra.mxu2 %v1704_v9  ;;  %v1633_v9 = vld [vmem:[#allocation19 + $0x328] sm:$0xff] }
0x198d   :  { %2585 = vpow2.f32 %v2467_v4  ;;  %v1700_v4 = vld [vmem:[#allocation19 + $0x540] sm:$0xff]  ;;  %1870 = vmatpush.msrb.mxu1 %v1644_v40 }
0x198e   :  { %1892 = vmatpush.msra.mxu2 %v1700_v4  ;;  %v1564_v40 = vld [vmem:[#allocation19 + $0x100] sm:$0xff]  ;;  %v1581_v4 = vld [vmem:[#allocation19 + $0x188] sm:$0xff] }
0x1993   :  { %v2586_v46 = vpop.eup %2585 }
0x1994   :  { %v1386_v47 = vadd.f32 1.0, %v2586_v46  ;;  %v1764_v46 = vld [vmem:[#allocation19 + $0x740] sm:$0xff] }
0x1995   :  { %1912 = vmatpush.msrb.mxu3 %v1764_v46  ;;  %v1629_v46 = vld [vmem:[#allocation19 + $0x308] sm:$0xff] }
0x1996   :  { %2587 = vrcp.f32 %v1386_v47  ;;  %v1398_v54 = vand.u32 2147483648, %v1386_v47  ;;  %vm1392_vm7 = vweird.f32 %v1386_v47  ;;  %v1396_v55 = vand.u32 2147483647, %v1386_v47 }
0x1998   :  { %v1399_v58 = vor.u32 1.1754944e-38, %v1398_v54  ;;  %vm1397_vm5 = vcmp.eq.f32.partialorder %v1396_v55, 8.507059e+37  ;;  %v1632_v54 = vld [vmem:[#allocation19 + $0x320] sm:$0xff] }
0x1999   :  { %v1688_v55 = vld [vmem:[#allocation19 + $0x4e0] sm:$0xff] }
0x199c   :  { %v2588_v48 = vpop.eup %2587 }
0x199d   :  { %v1388_v49 = vmul.f32 %v2588_v48, %v1386_v47  ;;  %vm1393_vm4 = vweird.f32 %v2588_v48  ;;  %v1640_v47 = vld [vmem:[#allocation19 + $0x360] sm:$0xff] }
0x199e   :  { %vm1394_vm8 = vmor %vm1392_vm7, %vm1393_vm4  ;;  %1871 = vmatpush.msrb.mxu1 %v1640_v47  ;;  %v1693_v47 = vld [vmem:[#allocation19 + $0x508] sm:$0xff] }
0x199f   :  { %v1389_v51 = vsub.f32 1.0, %v1388_v49  ;;  %v1760_v49 = vld [vmem:[#allocation19 + $0x720] sm:$0xff] }
0x19a0   :  { %1913 = vmatpush.msrb.mxu3 %v1760_v49  ;;  %v1577_v49 = vld [vmem:[#allocation19 + $0x168] sm:$0xff] }
0x19a1   :  { %v1390_v52 = vmul.f32 %v2588_v48, %v1389_v51  ;;  %v1636_v51 = vld [vmem:[#allocation19 + $0x340] sm:$0xff] }
0x19a2   :  { %1872 = vmatpush.msrb.mxu1 %v1636_v51  ;;  %v1625_v51 = vld [vmem:[#allocation19 + $0x2e8] sm:$0xff] }
0x19a3   :  { %v1391_v53 = vadd.f32 %v2588_v48, %v1390_v52  ;;  %v1692_v52 = vld [vmem:[#allocation19 + $0x500] sm:$0xff] }
0x19a4   :  { %1873 = vmatpush.msrb.mxu1 %v1632_v54  ;;  %v1573_v54 = vld [vmem:[#allocation19 + $0x148] sm:$0xff] }
0x19a5   :  { %v1395_v8 = vsel %vm1394_vm8, %v2588_v48, %v1391_v53  ;;  %v1696_v48 = vld [vmem:[#allocation19 + $0x520] sm:$0xff] }
0x19a6   :  { %v1400_v60 = vsel %vm1397_vm5, %v1399_v58, %v1395_v8  ;;  %v1756_v53 = vld [vmem:[#allocation19 + $0x700] sm:$0xff]  ;;  %1893 = vmatpush.msra.mxu2 %v1696_v48 }
0x19a7   :  { %v1415_v3 = vsub.f32 1.0, %v1400_v60  ;;  %v1423_v5 = vmul.f32 %v1421_v2, %v1400_v60  ;;  %v1752_v8 = vld [vmem:[#allocation19 + $0x6e0] sm:$0xff]  ;;  %1914 = vmatpush.msrb.mxu3 %v1756_v53 }
0x19a8   :  { %v1592_v58 = vld [vmem:[#allocation19 + $0x1e0] sm:$0xff]  ;;  %1894 = vmatpush.msra.mxu2 %v1692_v52  ;;  %v1689_v52 = vld [vmem:[#allocation19 + $0x4e8] sm:$0xff] }
0x19a9   :  { %1847 = vmatpush.msra.mxu0 %v1592_v58  ;;  %1915 = vmatpush.msrb.mxu3 %v1752_v8  ;;  %v1680_v2 = vld [vmem:[#allocation19 + $0x4a0] sm:$0xff]  ;;  %v1685_v8 = vld [vmem:[#allocation19 + $0x4c8] sm:$0xff] }
0x19aa   :  { %1895 = vmatpush.msra.mxu2 %v1688_v55  ;;  %v1560_v48 = vld [vmem:[#allocation19 + $0xe0] sm:$0xff]  ;;  %v1621_v55 = vld [vmem:[#allocation19 + $0x2c8] sm:$0xff] }
0x19ab   :  { %v1556_v53 = vld [vmem:[#allocation19 + $0xc0] sm:$0xff] }
0x19ac   :  { %v1552_v58 = vld [vmem:[#allocation19 + $0xa0] sm:$0xff] }
0x19fd   :  { %v1406_v59 = vpop.permute.xlu0 %1405 }
0x19fe   :  { %v1408_v62 = vmul.f32 %v1406_v59, %v1400_v60  ;;  %v1628_v59 = vld [vmem:[#allocation19 + $0x300] sm:$0xff] }
0x19ff   :  { %v1684_v60 = vld [vmem:[#allocation19 + $0x4c0] sm:$0xff]  ;;  %1874 = vmatpush.msrb.mxu1 %v1628_v59  ;;  %v1569_v59 = vld [vmem:[#allocation19 + $0x128] sm:$0xff] }
0x1a00   :  { %1410 = vrot.lane.b32.xlu1 %v1408_v62, %s2945_s22  ;;  %v1748_v62 = vld [vmem:[#allocation19 + $0x6c0] sm:$0xff]  ;;  %1896 = vmatpush.msra.mxu2 %v1684_v60  ;;  %v1617_v60 = vld [vmem:[#allocation19 + $0x2a8] sm:$0xff] }
0x1a01   :  { %1916 = vmatpush.msrb.mxu3 %v1748_v62  ;;  %v1681_v62 = vld [vmem:[#allocation19 + $0x4a8] sm:$0xff] }
0x1a02   :  { %1897 = vmatpush.msra.mxu2 %v1680_v2  ;;  %v1613_v2 = vld [vmem:[#allocation19 + $0x288] sm:$0xff] }
0x1a72   :  { %v1411_v63 = vpop.permute.xlu1 %1410 }
0x1a73   :  { %v1413_v0 = vadd.f32 %v1411_v63, %v3288_v41  ;;  %v1588_v63 = vld [vmem:[#allocation19 + $0x1c0] sm:$0xff] }
0x1a74   :  { %1848 = vmatpush.msra.mxu0 %v1588_v63  ;;  %v1548_v63 = vld [vmem:[#allocation19 + $0x80] sm:$0xff] }
0x1a75   :  { %2589 = vtanh.f32 %v1413_v0  ;;  %v1624_v0 = vld [vmem:[#allocation19 + $0x2e0] sm:$0xff] }
0x1a76   :  { %1875 = vmatpush.msrb.mxu1 %v1624_v0  ;;  %v1565_v0 = vld [vmem:[#allocation19 + $0x108] sm:$0xff] }
0x1a7b   :  { %v2590_v1 = vpop.eup %2589 }
0x1a7c   :  { %1417 = vrot.lane.b32.xlu2 %v2590_v1, %s2947_s15  ;;  %v1584_v1 = vld [vmem:[#allocation19 + $0x1a0] sm:$0xff] }
0x1a7d   :  { %1849 = vmatpush.msra.mxu0 %v1584_v1  ;;  %v1497_v1 = vld [vmem:[#allocation4] sm:$0xff] }
0x1ad6   :  { %v1418_v56 = vpop.permute.xlu2 %1417 }
0x1ad7   :  { %v1420_v6 = vmul.f32 %v1418_v56, %v1415_v3  ;;  %v1744_v3 = vld [vmem:[#allocation19 + $0x6a0] sm:$0xff] }
0x1ad8   :  { %v1620_v56 = vld [vmem:[#allocation19 + $0x2c0] sm:$0xff]  ;;  %1917 = vmatpush.msrb.mxu3 %v1744_v3  ;;  %v1677_v3 = vld [vmem:[#allocation19 + $0x488] sm:$0xff] }
0x1ad9   :  { %v3310_v7 = vadd.f32 %v1423_v5, %v1420_v6  ;;  %v1580_v5 = vld [vmem:[#allocation19 + $0x180] sm:$0xff]  ;;  %1876 = vmatpush.msrb.mxu1 %v1620_v56 }
0x1ada   :  { %v1676_v6 = vld [vmem:[#allocation19 + $0x480] sm:$0xff]  ;;  %1850 = vmatpush.msra.mxu0 %v1580_v5  ;;  %v1561_v5 = vld [vmem:[#allocation19 + $0xe8] sm:$0xff] }
0x1adb   :  { %v1426_v10 = vrot.slane %v3310_v7, 4  ;;  %1898 = vmatpush.msra.mxu2 %v1676_v6  ;;  %v1544_v56 = vld [vmem:[#allocation19 + $0x60] sm:$0xff]  ;;  %v1609_v6 = vld [vmem:[#allocation19 + $0x268] sm:$0xff] }
0x1add   :  { %1427 = vrot.lane.b32.xlu0 %v1426_v10, %s2947_s15  ;;  %v1740_v10 = vld [vmem:[#allocation19 + $0x680] sm:$0xff] }
0x1ade   :  { %1918 = vmatpush.msrb.mxu3 %v1740_v10  ;;  %v1673_v10 = vld [vmem:[#allocation19 + $0x468] sm:$0xff] }
0x1b4f   :  { %v1428_v11 = vpop.permute.xlu0 %1427 }
0x1b50   :  { %2468 = vmatmul.msk.f32.vlgmr.msra.gmra.mxu3 %vm266_vm6, %v1428_v11  ;;  %v1616_v11 = vld [vmem:[#allocation19 + $0x2a0] sm:$0xff] }
0x1b51   :  { %1877 = vmatpush.msrb.mxu1 %v1616_v11  ;;  %v1540_v11 = vld [vmem:[#allocation19 + $0x40] sm:$0xff] }
0x1bd3   :  { %v1448_v17 = vpop.f32.mrf.mxu3 }
0x1bd4   :  { %v1474_v14 = vadd.f32 %v1448_v17, %v3190_v57  ;;  %v1452_v43 = vrot.slane %v1448_v17, 2  ;;  %v1576_v17 = vld [vmem:[#allocation19 + $0x160] sm:$0xff] }
0x1bd5   :  { %1851 = vmatpush.msra.mxu0 %v1576_v17  ;;  %v1557_v17 = vld [vmem:[#allocation19 + $0xc8] sm:$0xff] }
0x1bd6   :  { %v1476_v13 = vrot.slane %v1474_v14, 2  ;;  %v1454_v44 = vadd.f32 %v1452_v43, %v3288_v41  ;;  %v1736_v43 = vld [vmem:[#allocation19 + $0x660] sm:$0xff] }
0x1bd7   :  { %1919 = vmatpush.msrb.mxu3 %v1736_v43  ;;  %1852 = vmatpush.msra.mxu0 %v1572_v33  ;;  %v1536_v43 = vld [vmem:[#allocation19 + $0x20] sm:$0xff]  ;;  %v1586_v33 = vld [vmem:[#allocation19 + $0x1b0] sm:$0xff] }
0x1bd8   :  { %1477 = vrot.lane.b32.xlu1 %v1476_v13, %s2945_s22  ;;  %v2469_v39 = vmul.f32 -1.442695, %v1454_v44  ;;  %v1672_v13 = vld [vmem:[#allocation19 + $0x460] sm:$0xff] }
0x1bd9   :  { %1899 = vmatpush.msra.mxu2 %v1672_v13  ;;  %1853 = vmatpush.msra.mxu0 %v1568_v36  ;;  %v1669_v13 = vld [vmem:[#allocation19 + $0x448] sm:$0xff]  ;;  %v1578_v36 = vld [vmem:[#allocation19 + $0x170] sm:$0xff] }
0x1bda   :  { %2591 = vpow2.f32 %v2469_v39  ;;  %v1612_v39 = vld [vmem:[#allocation19 + $0x280] sm:$0xff] }
0x1bdb   :  { %1878 = vmatpush.msrb.mxu1 %v1612_v39  ;;  %1854 = vmatpush.msra.mxu0 %v1564_v40  ;;  %v1601_v39 = vld [vmem:[#allocation19 + $0x228] sm:$0xff]  ;;  %v1570_v40 = vld [vmem:[#allocation19 + $0x130] sm:$0xff] }
0x1bdd   :  { %1855 = vmatpush.msra.mxu0 %v1560_v48  ;;  %v1562_v48 = vld [vmem:[#allocation19 + $0xf0] sm:$0xff] }
0x1bdf   :  { %1856 = vmatpush.msra.mxu0 %v1556_v53  ;;  %v1554_v53 = vld [vmem:[#allocation19 + $0xb0] sm:$0xff] }
0x1be0   :  { %1502 = vrot.lane.b32.xlu1 %v3274_v27, %s2947_s15  ;;  %v2592_v15 = vpop.eup %2591 }
0x1be1   :  { %v1458_v45 = vadd.f32 1.0, %v2592_v15  ;;  %v1668_v15 = vld [vmem:[#allocation19 + $0x440] sm:$0xff]  ;;  %1857 = vmatpush.msra.mxu0 %v1552_v58 }
0x1be2   :  { %1900 = vmatpush.msra.mxu2 %v1668_v15  ;;  %v1665_v15 = vld [vmem:[#allocation19 + $0x428] sm:$0xff]  ;;  %v1816_v58 = vld [vmem:[#allocation19 + $0x8e0] sm:$0xff] }
0x1be3   :  { %2593 = vrcp.f32 %v1458_v45  ;;  %v1470_v57 = vand.u32 2147483648, %v1458_v45  ;;  %vm1464_vm12 = vweird.f32 %v1458_v45  ;;  %v1468_v22 = vand.u32 2147483647, %v1458_v45  ;;  %1858 = vmatpush.msra.mxu0 %v1548_v63  ;;  %v1542_v63 = vld [vmem:[#allocation19 + $0x50] sm:$0xff] }
0x1be5   :  { %v1471_v27 = vor.u32 1.1754944e-38, %v1470_v57  ;;  %vm1469_vm14 = vcmp.eq.f32.partialorder %v1468_v22, 8.507059e+37  ;;  %v1724_v57 = vld [vmem:[#allocation19 + $0x600] sm:$0xff]  ;;  %v1721_v22 = vld [vmem:[#allocation19 + $0x5e8] sm:$0xff]  ;;  %1859 = vmatpush.msra.mxu0 %v1544_v56 }
0x1be6   :  { %v1804_v56 = vld [vmem:[#allocation19 + $0x880] sm:$0xff] }
0x1be7   :  { %1860 = vmatpush.msra.mxu0 %v1540_v11  ;;  %v1595_v11 = vld [vmem:[#allocation19 + $0x1f8] sm:$0xff] }
0x1be9   :  { %v2594_v16 = vpop.eup %2593  ;;  %1861 = vmatpush.msra.mxu0 %v1536_v43  ;;  %v1587_v43 = vld [vmem:[#allocation19 + $0x1b8] sm:$0xff] }
0x1bea   :  { %v1460_v18 = vmul.f32 %v2594_v16, %v1458_v45  ;;  %vm1465_vm6 = vweird.f32 %v2594_v16  ;;  %v1732_v45 = vld [vmem:[#allocation19 + $0x640] sm:$0xff] }
0x1beb   :  { %vm1466_vm13 = vmor %vm1464_vm12, %vm1465_vm6  ;;  %1920 = vmatpush.msrb.mxu3 %v1732_v45  ;;  %v1532_v45 = vld [vmem:[#allocation19] sm:$0xff] }
0x1bec   :  { %v1461_v19 = vsub.f32 1.0, %v1460_v18  ;;  %v1664_v18 = vld [vmem:[#allocation19 + $0x420] sm:$0xff]  ;;  %1862 = vmatpush.msra.mxu0 %v1532_v45  ;;  %v1579_v45 = vld [vmem:[#allocation19 + $0x178] sm:$0xff] }
0x1bed   :  { %1901 = vmatpush.msra.mxu2 %v1664_v18  ;;  %v1597_v18 = vld [vmem:[#allocation19 + $0x208] sm:$0xff] }
0x1bee   :  { %v1462_v20 = vmul.f32 %v2594_v16, %v1461_v19  ;;  %v1728_v19 = vld [vmem:[#allocation19 + $0x620] sm:$0xff]  ;;  %1935 = vmatpush.msrb.mxu0 %v1816_v58  ;;  %v1815_v58 = vld [vmem:[#allocation19 + $0x8d8] sm:$0xff] }
0x1bef   :  { %1921 = vmatpush.msrb.mxu3 %v1728_v19  ;;  %v1661_v19 = vld [vmem:[#allocation19 + $0x408] sm:$0xff] }
0x1bf0   :  { %v1463_v21 = vadd.f32 %v2594_v16, %v1462_v20  ;;  %v1604_v20 = vld [vmem:[#allocation19 + $0x240] sm:$0xff] }
0x1bf1   :  { %1922 = vmatpush.msrb.mxu3 %v1724_v57  ;;  %v1537_v57 = vld [vmem:[#allocation19 + $0x28] sm:$0xff] }
0x1bf2   :  { %v1467_v23 = vsel %vm1466_vm13, %v2594_v16, %v1463_v21  ;;  %v1608_v16 = vld [vmem:[#allocation19 + $0x260] sm:$0xff] }
0x1bf3   :  { %v3320_v25 = vsel %vm1469_vm14, %v1471_v27, %v1467_v23  ;;  %v1660_v21 = vld [vmem:[#allocation19 + $0x400] sm:$0xff]  ;;  %1879 = vmatpush.msrb.mxu1 %v1608_v16  ;;  %1987 = vmatpush.msra.mxu3 %v1721_v22  ;;  %v1549_v16 = vld [vmem:[#allocation19 + $0x88] sm:$0xff]  ;;  %v1493_v22 = vrot.slane %v3310_v7, 6 }
0x1bf4   :  { %v1600_v23 = vld [vmem:[#allocation19 + $0x220] sm:$0xff]  ;;  %1902 = vmatpush.msra.mxu2 %v1660_v21  ;;  %v1541_v21 = vld [vmem:[#allocation19 + $0x48] sm:$0xff] }
0x1bf5   :  { %1880 = vmatpush.msrb.mxu1 %v1604_v20  ;;  %v1545_v20 = vld [vmem:[#allocation19 + $0x68] sm:$0xff] }
0x1bf7   :  { %1881 = vmatpush.msrb.mxu1 %v1600_v23  ;;  %v1487_v23 = vsub.f32 1.0, %v3320_v25 }
0x1bf9   :  { %1882 = vmatpush.msrb.mxu1 %v1596_v28 }
0x1c4a   :  { %v1478_v24 = vpop.permute.xlu1 %1477 }
0x1c4b   :  { %v1480_v26 = vmul.f32 %v1478_v24, %v3320_v25  ;;  %v1653_v24 = vld [vmem:[#allocation19 + $0x3c8] sm:$0xff] }
0x1c4d   :  { %1482 = vrot.lane.b32.xlu2 %v1480_v26, %s2945_s22  ;;  %v1717_v26 = vld [vmem:[#allocation19 + $0x5c8] sm:$0xff] }
0x1c4e   :  { %1988 = vmatpush.msra.mxu3 %v1717_v26 }
0x1c50   :  { %1989 = vmatpush.msra.mxu3 %v1713_v42  ;;  %v1658_v42 = vld [vmem:[#allocation19 + $0x3f0] sm:$0xff] }
0x1c52   :  { %v1503_v12 = vpop.permute.xlu1 %1502  ;;  %1990 = vmatpush.msra.mxu3 %v1709_v30 }
0x1c53   :  { %1506 = vst.msk [vmem:[#allocation2 + $0x8] sm:$0x1] %vm1505_vm9, %v1503_v12  ;;  %v1593_v12 = vld [vmem:[#allocation19 + $0x1e8] sm:$0xff] }
0x1c54   :  { %1514 = vst.msk [vmem:[#allocation2 + $0x8] sm:$0x1] %vm1513_vm10, %v2470_v29  ;;  %v1649_v29 = vld [vmem:[#allocation19 + $0x3a8] sm:$0xff]  ;;  %1947 = vmatpush.msra.mxu1 %v1593_v12  ;;  %1991 = vmatpush.msra.mxu3 %v1705_v32  ;;  %v1594_v12 = vld [vmem:[#allocation19 + $0x1f0] sm:$0xff] }
0x1c55   :  { %v1654_v32 = vld [vmem:[#allocation19 + $0x3d0] sm:$0xff] }
0x1c56   :  { %1948 = vmatpush.msra.mxu1 %v1589_v34  ;;  %1992 = vmatpush.msra.mxu3 %v1701_v61  ;;  %v1650_v34 = vld [vmem:[#allocation19 + $0x3b0] sm:$0xff] }
0x1c57   :  { %v1646_v61 = vld [vmem:[#allocation19 + $0x390] sm:$0xff] }
0x1c58   :  { %1949 = vmatpush.msra.mxu1 %v1585_v37  ;;  %1993 = vmatpush.msra.mxu3 %v1697_v38  ;;  %v1642_v37 = vld [vmem:[#allocation19 + $0x370] sm:$0xff] }
0x1c59   :  { %v1638_v38 = vld [vmem:[#allocation19 + $0x350] sm:$0xff] }
0x1c5a   :  { %1950 = vmatpush.msra.mxu1 %v1581_v4  ;;  %1994 = vmatpush.msra.mxu3 %v1693_v47  ;;  %v1634_v4 = vld [vmem:[#allocation19 + $0x330] sm:$0xff] }
0x1c5b   :  { %v1630_v47 = vld [vmem:[#allocation19 + $0x310] sm:$0xff] }
0x1c5c   :  { %1951 = vmatpush.msra.mxu1 %v1577_v49  ;;  %1995 = vmatpush.msra.mxu3 %v1689_v52  ;;  %v1626_v49 = vld [vmem:[#allocation19 + $0x2f0] sm:$0xff] }
0x1c5d   :  { %v1622_v52 = vld [vmem:[#allocation19 + $0x2d0] sm:$0xff] }
0x1c5e   :  { %1952 = vmatpush.msra.mxu1 %v1573_v54  ;;  %1996 = vmatpush.msra.mxu3 %v1685_v8  ;;  %v1618_v54 = vld [vmem:[#allocation19 + $0x2b0] sm:$0xff] }
0x1c5f   :  { %v1614_v8 = vld [vmem:[#allocation19 + $0x290] sm:$0xff] }
0x1c60   :  { %1953 = vmatpush.msra.mxu1 %v1569_v59  ;;  %1997 = vmatpush.msra.mxu3 %v1681_v62  ;;  %v1546_v59 = vld [vmem:[#allocation19 + $0x70] sm:$0xff]  ;;  %v1812_v62 = vld [vmem:[#allocation19 + $0x8c0] sm:$0xff] }
0x1c61   :  { %1936 = vmatpush.msrb.mxu0 %v1812_v62  ;;  %v1789_v62 = vld [vmem:[#allocation19 + $0x808] sm:$0xff] }
0x1c62   :  { %1954 = vmatpush.msra.mxu1 %v1565_v0  ;;  %1998 = vmatpush.msra.mxu3 %v1677_v3  ;;  %v1606_v0 = vld [vmem:[#allocation19 + $0x250] sm:$0xff] }
0x1c63   :  { %v1602_v3 = vld [vmem:[#allocation19 + $0x230] sm:$0xff] }
0x1c64   :  { %1955 = vmatpush.msra.mxu1 %v1561_v5  ;;  %1999 = vmatpush.msra.mxu3 %v1673_v10  ;;  %v1534_v5 = vld [vmem:[#allocation19 + $0x10] sm:$0xff]  ;;  %v1800_v10 = vld [vmem:[#allocation19 + $0x860] sm:$0xff] }
0x1c66   :  { %1956 = vmatpush.msra.mxu1 %v1557_v17  ;;  %2000 = vmatpush.msra.mxu3 %v1669_v13  ;;  %v1591_v17 = vld [vmem:[#allocation19 + $0x1d8] sm:$0xff]  ;;  %v1792_v13 = vld [vmem:[#allocation19 + $0x820] sm:$0xff] }
0x1c68   :  { %2001 = vmatpush.msra.mxu3 %v1665_v15  ;;  %v1785_v15 = vld [vmem:[#allocation19 + $0x7e8] sm:$0xff] }
0x1c6a   :  { %2002 = vmatpush.msra.mxu3 %v1661_v19  ;;  %v1777_v19 = vld [vmem:[#allocation19 + $0x7a8] sm:$0xff] }
0x1ca7   :  { %v1483_v14 = vpop.permute.xlu2 %1482 }
0x1ca8   :  { %v1485_v44 = vadd.f32 %v1483_v14, %v3288_v41  ;;  %v1657_v41 = vld [vmem:[#allocation19 + $0x3e8] sm:$0xff] }
0x1ca9   :  { %1967 = vmatpush.msrb.mxu2 %v1657_v41  ;;  %v1605_v14 = vld [vmem:[#allocation19 + $0x248] sm:$0xff] }
0x1caa   :  { %2595 = vtanh.f32 %v1485_v44  ;;  %v1553_v44 = vld [vmem:[#allocation19 + $0xa8] sm:$0xff] }
0x1cab   :  { %1968 = vmatpush.msrb.mxu2 %v1653_v24  ;;  %1957 = vmatpush.msra.mxu1 %v1553_v44  ;;  %v1533_v41 = vld [vmem:[#allocation19 + $0x8] sm:$0xff]  ;;  %v1495_v24 = vmul.f32 %v1493_v22, %v3320_v25  ;;  %v1788_v44 = vld [vmem:[#allocation19 + $0x800] sm:$0xff]  ;;  %v1563_v22 = vld [vmem:[#allocation19 + $0xf8] sm:$0xff] }
0x1cad   :  { %1969 = vmatpush.msrb.mxu2 %v1649_v29  ;;  %1958 = vmatpush.msra.mxu1 %v1549_v16  ;;  %v1781_v16 = vld [vmem:[#allocation19 + $0x7c8] sm:$0xff] }
0x1caf   :  { %1970 = vmatpush.msrb.mxu2 %v1645_v50  ;;  %1959 = vmatpush.msra.mxu1 %v1545_v20  ;;  %v1571_v20 = vld [vmem:[#allocation19 + $0x138] sm:$0xff] }
0x1cb0   :  { %v2596_v27 = vpop.eup %2595 }
0x1cb1   :  { %1489 = vrot.lane.b32.xlu0 %v2596_v27, %s2947_s15  ;;  %1971 = vmatpush.msrb.mxu2 %v1641_v31  ;;  %v1590_v31 = vld [vmem:[#allocation19 + $0x1d0] sm:$0xff] }
0x1cb2   :  { %1960 = vmatpush.msra.mxu1 %v1541_v21  ;;  %v1773_v21 = vld [vmem:[#allocation19 + $0x788] sm:$0xff] }
0x1cb3   :  { %1972 = vmatpush.msrb.mxu2 %v1637_v35  ;;  %v1582_v35 = vld [vmem:[#allocation19 + $0x190] sm:$0xff] }
0x1cb4   :  { %1961 = vmatpush.msra.mxu1 %v1537_v57  ;;  %v1567_v57 = vld [vmem:[#allocation19 + $0x118] sm:$0xff] }
0x1cb5   :  { %1973 = vmatpush.msrb.mxu2 %v1633_v9  ;;  %v1574_v9 = vld [vmem:[#allocation19 + $0x150] sm:$0xff] }
0x1cb6   :  { %1962 = vmatpush.msra.mxu1 %v1533_v41  ;;  %v1769_v41 = vld [vmem:[#allocation19 + $0x768] sm:$0xff] }
0x1cb7   :  { %1974 = vmatpush.msrb.mxu2 %v1629_v46  ;;  %v1566_v46 = vld [vmem:[#allocation19 + $0x110] sm:$0xff] }
0x1cb9   :  { %1975 = vmatpush.msrb.mxu2 %v1625_v51  ;;  %v1558_v51 = vld [vmem:[#allocation19 + $0xd0] sm:$0xff] }
0x1cbb   :  { %1976 = vmatpush.msrb.mxu2 %v1621_v55  ;;  %v1550_v55 = vld [vmem:[#allocation19 + $0x90] sm:$0xff] }
0x1cbd   :  { %1977 = vmatpush.msrb.mxu2 %v1617_v60  ;;  %v1610_v60 = vld [vmem:[#allocation19 + $0x270] sm:$0xff] }
0x1cbf   :  { %1978 = vmatpush.msrb.mxu2 %v1613_v2  ;;  %v1538_v2 = vld [vmem:[#allocation19 + $0x30] sm:$0xff] }
0x1cc1   :  { %1979 = vmatpush.msrb.mxu2 %v1609_v6  ;;  %v1598_v6 = vld [vmem:[#allocation19 + $0x210] sm:$0xff] }
0x1cc3   :  { %1980 = vmatpush.msrb.mxu2 %v1605_v14  ;;  %v1796_v14 = vld [vmem:[#allocation19 + $0x840] sm:$0xff] }
0x1cc5   :  { %1981 = vmatpush.msrb.mxu2 %v1601_v39  ;;  %v1583_v39 = vld [vmem:[#allocation19 + $0x198] sm:$0xff] }
0x1cc7   :  { %1982 = vmatpush.msrb.mxu2 %v1597_v18  ;;  %v1575_v18 = vld [vmem:[#allocation19 + $0x158] sm:$0xff] }
0x1d23   :  { %v1490_v27 = vpop.permute.xlu0 %1489 }
0x1d24   :  { %v1492_v26 = vmul.f32 %v1490_v27, %v1487_v23  ;;  %v1765_v23 = vld [vmem:[#allocation19 + $0x748] sm:$0xff]  ;;  %v1559_v27 = vld [vmem:[#allocation19 + $0xd8] sm:$0xff] }
0x1d26   :  { %v1496_v28 = vadd.f32 %v1495_v24, %v1492_v26  ;;  %v1761_v24 = vld [vmem:[#allocation19 + $0x728] sm:$0xff]  ;;  %v1555_v26 = vld [vmem:[#allocation19 + $0xb8] sm:$0xff] }
0x1d28   :  { %1516 = vst.sshfl [vmem:[#allocation1] sm:$0xff pattern:$0x73625140] %v1496_v28 }
0x1d2f   :  { %v1518_v29 = vld [vmem:[#allocation1 + $0x3] ss:$4 sm:$0xff] }
0x1d30   :  { %1519 = vrot.lane.b32.xlu2 %v1518_v29, %s2947_s15  ;;  %1523 = vst.sshfl [vmem:[#allocation1] sm:$0xff pattern:$0x73625140] %v1496_v28  ;;  %v1757_v28 = vld [vmem:[#allocation19 + $0x708] sm:$0xff]  ;;  %v1551_v29 = vld [vmem:[#allocation19 + $0x98] sm:$0xff] }
0x1d31   :  { %1832 = vst [vmem:[#allocation1] ss:$4 sm:$0xff] %v1497_v1  ;;  %v1808_v1 = vld [vmem:[#allocation19 + $0x8a0] sm:$0xff] }
0x1d32   :  { %1937 = vmatpush.msrb.mxu0 %v1808_v1  ;;  %v1790_v1 = vld [vmem:[#allocation19 + $0x810] sm:$0xff] }
0x1d34   :  { %1938 = vmatpush.msrb.mxu0 %v1804_v56  ;;  %v1799_v56 = vld [vmem:[#allocation19 + $0x858] sm:$0xff] }
0x1d36   :  { %1939 = vmatpush.msrb.mxu0 %v1800_v10  ;;  %v1778_v10 = vld [vmem:[#allocation19 + $0x7b0] sm:$0xff] }
0x1d38   :  { %v3332_v50 = vld.sshfl [vmem:[#allocation1] sm:$0xff pattern:$0x73625140]  ;;  %v3334_v30 = vld.sshfl [vmem:[#allocation1 + $0x8] sm:$0xff pattern:$0x73625140]  ;;  %1940 = vmatpush.msrb.mxu0 %v1796_v14 }
0x1d39   :  { %1863 = vmatmul.f32.vlgmr.msra.gmra.mxu0 %v3332_v50  ;;  %1883 = vmatmul.f32.vlgmr.msrb.gmra.mxu1 %v3334_v30  ;;  %v3338_v7 = vld.sshfl [vmem:[#allocation1 + $0x10] sm:$0xff pattern:$0x73625140]  ;;  %v3340_v25 = vld.sshfl [vmem:[#allocation1 + $0x18] sm:$0xff pattern:$0x73625140] }
0x1d3a   :  { %1903 = vmatmul.f32.vlgmr.msra.gmra.mxu2 %v3338_v7  ;;  %1923 = vmatmul.f32.vlgmr.msrb.gmra.mxu3 %v3340_v25  ;;  %v1525_v14 = vld [vmem:[#allocation1 + $0x3] ss:$4 sm:$0xff] }
0x1d3b   :  { %2047 = vmatpush.msra.mxu2 %v1594_v12  ;;  %2067 = vmatpush.msrb.mxu3 %v1658_v42  ;;  %v1753_v12 = vld [vmem:[#allocation19 + $0x6e8] sm:$0xff] }
0x1d3c   :  { %1941 = vmatpush.msrb.mxu0 %v1792_v13  ;;  %v1817_v42 = vld [vmem:[#allocation19 + $0x8e8] sm:$0xff]  ;;  %v1770_v13 = vld [vmem:[#allocation19 + $0x770] sm:$0xff] }
0x1d3d   :  { %2048 = vmatpush.msra.mxu2 %v1590_v31  ;;  %2068 = vmatpush.msrb.mxu3 %v1654_v32  ;;  %v1818_v31 = vld [vmem:[#allocation19 + $0x8f0] sm:$0xff]  ;;  %v1547_v32 = vld [vmem:[#allocation19 + $0x78] sm:$0xff] }
0x1d3e   :  { %1942 = vmatpush.msrb.mxu0 %v1788_v44  ;;  %2035 = vmatpush.msrb.mxu1 %v1817_v42  ;;  %v1723_v42 = vld [vmem:[#allocation19 + $0x5f8] sm:$0xff] }
0x1d3f   :  { %2049 = vmatpush.msra.mxu2 %v1586_v33  ;;  %2069 = vmatpush.msrb.mxu3 %v1650_v34  ;;  %v1749_v33 = vld [vmem:[#allocation19 + $0x6c8] sm:$0xff] }
0x1d40   :  { %2007 = vmatpush.msra.mxu0 %v1785_v15  ;;  %v1813_v34 = vld [vmem:[#allocation19 + $0x8c8] sm:$0xff]  ;;  %v1762_v15 = vld [vmem:[#allocation19 + $0x730] sm:$0xff] }
0x1d41   :  { %2050 = vmatpush.msra.mxu2 %v1582_v35  ;;  %2070 = vmatpush.msrb.mxu3 %v1646_v61  ;;  %v1814_v35 = vld [vmem:[#allocation19 + $0x8d0] sm:$0xff]  ;;  %v1543_v61 = vld [vmem:[#allocation19 + $0x58] sm:$0xff] }
0x1d42   :  { %1963 = vmatmul.f32.vlgmr.msra.gmra.mxu1 %v3332_v50  ;;  %1983 = vmatmul.f32.vlgmr.msrb.gmra.mxu2 %v3334_v30 }
0x1d43   :  { %2051 = vmatpush.msra.mxu2 %v1578_v36  ;;  %2071 = vmatpush.msrb.mxu3 %v1642_v37  ;;  %v1745_v36 = vld [vmem:[#allocation19 + $0x6a8] sm:$0xff] }
0x1d44   :  { %2003 = vmatmul.f32.vlgmr.msra.gmra.mxu3 %v3338_v7  ;;  %2008 = vmatpush.msra.mxu0 %v1781_v16  ;;  %v1809_v37 = vld [vmem:[#allocation19 + $0x8a8] sm:$0xff]  ;;  %v1754_v16 = vld [vmem:[#allocation19 + $0x6f0] sm:$0xff] }
0x1d45   :  { %2052 = vmatpush.msra.mxu2 %v1574_v9  ;;  %2072 = vmatpush.msrb.mxu3 %v1638_v38  ;;  %v1810_v9 = vld [vmem:[#allocation19 + $0x8b0] sm:$0xff]  ;;  %v1539_v38 = vld [vmem:[#allocation19 + $0x38] sm:$0xff] }
0x1d46   :  { %2009 = vmatpush.msra.mxu0 %v1777_v19  ;;  %2036 = vmatpush.msrb.mxu1 %v1813_v34  ;;  %v1706_v34 = vld [vmem:[#allocation19 + $0x570] sm:$0xff] }
0x1d47   :  { %2053 = vmatpush.msra.mxu2 %v1570_v40  ;;  %2073 = vmatpush.msrb.mxu3 %v1634_v4  ;;  %v1741_v40 = vld [vmem:[#allocation19 + $0x688] sm:$0xff] }
0x1d48   :  { %2010 = vmatpush.msra.mxu0 %v1773_v21  ;;  %2037 = vmatpush.msrb.mxu1 %v1809_v37  ;;  %v1805_v4 = vld [vmem:[#allocation19 + $0x888] sm:$0xff]  ;;  %v1742_v21 = vld [vmem:[#allocation19 + $0x690] sm:$0xff]  ;;  %v1771_v37 = vld [vmem:[#allocation19 + $0x778] sm:$0xff] }
0x1d49   :  { %2054 = vmatpush.msra.mxu2 %v1566_v46  ;;  %2074 = vmatpush.msrb.mxu3 %v1630_v47  ;;  %v1806_v46 = vld [vmem:[#allocation19 + $0x890] sm:$0xff]  ;;  %v1535_v47 = vld [vmem:[#allocation19 + $0x18] sm:$0xff] }
0x1d4a   :  { %2011 = vmatpush.msra.mxu0 %v1769_v41  ;;  %2038 = vmatpush.msrb.mxu1 %v1805_v4  ;;  %v1734_v41 = vld [vmem:[#allocation19 + $0x650] sm:$0xff]  ;;  %v1707_v4 = vld [vmem:[#allocation19 + $0x578] sm:$0xff] }
0x1d4b   :  { %2055 = vmatpush.msra.mxu2 %v1562_v48  ;;  %2075 = vmatpush.msrb.mxu3 %v1626_v49  ;;  %v1737_v48 = vld [vmem:[#allocation19 + $0x668] sm:$0xff] }
0x1d4c   :  { %2012 = vmatpush.msra.mxu0 %v1765_v23  ;;  %v1801_v49 = vld [vmem:[#allocation19 + $0x868] sm:$0xff]  ;;  %v1722_v23 = vld [vmem:[#allocation19 + $0x5f0] sm:$0xff] }
0x1d4d   :  { %2056 = vmatpush.msra.mxu2 %v1558_v51  ;;  %2076 = vmatpush.msrb.mxu3 %v1622_v52  ;;  %v1802_v51 = vld [vmem:[#allocation19 + $0x870] sm:$0xff]  ;;  %v1819_v52 = vld [vmem:[#allocation19 + $0x8f8] sm:$0xff] }
0x1d4e   :  { %2013 = vmatpush.msra.mxu0 %v1761_v24  ;;  %2039 = vmatpush.msrb.mxu1 %v1801_v49  ;;  %v1730_v24 = vld [vmem:[#allocation19 + $0x630] sm:$0xff] }
0x1d4f   :  { %2057 = vmatpush.msra.mxu2 %v1554_v53  ;;  %2077 = vmatpush.msrb.mxu3 %v1618_v54  ;;  %v1733_v53 = vld [vmem:[#allocation19 + $0x648] sm:$0xff]  ;;  %v1690_v49 = vld [vmem:[#allocation19 + $0x4f0] sm:$0xff] }
0x1d50   :  { %2014 = vmatpush.msra.mxu0 %v1757_v28  ;;  %v1797_v54 = vld [vmem:[#allocation19 + $0x848] sm:$0xff]  ;;  %v1783_v28 = vld [vmem:[#allocation19 + $0x7d8] sm:$0xff] }
0x1d51   :  { %2058 = vmatpush.msra.mxu2 %v1550_v55  ;;  %2078 = vmatpush.msrb.mxu3 %v1614_v8  ;;  %v1798_v55 = vld [vmem:[#allocation19 + $0x850] sm:$0xff]  ;;  %v1793_v8 = vld [vmem:[#allocation19 + $0x828] sm:$0xff] }
0x1d52   :  { %2015 = vmatpush.msra.mxu0 %v1753_v12  ;;  %2040 = vmatpush.msrb.mxu1 %v1797_v54  ;;  %v1714_v12 = vld [vmem:[#allocation19 + $0x5b0] sm:$0xff]  ;;  %v1755_v54 = vld [vmem:[#allocation19 + $0x6f8] sm:$0xff] }
0x1d53   :  { %2059 = vmatpush.msra.mxu2 %v1546_v59  ;;  %2079 = vmatpush.msrb.mxu3 %v1610_v60  ;;  %v1729_v59 = vld [vmem:[#allocation19 + $0x628] sm:$0xff]  ;;  %v1794_v60 = vld [vmem:[#allocation19 + $0x830] sm:$0xff] }
0x1d54   :  { %2016 = vmatpush.msra.mxu0 %v1749_v33  ;;  %2041 = vmatpush.msrb.mxu1 %v1793_v8  ;;  %v1719_v33 = vld [vmem:[#allocation19 + $0x5d8] sm:$0xff]  ;;  %v1682_v8 = vld [vmem:[#allocation19 + $0x4b0] sm:$0xff] }
0x1d55   :  { %2060 = vmatpush.msra.mxu2 %v1542_v63  ;;  %2080 = vmatpush.msrb.mxu3 %v1606_v0  ;;  %v1811_v63 = vld [vmem:[#allocation19 + $0x8b8] sm:$0xff]  ;;  %v1725_v0 = vld [vmem:[#allocation19 + $0x608] sm:$0xff] }
0x1d56   :  { %2017 = vmatpush.msra.mxu0 %v1745_v36  ;;  %2042 = vmatpush.msrb.mxu1 %v1789_v62  ;;  %v1702_v36 = vld [vmem:[#allocation19 + $0x550] sm:$0xff]  ;;  %v1747_v62 = vld [vmem:[#allocation19 + $0x6b8] sm:$0xff] }
0x1d57   :  { %2061 = vmatpush.msra.mxu2 %v1538_v2  ;;  %2081 = vmatpush.msrb.mxu3 %v1602_v3  ;;  %v1807_v2 = vld [vmem:[#allocation19 + $0x898] sm:$0xff]  ;;  %v1786_v3 = vld [vmem:[#allocation19 + $0x7f0] sm:$0xff] }
0x1d58   :  { %2018 = vmatpush.msra.mxu0 %v1741_v40  ;;  %2107 = vmatpush.msra.mxu1 %v1786_v3  ;;  %v1767_v40 = vld [vmem:[#allocation19 + $0x758] sm:$0xff] }
0x1d59   :  { %2062 = vmatpush.msra.mxu2 %v1534_v5  ;;  %2082 = vmatpush.msrb.mxu3 %v1598_v6  ;;  %v1782_v5 = vld [vmem:[#allocation19 + $0x7d0] sm:$0xff]  ;;  %v1795_v6 = vld [vmem:[#allocation19 + $0x838] sm:$0xff] }
0x1d5a   :  { %2063 = vmatmul.f32.vlgmr.msra.gmra.mxu2 %v3332_v50  ;;  %2083 = vmatmul.f32.vlgmr.msrb.gmra.mxu3 %v3334_v30  ;;  %v1739_v3 = vld [vmem:[#allocation19 + $0x678] sm:$0xff] }
0x1d5b   :  { %2147 = vmatpush.msra.mxu3 %v1595_v11  ;;  %2135 = vmatpush.msrb.mxu2 %v1818_v31  ;;  %v1791_v11 = vld [vmem:[#allocation19 + $0x818] sm:$0xff] }
0x1d5c   :  { %2019 = vmatpush.msra.mxu0 %v1737_v48  ;;  %2108 = vmatpush.msra.mxu1 %v1782_v5  ;;  %v1779_v31 = vld [vmem:[#allocation19 + $0x7b8] sm:$0xff]  ;;  %v1666_v5 = vld [vmem:[#allocation19 + $0x430] sm:$0xff] }
0x1d5d   :  { %2148 = vmatpush.msra.mxu3 %v1591_v17  ;;  %2136 = vmatpush.msrb.mxu2 %v1814_v35  ;;  %v1774_v17 = vld [vmem:[#allocation19 + $0x790] sm:$0xff]  ;;  %v1775_v35 = vld [vmem:[#allocation19 + $0x798] sm:$0xff] }
0x1d5e   :  { %2020 = vmatpush.msra.mxu0 %v1733_v53  ;;  %2109 = vmatpush.msra.mxu1 %v1778_v10  ;;  %v1703_v48 = vld [vmem:[#allocation19 + $0x558] sm:$0xff]  ;;  %v1686_v53 = vld [vmem:[#allocation19 + $0x4d0] sm:$0xff] }
0x1d5f   :  { %2149 = vmatpush.msra.mxu3 %v1587_v43  ;;  %2137 = vmatpush.msrb.mxu2 %v1810_v9  ;;  %v1766_v43 = vld [vmem:[#allocation19 + $0x750] sm:$0xff]  ;;  %v1711_v9 = vld [vmem:[#allocation19 + $0x598] sm:$0xff] }
0x1d60   :  { %2021 = vmatpush.msra.mxu0 %v1729_v59  ;;  %2110 = vmatpush.msra.mxu1 %v1774_v17  ;;  %v1691_v59 = vld [vmem:[#allocation19 + $0x4f8] sm:$0xff] }
0x1d61   :  { %2150 = vmatpush.msra.mxu3 %v1583_v39  ;;  %2138 = vmatpush.msrb.mxu2 %v1806_v46  ;;  %v2471_v39 = vrot.slane %v1525_v14, 9  ;;  %v1694_v46 = vld [vmem:[#allocation19 + $0x510] sm:$0xff]  ;;  %v1675_v10 = vld [vmem:[#allocation19 + $0x478] sm:$0xff] }
0x1d62   :  { %2022 = vmatpush.msra.mxu0 %v1725_v0  ;;  %2111 = vmatpush.msra.mxu1 %v1770_v13  ;;  %v1674_v0 = vld [vmem:[#allocation19 + $0x470] sm:$0xff]  ;;  %v1731_v17 = vld [vmem:[#allocation19 + $0x638] sm:$0xff] }
0x1d63   :  { %2151 = vmatpush.msra.mxu3 %v1579_v45  ;;  %2139 = vmatpush.msrb.mxu2 %v1802_v51  ;;  %v1758_v45 = vld [vmem:[#allocation19 + $0x710] sm:$0xff]  ;;  %v1759_v51 = vld [vmem:[#allocation19 + $0x718] sm:$0xff] }
0x1d64   :  { %2112 = vmatpush.msra.mxu1 %v1766_v43  ;;  %v1671_v14 = vld [vmem:[#allocation19 + $0x458] sm:$0xff] }
0x1d65   :  { %2152 = vmatpush.msra.mxu3 %v1575_v18  ;;  %2140 = vmatpush.msrb.mxu2 %v1798_v55  ;;  %v1750_v18 = vld [vmem:[#allocation19 + $0x6d0] sm:$0xff]  ;;  %v1695_v55 = vld [vmem:[#allocation19 + $0x518] sm:$0xff] }
0x1d66   :  { %2113 = vmatpush.msra.mxu1 %v1762_v15  ;;  %v1659_v13 = vld [vmem:[#allocation19 + $0x3f8] sm:$0xff] }
0x1d67   :  { %2153 = vmatpush.msra.mxu3 %v1571_v20  ;;  %2141 = vmatpush.msrb.mxu2 %v1794_v60  ;;  %v1746_v20 = vld [vmem:[#allocation19 + $0x6b0] sm:$0xff]  ;;  %v1727_v43 = vld [vmem:[#allocation19 + $0x618] sm:$0xff] }
0x1d68   :  { %2114 = vmatpush.msra.mxu1 %v1758_v45  ;;  %v1678_v60 = vld [vmem:[#allocation19 + $0x490] sm:$0xff]  ;;  %v1663_v15 = vld [vmem:[#allocation19 + $0x418] sm:$0xff] }
0x1d69   :  { %2154 = vmatpush.msra.mxu3 %v1567_v57  ;;  %2142 = vmatpush.msrb.mxu2 %v1790_v1  ;;  %v1738_v57 = vld [vmem:[#allocation19 + $0x670] sm:$0xff]  ;;  %v1743_v1 = vld [vmem:[#allocation19 + $0x698] sm:$0xff] }
0x1d6a   :  { %2115 = vmatpush.msra.mxu1 %v1754_v16  ;;  %v1651_v45 = vld [vmem:[#allocation19 + $0x3b8] sm:$0xff] }
0x1d6b   :  { %2155 = vmatpush.msra.mxu3 %v1563_v22  ;;  %v1787_v22 = vld [vmem:[#allocation19 + $0x7f8] sm:$0xff] }
0x1d6c   :  { %2116 = vmatpush.msra.mxu1 %v1750_v18  ;;  %2207 = vmatpush.msra.mxu2 %v1787_v22  ;;  %v1647_v16 = vld [vmem:[#allocation19 + $0x398] sm:$0xff] }
0x1d6d   :  { %2156 = vmatpush.msra.mxu3 %v1559_v27  ;;  %v1643_v18 = vld [vmem:[#allocation19 + $0x378] sm:$0xff] }
0x1d6e   :  { %2117 = vmatpush.msra.mxu1 %v1746_v20  ;;  %2208 = vmatpush.msra.mxu2 %v1783_v28  ;;  %v1635_v20 = vld [vmem:[#allocation19 + $0x338] sm:$0xff]  ;;  %v2265_v28 = vld [vmem:[%s3574_s12 + $0x70] sm:$0xff] }
0x1d6f   :  { %2157 = vmatpush.msra.mxu3 %v1555_v26  ;;  %v1718_v26 = vld [vmem:[#allocation19 + $0x5d0] sm:$0xff]  ;;  %v1615_v22 = vld [vmem:[#allocation19 + $0x298] sm:$0xff] }
0x1d70   :  { %2118 = vmatpush.msra.mxu1 %v1742_v21  ;;  %2209 = vmatpush.msra.mxu2 %v1779_v31  ;;  %v1631_v21 = vld [vmem:[#allocation19 + $0x318] sm:$0xff]  ;;  %v2280_v31 = vld [vmem:[%s3574_s12 + $0xe8] sm:$0xff] }
0x1d71   :  { %2158 = vmatpush.msra.mxu3 %v1551_v29  ;;  %v1726_v29 = vld [vmem:[#allocation19 + $0x610] sm:$0xff] }
0x1d72   :  { %2119 = vmatpush.msra.mxu1 %v1738_v57  ;;  %2210 = vmatpush.msra.mxu2 %v1775_v35  ;;  %v1627_v57 = vld [vmem:[#allocation19 + $0x2f8] sm:$0xff] }
0x1d73   :  { %2159 = vmatpush.msra.mxu3 %v1547_v32  ;;  %v1710_v32 = vld [vmem:[#allocation19 + $0x590] sm:$0xff] }
0x1d74   :  { %2120 = vmatpush.msra.mxu1 %v1734_v41  ;;  %2211 = vmatpush.msra.mxu2 %v1771_v37  ;;  %v1623_v41 = vld [vmem:[#allocation19 + $0x2d8] sm:$0xff] }
0x1d75   :  { %2160 = vmatpush.msra.mxu3 %v1543_v61  ;;  %v1715_v61 = vld [vmem:[#allocation19 + $0x5b8] sm:$0xff] }
0x1d76   :  { %2121 = vmatpush.msra.mxu1 %v1730_v24  ;;  %2212 = vmatpush.msra.mxu2 %v1767_v40  ;;  %v1599_v24 = vld [vmem:[#allocation19 + $0x218] sm:$0xff] }
0x1d77   :  { %2161 = vmatpush.msra.mxu3 %v1539_v38  ;;  %v1698_v38 = vld [vmem:[#allocation19 + $0x530] sm:$0xff]  ;;  %v2259_v37 = vld [vmem:[%s3574_s12 + $0x40] sm:$0xff] }
0x1d78   :  { %2122 = vmatpush.msra.mxu1 %v1726_v29  ;;  %v2264_v29 = vld [vmem:[%s3574_s12 + $0x68] sm:$0xff]  ;;  %v2278_v35 = vld [vmem:[%s3574_s12 + $0xd8] sm:$0xff]  ;;  %v2275_v40 = vld [vmem:[%s3574_s12 + $0xc0] sm:$0xff] }
0x1d79   :  { %2162 = vmatpush.msra.mxu3 %v1535_v47  ;;  %v1763_v47 = vld [vmem:[#allocation19 + $0x738] sm:$0xff] }
0x1d7a   :  { %2163 = vmatmul.f32.vlgmr.msra.gmra.mxu3 %v3332_v50  ;;  %v1803_v50 = vld [vmem:[#allocation19 + $0x878] sm:$0xff]  ;;  %2213 = vmatpush.msra.mxu2 %v1763_v47 }
0x1d7b   :  { %2235 = vmatpush.msrb.mxu3 %v1819_v52  ;;  %v1699_v52 = vld [vmem:[#allocation19 + $0x538] sm:$0xff] }
0x1d7c   :  { %2214 = vmatpush.msra.mxu2 %v1759_v51  ;;  %v2255_v47 = vld [vmem:[%s3574_s12 + $0x20] sm:$0xff]  ;;  %v2274_v51 = vld [vmem:[%s3574_s12 + $0xb8] sm:$0xff] }
0x1d7d   :  { %2236 = vmatpush.msrb.mxu3 %v1815_v58  ;;  %v1751_v58 = vld [vmem:[#allocation19 + $0x6d8] sm:$0xff] }
0x1d7e   :  { %2215 = vmatpush.msra.mxu2 %v1755_v54  ;;  %v2251_v54 = vld [vmem:[%s3574_s12] sm:$0xff] }
0x1d7f   :  { %2237 = vmatpush.msrb.mxu3 %v1811_v63  ;;  %v1687_v63 = vld [vmem:[#allocation19 + $0x4d8] sm:$0xff] }
0x1d80   :  { %2216 = vmatpush.msra.mxu2 %v1751_v58  ;;  %v2270_v58 = vld [vmem:[%s3574_s12 + $0x98] sm:$0xff] }
0x1d81   :  { %2238 = vmatpush.msrb.mxu3 %v1807_v2  ;;  %v1683_v2 = vld [vmem:[#allocation19 + $0x4b8] sm:$0xff] }
0x1d82   :  { %2217 = vmatpush.msra.mxu2 %v1747_v62  ;;  %v2297_v62 = vld [vmem:[%s3574_s12 + $0x170] sm:$0xff] }
0x1d83   :  { %2239 = vmatpush.msrb.mxu3 %v1803_v50  ;;  %v1670_v50 = vld [vmem:[#allocation19 + $0x450] sm:$0xff] }
0x1d84   :  { %2218 = vmatpush.msra.mxu2 %v1743_v1  ;;  %v2267_v1 = vld [vmem:[%s3574_s12 + $0x80] sm:$0xff] }
0x1d85   :  { %2240 = vmatpush.msrb.mxu3 %v1799_v56  ;;  %v1679_v56 = vld [vmem:[#allocation19 + $0x498] sm:$0xff] }
0x1d86   :  { %2219 = vmatpush.msra.mxu2 %v1739_v3  ;;  %v2294_v3 = vld [vmem:[%s3574_s12 + $0x158] sm:$0xff] }
0x1d87   :  { %2241 = vmatpush.msrb.mxu3 %v1795_v6  ;;  %v1735_v6 = vld [vmem:[#allocation19 + $0x658] sm:$0xff] }
0x1d88   :  { %2220 = vmatpush.msra.mxu2 %v1735_v6  ;;  %v2293_v6 = vld [vmem:[%s3574_s12 + $0x150] sm:$0xff] }
0x1d89   :  { %2242 = vmatpush.msrb.mxu3 %v1791_v11  ;;  %v1662_v11 = vld [vmem:[#allocation19 + $0x410] sm:$0xff] }
0x1d8a   :  { %v1520_v44 = vpop.permute.xlu2 %1519  ;;  %2221 = vmatpush.msra.mxu2 %v1731_v17 }
0x1d8b   :  { %1522 = vst.msk [vmem:[#allocation2 + $0x9] sm:$0x1] %vm1505_vm9, %v1520_v44  ;;  %v1667_v44 = vld [vmem:[#allocation19 + $0x438] sm:$0xff] }
0x1d8c   :  { %1529 = vst.msk [vmem:[#allocation2 + $0x9] sm:$0x1] %vm1513_vm10, %v2471_v39  ;;  %v1655_v39 = vld [vmem:[#allocation19 + $0x3d8] sm:$0xff]  ;;  %2222 = vmatpush.msra.mxu2 %v1727_v43 }
0x1d8d   :  { %v2290_v43 = vld [vmem:[%s3574_s12 + $0x138] sm:$0xff] }
0x1d93   :  { %v1531_v19 = vld [vmem:[#allocation2 + $0x8] sm:$0x3] }
0x1d94   :  { %1834 = vst [vmem:[#allocation1 + $0x20] ss:$4 sm:$0xff] %v1531_v19  ;;  %v1639_v19 = vld [vmem:[#allocation19 + $0x358] sm:$0xff] }
0x1d9b   :  { %v1839_v27 = vld.sshfl [vmem:[#allocation1 + $0x20] sm:$0xff pattern:$0x73625140] }
0x1d9c   :  { %2472 = vmatmul.msk.f32.vlgmr.msrb.gmra.mxu0 %vm1844_vm11, %v1839_v27  ;;  %2473 = vmatmul.msk.f32.vlgmr.msrb.gmra.mxu1 %vm1844_vm11, %v1839_v27 }
0x1d9d   :  { %2087 = vmatpush.msrb.mxu0 %v1722_v23  ;;  %2474 = vmatmul.msk.f32.vlgmr.msrb.gmra.mxu2 %vm1844_vm11, %v1839_v27  ;;  %v1611_v23 = vld [vmem:[#allocation19 + $0x278] sm:$0xff] }
0x1d9e   :  { %2475 = vmatmul.msk.f32.vlgmr.msrb.gmra.mxu3 %vm1844_vm11, %v1839_v27  ;;  %2187 = vmatpush.msrb.mxu1 %v1723_v42  ;;  %v1607_v27 = vld [vmem:[#allocation19 + $0x258] sm:$0xff] }
0x1d9f   :  { %2088 = vmatpush.msrb.mxu0 %v1718_v26  ;;  %v2266_v26 = vld [vmem:[%s3574_s12 + $0x78] sm:$0xff]  ;;  %v2263_v42 = vld [vmem:[%s3574_s12 + $0x60] sm:$0xff] }
0x1da0   :  { %2188 = vmatpush.msrb.mxu1 %v1719_v33  ;;  %v2279_v33 = vld [vmem:[%s3574_s12 + $0xe0] sm:$0xff] }
0x1da1   :  { %2089 = vmatpush.msrb.mxu0 %v1714_v12  ;;  %v2282_v12 = vld [vmem:[%s3574_s12 + $0xf8] sm:$0xff] }
0x1da2   :  { %2189 = vmatpush.msrb.mxu1 %v1715_v61  ;;  %v2260_v61 = vld [vmem:[%s3574_s12 + $0x48] sm:$0xff] }
0x1da3   :  { %2090 = vmatpush.msrb.mxu0 %v1710_v32  ;;  %v2262_v32 = vld [vmem:[%s3574_s12 + $0x58] sm:$0xff] }
0x1da4   :  { %2023 = vmatmul.f32.vlgmr.msra.gmra.mxu0 %v3340_v25  ;;  %2123 = vmatmul.f32.vlgmr.msra.gmra.mxu1 %v3340_v25 }
0x1da5   :  { %2091 = vmatpush.msrb.mxu0 %v1706_v34  ;;  %2190 = vmatpush.msrb.mxu1 %v1711_v9  ;;  %v2261_v34 = vld [vmem:[%s3574_s12 + $0x50] sm:$0xff]  ;;  %v2276_v9 = vld [vmem:[%s3574_s12 + $0xc8] sm:$0xff] }
0x1da6   :  { %2223 = vmatmul.f32.vlgmr.msra.gmra.mxu2 %v3340_v25  ;;  %v1619_v25 = vld [vmem:[#allocation19 + $0x2b8] sm:$0xff] }
0x1da7   :  { %2092 = vmatpush.msrb.mxu0 %v1702_v36  ;;  %2191 = vmatpush.msrb.mxu1 %v1707_v4  ;;  %v2277_v36 = vld [vmem:[%s3574_s12 + $0xd0] sm:$0xff] }
0x1da8   :  { %v2257_v4 = vld [vmem:[%s3574_s12 + $0x30] sm:$0xff] }
0x1da9   :  { %2093 = vmatpush.msrb.mxu0 %v1698_v38  ;;  %2192 = vmatpush.msrb.mxu1 %v1703_v48  ;;  %v2258_v38 = vld [vmem:[%s3574_s12 + $0x38] sm:$0xff] }
0x1daa   :  { %v2254_v48 = vld [vmem:[%s3574_s12 + $0x18] sm:$0xff] }
0x1dab   :  { %2094 = vmatpush.msrb.mxu0 %v1694_v46  ;;  %2193 = vmatpush.msrb.mxu1 %v1699_v52  ;;  %v2256_v46 = vld [vmem:[%s3574_s12 + $0x28] sm:$0xff] }
0x1dac   :  { %v2252_v52 = vld [vmem:[%s3574_s12 + $0x8] sm:$0xff] }
0x1dad   :  { %2095 = vmatpush.msrb.mxu0 %v1690_v49  ;;  %2194 = vmatpush.msrb.mxu1 %v1695_v55  ;;  %v2253_v49 = vld [vmem:[%s3574_s12 + $0x10] sm:$0xff]  ;;  %v2272_v55 = vld [vmem:[%s3574_s12 + $0xa8] sm:$0xff] }
0x1daf   :  { %2096 = vmatpush.msrb.mxu0 %v1686_v53  ;;  %2195 = vmatpush.msrb.mxu1 %v1691_v59  ;;  %v2273_v53 = vld [vmem:[%s3574_s12 + $0xb0] sm:$0xff]  ;;  %v2298_v59 = vld [vmem:[%s3574_s12 + $0x178] sm:$0xff] }
0x1db0   :  { %2359 = vmatpush.msrb.mxu2 %v2298_v59 }
0x1db1   :  { %2097 = vmatpush.msrb.mxu0 %v1682_v8  ;;  %2196 = vmatpush.msrb.mxu1 %v1687_v63  ;;  %v2271_v8 = vld [vmem:[%s3574_s12 + $0xa0] sm:$0xff]  ;;  %v2268_v63 = vld [vmem:[%s3574_s12 + $0x88] sm:$0xff] }
0x1db2   :  { %2360 = vmatpush.msrb.mxu2 %v2297_v62 }
0x1db3   :  { %2098 = vmatpush.msrb.mxu0 %v1678_v60  ;;  %2197 = vmatpush.msrb.mxu1 %v1683_v2  ;;  %v2269_v60 = vld [vmem:[%s3574_s12 + $0x90] sm:$0xff]  ;;  %v3463_v2 = vld [vmem:[#allocation21] sm:$0xf] }
0x1db5   :  { %2099 = vmatpush.msrb.mxu0 %v1674_v0  ;;  %2198 = vmatpush.msrb.mxu1 %v1679_v56  ;;  %v2296_v0 = vld [vmem:[%s3574_s12 + $0x168] sm:$0xff]  ;;  %v1822_v56 = vperm.slane %v3463_v2, 0 }
0x1db6   :  { %2361 = vmatpush.msrb.mxu2 %v2296_v0  ;;  %v2301_v0 = vld [vmem:[%s3574_s12 + $0x190] sm:$0xff] }
0x1db7   :  { %2100 = vmatpush.msrb.mxu0 %v1670_v50  ;;  %2199 = vmatpush.msrb.mxu1 %v1675_v10  ;;  %v2295_v50 = vld [vmem:[%s3574_s12 + $0x160] sm:$0xff]  ;;  %v1884_v10 = vpop.f32.mrf.mxu1 }
0x1db8   :  { %2362 = vmatpush.msrb.mxu2 %v2295_v50  ;;  %v2300_v50 = vld [vmem:[%s3574_s12 + $0x188] sm:$0xff] }
0x1db9   :  { %2101 = vmatpush.msrb.mxu0 %v1666_v5  ;;  %2200 = vmatpush.msrb.mxu1 %v1671_v14  ;;  %v1864_v5 = vpop.f32.mrf.mxu0 }
0x1dba   :  { %2363 = vmatpush.msrb.mxu2 %v2294_v3  ;;  %v1865_v17 = vadd.f32 %v1864_v5, %v1822_v56  ;;  %v2299_v3 = vld [vmem:[%s3574_s12 + $0x180] sm:$0xff]  ;;  %v1825_v56 = vperm.slane %v3463_v2, 3 }
0x1dbb   :  { %2102 = vmatpush.msrb.mxu0 %v1662_v11  ;;  %2201 = vmatpush.msrb.mxu1 %v1667_v44  ;;  %v2292_v11 = vld [vmem:[%s3574_s12 + $0x148] sm:$0xff] }
0x1dbc   :  { %2103 = vmatmul.f32.vlgmr.msrb.gmra.mxu0 %v3338_v7  ;;  %2364 = vmatpush.msrb.mxu2 %v2293_v6  ;;  %v1885_v44 = vadd.f32 %v1884_v10, %v1865_v17 }
0x1dbd   :  { %2167 = vmatpush.msra.mxu0 %v1659_v13  ;;  %2202 = vmatpush.msrb.mxu1 %v1663_v15  ;;  %v1904_v14 = vpop.f32.mrf.mxu2  ;;  %v2291_v13 = vld [vmem:[%s3574_s12 + $0x140] sm:$0xff]  ;;  %v2289_v15 = vld [vmem:[%s3574_s12 + $0x130] sm:$0xff] }
0x1dbe   :  { %2203 = vmatmul.f32.vlgmr.msrb.gmra.mxu1 %v3338_v7  ;;  %v1603_v7 = vld [vmem:[#allocation19 + $0x238] sm:$0xff]  ;;  %2365 = vmatpush.msrb.mxu2 %v2292_v11 }
0x1dbf   :  { %2168 = vmatpush.msra.mxu0 %v1655_v39  ;;  %2339 = vmatpush.msra.mxu1 %v2282_v12  ;;  %v1924_v39 = vpop.f32.mrf.mxu3  ;;  %v2283_v12 = vld [vmem:[%s3574_s12 + $0x100] sm:$0xff] }
0x1dc0   :  { %2366 = vmatpush.msrb.mxu2 %v2291_v13 }
0x1dc1   :  { %2169 = vmatpush.msra.mxu0 %v1651_v45  ;;  %v1905_v45 = vadd.f32 %v1904_v14, %v1885_v44 }
0x1dc2   :  { %2367 = vmatpush.msrb.mxu2 %v2290_v43 }
0x1dc3   :  { %2170 = vmatpush.msra.mxu0 %v1647_v16  ;;  %v2288_v16 = vld [vmem:[%s3574_s12 + $0x128] sm:$0xff] }
0x1dc4   :  { %2368 = vmatpush.msrb.mxu2 %v2289_v15 }
0x1dc5   :  { %2171 = vmatpush.msra.mxu0 %v1643_v18  ;;  %v1823_v18 = vperm.slane %v3463_v2, 1 }
0x1dc6   :  { %2369 = vmatpush.msrb.mxu2 %v2288_v16 }
0x1dc7   :  { %2172 = vmatpush.msra.mxu0 %v1639_v19  ;;  %v1964_v19 = vpop.f32.mrf.mxu1 }
0x1dc9   :  { %2173 = vmatpush.msra.mxu0 %v1635_v20  ;;  %v1925_v20 = vadd.f32 %v1924_v39, %v1905_v45  ;;  %v2500_v45 = vld [vmem:[#allocation22] ss:$0 sm:$0xff] }
0x1dcb   :  { %2174 = vmatpush.msra.mxu0 %v1631_v21  ;;  %v1984_v21 = vpop.f32.mrf.mxu2 }
0x1dcd   :  { %2175 = vmatpush.msra.mxu0 %v1627_v57 }
0x1dcf   :  { %2176 = vmatpush.msra.mxu0 %v1623_v41  ;;  %v2287_v41 = vld [vmem:[%s3574_s12 + $0x120] sm:$0xff] }
0x1dd0   :  { %2370 = vmatpush.msrb.mxu2 %v2287_v41 }
0x1dd1   :  { %2177 = vmatpush.msra.mxu0 %v1619_v25  ;;  %v1965_v25 = vadd.f32 %v1964_v19, %v1823_v18 }
0x1dd3   :  { %2178 = vmatpush.msra.mxu0 %v1615_v22 }
0x1dd5   :  { %2179 = vmatpush.msra.mxu0 %v1611_v23  ;;  %v2286_v23 = vld [vmem:[%s3574_s12 + $0x118] sm:$0xff] }
0x1dd6   :  { %2371 = vmatpush.msrb.mxu2 %v2286_v23 }
0x1dd7   :  { %2180 = vmatpush.msra.mxu0 %v1607_v27  ;;  %v1985_v27 = vadd.f32 %v1984_v21, %v1965_v25 }
0x1dd9   :  { %2181 = vmatpush.msra.mxu0 %v1603_v7 }
0x1ddb   :  { %2182 = vmatpush.msra.mxu0 %v1599_v24  ;;  %v2004_v24 = vpop.f32.mrf.mxu3 }
0x1ddc   :  { %2183 = vmatmul.f32.vlgmr.msra.gmra.mxu0 %v3334_v30  ;;  %v2281_v30 = vld [vmem:[%s3574_s12 + $0xf0] sm:$0xff] }
0x1ddd   :  { %2319 = vmatpush.msrb.mxu0 %v2266_v26  ;;  %2340 = vmatpush.msra.mxu1 %v2281_v30  ;;  %v2285_v26 = vld [vmem:[%s3574_s12 + $0x110] sm:$0xff] }
0x1dde   :  { %2372 = vmatpush.msrb.mxu2 %v2285_v26 }
0x1ddf   :  { %2320 = vmatpush.msrb.mxu0 %v2265_v28  ;;  %2341 = vmatpush.msra.mxu1 %v2280_v31  ;;  %v2284_v28 = vld [vmem:[%s3574_s12 + $0x108] sm:$0xff]  ;;  %v2314_v31 = vld [vmem:[%s3574_s12 + $0x1f8] sm:$0xff] }
0x1de0   :  { %2373 = vmatpush.msrb.mxu2 %v2284_v28  ;;  %2379 = vmatpush.msra.mxu3 %v2314_v31 }
0x1de1   :  { %2321 = vmatpush.msrb.mxu0 %v2264_v29  ;;  %2342 = vmatpush.msra.mxu1 %v2279_v33  ;;  %v2005_v29 = vadd.f32 %v2004_v24, %v1985_v27 }
0x1de2   :  { %2374 = vmatpush.msrb.mxu2 %v2283_v12 }
0x1de3   :  { %2322 = vmatpush.msrb.mxu0 %v2263_v42  ;;  %2343 = vmatpush.msra.mxu1 %v2278_v35  ;;  %v2312_v35 = vld [vmem:[%s3574_s12 + $0x1e8] sm:$0xff] }
0x1de5   :  { %2323 = vmatpush.msrb.mxu0 %v2262_v32  ;;  %2344 = vmatpush.msra.mxu1 %v2277_v36  ;;  %v2313_v32 = vld [vmem:[%s3574_s12 + $0x1f0] sm:$0xff]  ;;  %v2311_v36 = vld [vmem:[%s3574_s12 + $0x1e0] sm:$0xff] }
0x1de6   :  { %2380 = vmatpush.msra.mxu3 %v2313_v32 }
0x1de7   :  { %2324 = vmatpush.msrb.mxu0 %v2261_v34  ;;  %2345 = vmatpush.msra.mxu1 %v2276_v9  ;;  %v2309_v9 = vld [vmem:[%s3574_s12 + $0x1d0] sm:$0xff] }
0x1de8   :  { %2381 = vmatpush.msra.mxu3 %v2312_v35 }
0x1de9   :  { %2325 = vmatpush.msrb.mxu0 %v2260_v61  ;;  %2346 = vmatpush.msra.mxu1 %v2275_v40  ;;  %v2307_v40 = vld [vmem:[%s3574_s12 + $0x1c0] sm:$0xff] }
0x1dea   :  { %2382 = vmatpush.msra.mxu3 %v2311_v36 }
0x1deb   :  { %2326 = vmatpush.msrb.mxu0 %v2259_v37  ;;  %2347 = vmatpush.msra.mxu1 %v2274_v51  ;;  %v2310_v37 = vld [vmem:[%s3574_s12 + $0x1d8] sm:$0xff]  ;;  %v2084_v51 = vpop.f32.mrf.mxu3 }
0x1dec   :  { %2383 = vmatpush.msra.mxu3 %v2310_v37 }
0x1ded   :  { %2327 = vmatpush.msrb.mxu0 %v2258_v38  ;;  %2348 = vmatpush.msra.mxu1 %v2273_v53  ;;  %v2308_v38 = vld [vmem:[%s3574_s12 + $0x1c8] sm:$0xff] }
0x1dee   :  { %2384 = vmatpush.msra.mxu3 %v2309_v9  ;;  %v2304_v53 = vld [vmem:[%s3574_s12 + $0x1a8] sm:$0xff] }
0x1def   :  { %2328 = vmatpush.msrb.mxu0 %v2257_v4  ;;  %2349 = vmatpush.msra.mxu1 %v2272_v55  ;;  %v1824_v4 = vperm.slane %v3463_v2, 2 }
0x1df0   :  { %2385 = vmatpush.msra.mxu3 %v2308_v38 }
0x1df1   :  { %2329 = vmatpush.msrb.mxu0 %v2256_v46  ;;  %2350 = vmatpush.msra.mxu1 %v2271_v8  ;;  %v2306_v46 = vld [vmem:[%s3574_s12 + $0x1b8] sm:$0xff] }
0x1df2   :  { %2386 = vmatpush.msra.mxu3 %v2307_v40 }
0x1df3   :  { %2330 = vmatpush.msrb.mxu0 %v2255_v47  ;;  %2351 = vmatpush.msra.mxu1 %v2270_v58  ;;  %v2064_v47 = vpop.f32.mrf.mxu2  ;;  %v2303_v58 = vld [vmem:[%s3574_s12 + $0x1a0] sm:$0xff] }
0x1df4   :  { %2387 = vmatpush.msra.mxu3 %v2306_v46 }
0x1df5   :  { %2331 = vmatpush.msrb.mxu0 %v2254_v48  ;;  %2352 = vmatpush.msra.mxu1 %v2269_v60  ;;  %v2305_v48 = vld [vmem:[%s3574_s12 + $0x1b0] sm:$0xff]  ;;  %v2302_v60 = vld [vmem:[%s3574_s12 + $0x198] sm:$0xff]  ;;  %s2948_s12 = smov [#allocation24]  }
0x1df6   :  { %2388 = vmatpush.msra.mxu3 %v2305_v48  ;;  %s2418_s2 = sshll.u32 %s2948_s12, 4  ;;  %s2419_s2 = int_to_ptr.vmem [resolvable:$true] %s2418_s2 }
0x1df7   :  { %2332 = vmatpush.msrb.mxu0 %v2253_v49  ;;  %2353 = vmatpush.msra.mxu1 %v2268_v63  ;;  %v2065_v49 = vadd.f32 %v2064_v47, %v1824_v4 }
0x1df8   :  { %2389 = vmatpush.msra.mxu3 %v2304_v53 }
0x1df9   :  { %2333 = vmatpush.msrb.mxu0 %v2252_v52  ;;  %2354 = vmatpush.msra.mxu1 %v2267_v1  ;;  %v2085_v52 = vadd.f32 %v2084_v51, %v2065_v49 }
0x1dfa   :  { %2390 = vmatpush.msra.mxu3 %v2303_v58 }
0x1dfb   :  { %2334 = vmatpush.msrb.mxu0 %v2251_v54 }
0x1dfc   :  { %2391 = vmatpush.msra.mxu3 %v2302_v60 }
0x1dfd   :  { %v2164_v5 = vpop.f32.mrf.mxu3 }
0x1dfe   :  { %2392 = vmatpush.msra.mxu3 %v2301_v0  ;;  %v2165_v6 = vadd.f32 %v2164_v5, %v1825_v56 }
0x1e00   :  { %2393 = vmatpush.msra.mxu3 %v2300_v50 }
0x1e02   :  { %2394 = vmatpush.msra.mxu3 %v2299_v3 }
0x1e19   :  { %v1944_v57 = vpop.f32.mrf.mxu0  ;;  %v2044_v33 = vpop.f32.mrf.mxu1 }
0x1e1a   :  { %v1945_v22 = vadd.f32 %v1944_v57, %v1925_v20 }
0x1e1c   :  { %v2247_v7 = vmax.f32 %v1945_v22, 0.0 }
0x1e1e   :  { %2335 = vmatmul.f32.vlgmr.msrb.gmra.mxu0 %v2247_v7 }
0x1e20   :  { %v2144_v62 = vpop.f32.mrf.mxu2 }
0x1e21   :  { %v2024_v30 = vpop.f32.mrf.mxu0  ;;  %v2124_v55 = vpop.f32.mrf.mxu1 }
0x1e22   :  { %v2025_v42 = vadd.f32 %v2024_v30, %v2005_v29  ;;  %v2244_v44 = vpop.f32.mrf.mxu3 }
0x1e24   :  { %v2045_v34 = vadd.f32 %v2044_v33, %v2025_v42 }
0x1e26   :  { %v2248_v61 = vmax.f32 %v2045_v34, 0.0 }
0x1e28   :  { %2355 = vmatmul.f32.vlgmr.msra.gmra.mxu1 %v2248_v61 }
0x1e29   :  { %v2224_v14 = vpop.f32.mrf.mxu2 }
0x1e39   :  { %v2104_v54 = vpop.f32.mrf.mxu0 }
0x1e3a   :  { %v2105_v8 = vadd.f32 %v2104_v54, %v2085_v52 }
0x1e3b   :  { %v2204_v11 = vpop.f32.mrf.mxu1 }
0x1e3c   :  { %v2125_v59 = vadd.f32 %v2124_v55, %v2105_v8 }
0x1e3e   :  { %v2145_v63 = vadd.f32 %v2144_v62, %v2125_v59 }
0x1e40   :  { %v2249_v1 = vmax.f32 %v2145_v63, 0.0 }
0x1e42   :  { %2375 = vmatmul.f32.vlgmr.msrb.gmra.mxu2 %v2249_v1 }
0x1e59   :  { %v2184_v10 = vpop.f32.mrf.mxu0 }
0x1e5a   :  { %v2185_v17 = vadd.f32 %v2184_v10, %v2165_v6 }
0x1e5c   :  { %v2205_v13 = vadd.f32 %v2204_v11, %v2185_v17 }
0x1e5e   :  { %v2225_v43 = vadd.f32 %v2224_v14, %v2205_v13 }
0x1e60   :  { %v2245_v39 = vadd.f32 %v2244_v44, %v2225_v43 }
0x1e62   :  { %v2250_v15 = vmax.f32 %v2245_v39, 0.0 }
0x1e64   :  { %2395 = vmatmul.f32.vlgmr.msra.gmra.mxu3 %v2250_v15 }
0x1e9b   :  { %v2336_v16 = vpop.f32.mrf.mxu0 }
0x1e9c   :  { %v2337_v19 = vadd.f32 %v2500_v45, %v2336_v16 }
0x1ea5   :  { %v2356_v18 = vpop.f32.mrf.mxu1 }
0x1ea6   :  { %v2357_v21 = vadd.f32 %v2356_v18, %v2337_v19 }
0x1ec5   :  { %v2376_v20 = vpop.f32.mrf.mxu2 }
0x1ec6   :  { %v2377_v57 = vadd.f32 %v2376_v20, %v2357_v21 }
0x1ee7   :  { %v2396_v2 = vpop.f32.mrf.mxu3 }
0x1ee8   :  { %v2397_v41 = vadd.f32 %v2396_v2, %v2377_v57 }
0x1eea   :  { %v2399_v25 = vmax.f32 %v2397_v41, 0.0 }
0x1eec   :  { %v2401_v22 = vsel %vm2400_vm15, %v2399_v25, -inf }
0x1eed   :  { %2402 = vmax.xlane.f32.xlu0 %v2401_v22 }
0x1f60   :  { %v2403_v23 = vpop.xlane.xlu0 %2402 }
0x1f61   :  { %v2404_v27 = vsub.f32 %v2399_v25, %v2403_v23 }
0x1f63   :  { %v2405_v7 = vmul.f32 1.442695, %v2404_v27 }
0x1f65   :  { %2597 = vpow2.f32 %v2405_v7 }
0x1f6b   :  { %v2598_v24 = vpop.eup %2597 }
0x1f6c   :  { %v2407_v26 = vsel %vm2400_vm15, %v2598_v24, 0.0 }
0x1f6d   :  { %2408 = vadd.xlane.f32.xlu1 %v2407_v26 }
0x1fe0   :  { %v2409_v28 = vpop.xlane.xlu1 %2408 }
0x1fe1   :  { %2599 = vrcp.f32 %v2409_v28 }
0x1fe7   :  { %v2600_v29 = vpop.eup %2599 }
0x1fe8   :  { %v2411_v12 = vmul.f32 %v2600_v29, %v2598_v24 }
0x1fea   :  { %2412 = vst.msk [vmem:[#allocation24] sm:$0x3] %vm2400_vm15, %v2411_v12 }
0x1feb   :  { %2423 = dma.vmem_to_hbm [thread:$0]  %s2419_s2, 32, %s2421_s7, [#allocation6]  }
0x1fec   :  { %2927 = dma.done.wait [#allocation6], 32  }
0x1fed   :  { %2928 = vsyncadd [#allocation6], 4294967264 }
0x1fee   :  { %2428 = vsyncpa [#allocation5], 1 }
0x1fef   :  { %2429 = vsyncpa [#allocation8], 1 }
0x1ff0   :  { %2430 = vsyncpa [#allocation11], 1 }
0x1ff1   :  { %2431 = vsyncpa [#allocation14], 1 }
0x1ff2   :  { %2432 = vsyncpa [#allocation17], 1 }
0x1ff3   :  { %2433 = vsyncpa [#allocation20], 1 }
0x1ff4   :  { %2434 = vsyncpa [#allocation23], 1 }
0x1ff5   :  { %2435 = vsyncpa [#allocation6], 1 }

</bundles_post_ra>
